<compile_context>
chip_gen: v5e
topology: v5e:2x2
jax: 0.10.0
libtpu: 0.0.40
codegen_flags: <defaults>
</compile_context>

<pallas_src>
import functools

import numpy as np
import jax
import jax.numpy as jnp
from jax.experimental import pallas as pl
from jax.experimental.pallas import tpu as pltpu

# ----------------------------- architecture constants -----------------------
C_IN, C_OUT = 4, 4
C0, C1, C2 = 8, 16, 32          # MONAI channels=(8, 16, 32)
EPS = 1e-5                      # InstanceNorm2d default eps


# ------------------------- wrapper-side constant matrices -------------------
def _pad_scatter(hin, win):
    """(hin*win, (hin+2)*(win+2)+2) 0/1: pixel (i,j) -> padded (i+1, j+1)."""
    he, we = hin + 2, win + 2
    g = np.zeros((hin * win, he * we + 2), np.float32)
    for i in range(hin):
        for j in range(win):
            g[i * win + j, (i + 1) * we + (j + 1)] = 1.0
    return g


def _dilate_scatter(hin, win):
    """ConvT(k3,s2,p1,op1) zero insertion: pixel (i,j) -> (1+2i, 1+2j) in
    the (2hin+2, 2win+2) dilated+padded grid (+2 slack columns)."""
    he, we = 2 * hin + 2, 2 * win + 2
    g = np.zeros((hin * win, he * we + 2), np.float32)
    for i in range(hin):
        for j in range(win):
            g[i * win + j, (1 + 2 * i) * we + (1 + 2 * j)] = 1.0
    return g


def _select_cols(ho, wo, we, stride):
    """(ho*we, (ho//s)*(wo//s)) 0/1 gather: wide index i*we+j -> compact,
    keeping every `stride`-th valid column (drops the we-wo junk columns)."""
    hs, ws = ho // stride, wo // stride
    s = np.zeros((ho * we, hs * ws), np.float32)
    for i in range(hs):
        for j in range(ws):
            s[(stride * i) * we + (stride * j), i * ws + j] = 1.0
    return s


def _flat_w(w):
    """(3,3,cin,cout) forward-conv weight -> (cout, 9*cin), rows (tap, cin)."""
    cout = w.shape[3]
    return jnp.transpose(w, (3, 0, 1, 2)).reshape(cout, -1)


# ------------------------------- in-kernel helpers ---------------------------
def _im2col9(p_ref, emb, cin, we, ho):
    """Write the 9 conv taps as contiguous lane slices of flat `emb`
    (cin, He*we+2) into the (9*cin, ho*we) patches scratch (bf16)."""
    lw = ho * we
    for di in range(3):
        for dj in range(3):
            off = di * we + dj
            p_ref[pl.ds((di * 3 + dj) * cin, cin), :] = (
                emb[:, off:off + lw].astype(p_ref.dtype))


def _inorm_prelu(v, alpha):
    """InstanceNorm2d(affine=False, eps=1e-5, biased var) + PReLU, f32.
    v is channel-major (cout, M) over the valid spatial positions only."""
    m = float(v.shape[1])
    mu = jnp.sum(v, axis=1, keepdims=True) / m
    var = jnp.sum(v * v, axis=1, keepdims=True) / m - mu * mu
    var = jnp.maximum(var, 0.0)                       # guard E[x^2]-mu^2 < 0
    y = (v - mu) * jax.lax.rsqrt(var + EPS)
    return jnp.where(y >= 0.0, y, alpha * y)


# ----------------------------------- kernel ----------------------------------
def _unet_kernel(x_ref, wd0_ref, wd1_ref, wbt_ref, wu1_ref, wu0_ref,
                 gd0_ref, gd1_ref, gu1_ref, gu0_ref,
                 s0_ref, s1_ref, rbt_ref, ru1_ref, a_ref,
                 o_ref,
                 p0, p1, pb, pu1, pu0, cat1, cat0, *, h, w):
    f32, bf16 = jnp.float32, jnp.bfloat16
    h2, w2, h4, w4 = h // 2, w // 2, h // 4, w // 4

    # ---- down0: Conv(4->8, k3, s2, p1) + IN + PReLU -------------------------
    _im2col9(p0, x_ref[0], C_IN, w + 2, h)            # x arrives padded+flat
    wide = jnp.dot(wd0_ref[...], p0[...], preferred_element_type=f32)
    d0 = _inorm_prelu(jnp.dot(wide, s0_ref[...], preferred_element_type=f32),
                      a_ref[0])                                    # (8, h2*w2)

    # ---- down1: Conv(8->16, k3, s2, p1) + IN + PReLU ------------------------
    emb = jnp.dot(d0.astype(bf16), gd0_ref[...], preferred_element_type=f32)
    _im2col9(p1, emb, C0, w2 + 2, h2)
    wide = jnp.dot(wd1_ref[...], p1[...], preferred_element_type=f32)
    d1 = _inorm_prelu(jnp.dot(wide, s1_ref[...], preferred_element_type=f32),
                      a_ref[1])                                    # (16, h4*w4)

    # ---- bottom: Conv(16->32, k3, s1, p1) + IN + PReLU ----------------------
    emb = jnp.dot(d1.astype(bf16), gd1_ref[...], preferred_element_type=f32)
    _im2col9(pb, emb, C1, w4 + 2, h4)
    wide = jnp.dot(wbt_ref[...], pb[...], preferred_element_type=f32)
    bt = _inorm_prelu(jnp.dot(wide, rbt_ref[...], preferred_element_type=f32),
                      a_ref[2])                                    # (32, h4*w4)

    # ---- up1: ConvT(48->8, k3, s2, p1, op1) on cat([d1, bt]) + IN + PReLU ---
    cat1[pl.ds(0, C1), :] = d1.astype(bf16)
    cat1[pl.ds(C1, C2), :] = bt.astype(bf16)
    emb = jnp.dot(cat1[...], gu1_ref[...], preferred_element_type=f32)
    _im2col9(pu1, emb, C1 + C2, w2 + 2, h2)
    wide = jnp.dot(wu1_ref[...], pu1[...], preferred_element_type=f32)
    u1 = _inorm_prelu(jnp.dot(wide, ru1_ref[...], preferred_element_type=f32),
                      a_ref[3])                                    # (8, h2*w2)

    # ---- up0: ConvT(16->4, k3, s2, p1, op1) on cat([d0, u1]); conv_only -----
    cat0[pl.ds(0, C0), :] = d0.astype(bf16)
    cat0[pl.ds(C0, C0), :] = u1.astype(bf16)
    emb = jnp.dot(cat0[...], gu0_ref[...], preferred_element_type=f32)
    _im2col9(pu0, emb, 2 * C0, w + 2, h)
    # bias folded into the matmul: two ones rows x (bias, 0) weight columns.
    pu0[pl.ds(9 * 2 * C0, 2), :] = jnp.ones((2, h * (w + 2)), bf16)
    o_ref[0] = jnp.dot(wu0_ref[...], pu0[...], preferred_element_type=f32)


# --------------------------------- forward -----------------------------------
def custom_unet_forward(x_nchw, params):
    n, cin, h, w = x_nchw.shape
    assert cin == C_IN and h % 4 == 0 and w % 4 == 0
    h2, w2, h4, w4 = h // 2, w // 2, h // 4, w // 4
    f32, bf16 = jnp.float32, jnp.bfloat16

    # Input: NCHW, spatially zero-padded by 1, flattened, +2 slack columns.
    xe = jnp.pad(x_nchw.astype(f32), ((0, 0), (0, 0), (1, 1), (1, 1)))
    xe = xe.reshape(n, C_IN, (h + 2) * (w + 2))
    xe = jnp.pad(xe, ((0, 0), (0, 0), (0, 2)))
    e_in = (h + 2) * (w + 2) + 2

    # Weights -> (cout, 9*cin) bf16; final conv bias folded in as extra columns.
    w_d0 = _flat_w(params["w_d0"]).astype(bf16)
    w_d1 = _flat_w(params["w_d1"]).astype(bf16)
    w_bt = _flat_w(params["w_bt"]).astype(bf16)
    w_u1 = _flat_w(params["w_u1"]).astype(bf16)
    w_u0 = jnp.concatenate(
        [_flat_w(params["w_u0"]),
         params["b_u0"].reshape(C_OUT, 1),
         jnp.zeros((C_OUT, 1), jnp.float32)], axis=1).astype(bf16)
    alphas = jnp.concatenate([params["a_d0"], params["a_d1"],
                              params["a_bt"], params["a_u1"]]).astype(f32)

    # Constant 0/1 scatter (pad / dilate) and gather (subsample / compact) mats.
    g_d0 = jnp.asarray(_pad_scatter(h2, w2), dtype=bf16)
    g_d1 = jnp.asarray(_pad_scatter(h4, w4), dtype=bf16)
    g_u1 = jnp.asarray(_dilate_scatter(h4, w4), dtype=bf16)
    g_u0 = jnp.asarray(_dilate_scatter(h2, w2), dtype=bf16)
    s_0 = jnp.asarray(_select_cols(h, w, w + 2, 2), dtype=f32)
    s_1 = jnp.asarray(_select_cols(h2, w2, w2 + 2, 2), dtype=f32)
    r_bt = jnp.asarray(_select_cols(h4, w4, w4 + 2, 1), dtype=f32)
    r_u1 = jnp.asarray(_select_cols(h2, w2, w2 + 2, 1), dtype=f32)

    wide_out = h * (w + 2)                 # final conv emitted in "wide" layout

    def cspec(a):
        return pl.BlockSpec(a.shape, lambda b: (0, 0))

    y = pl.pallas_call(
        functools.partial(_unet_kernel, h=h, w=w),
        out_shape=jax.ShapeDtypeStruct((n, C_OUT, wide_out), f32),
        grid=(n,),
        in_specs=[
            pl.BlockSpec((1, C_IN, e_in), lambda b: (b, 0, 0)),
            cspec(w_d0), cspec(w_d1), cspec(w_bt), cspec(w_u1), cspec(w_u0),
            cspec(g_d0), cspec(g_d1), cspec(g_u1), cspec(g_u0),
            cspec(s_0), cspec(s_1), cspec(r_bt), cspec(r_u1),
            pl.BlockSpec(memory_space=pltpu.MemorySpace.SMEM),   # PReLU alphas
        ],
        out_specs=pl.BlockSpec((1, C_OUT, wide_out), lambda b: (b, 0, 0)),
        scratch_shapes=[
            pltpu.VMEM((9 * C_IN, h * (w + 2)), bf16),           # p0
            pltpu.VMEM((9 * C0, h2 * (w2 + 2)), bf16),           # p1
            pltpu.VMEM((9 * C1, h4 * (w4 + 2)), bf16),           # pb
            pltpu.VMEM((9 * (C1 + C2), h2 * (w2 + 2)), bf16),    # pu1
            pltpu.VMEM((9 * 2 * C0 + 2, h * (w + 2)), bf16),     # pu0 (+bias rows)
            pltpu.VMEM((C1 + C2, h4 * w4), bf16),                # cat1
            pltpu.VMEM((2 * C0, h2 * w2), bf16),                 # cat0
        ],
        compiler_params=pltpu.CompilerParams(
            dimension_semantics=("parallel",)),
    )(xe, w_d0, w_d1, w_bt, w_u1, w_u0,
      g_d0, g_d1, g_u1, g_u0, s_0, s_1, r_bt, r_u1, alphas)

    # wide layout (row stride w+2) -> NCHW, dropping the 2 junk cols per row.
    return y.reshape(n, C_OUT, h, w + 2)[:, :, :, :w]


# -------------------------------- parameters ---------------------------------
def init_params(key):
    """Self-contained init matching the MONAI UNet layer shapes.

    Conv / ConvT weights are stored in the equivalent-forward-conv layout
    (kh, kw, Cin, Cout).
    # TODO(synk): importing real PyTorch ConvTranspose2d weights
    # (Cin, Cout, kh, kw) would need a spatial flip + axis swap first.
    Biases of convs followed by a non-affine InstanceNorm are omitted (exactly
    cancelled by the norm); only the final conv_only layer keeps its bias.
    """
    shapes = {
        "w_d0": (3, 3, C_IN, C0),
        "w_d1": (3, 3, C0, C1),
        "w_bt": (3, 3, C1, C2),
        "w_u1": (3, 3, C1 + C2, C0),
        "w_u0": (3, 3, 2 * C0, C_OUT),
    }
    params = {}
    keys = jax.random.split(key, len(shapes) + 1)
    for i, (name, shp) in enumerate(shapes.items()):
        fan_in = shp[0] * shp[1] * shp[2]
        scale = 1.0 / float(fan_in) ** 0.5
        params[name] = jax.random.uniform(keys[i], shp, jnp.float32,
                                          -scale, scale)
    scale = 1.0 / float(3 * 3 * 2 * C0) ** 0.5
    params["b_u0"] = jax.random.uniform(keys[-1], (C_OUT,), jnp.float32,
                                        -scale, scale)
    for name in ("a_d0", "a_d1", "a_bt", "a_u1"):
        params[name] = jnp.full((1,), 0.25, jnp.float32)   # nn.PReLU() default
    return params


# ----------------------------------- main -------------------------------------
if __name__ == "__main__":
    key = jax.random.PRNGKey(0)
    k_x, k_p = jax.random.split(key)

    x = jax.random.normal(k_x, (2, 4, 16, 16), jnp.float32)   # NCHW like PyTorch
    params = init_params(k_p)

    fwd = jax.jit(custom_unet_forward)
    y = fwd(x, params)
    jax.block_until_ready(y)

    assert y.shape == (2, 4, 16, 16), y.shape
    assert bool(jnp.all(jnp.isfinite(y)))
    print("KERNEL_OK")
</pallas_src>

<mosaic_0001>
module attributes {stable_mosaic.version = 11 : i64} {
  func.func @_unet_kernel(%arg0: i32, %arg1: memref<1x4x326xf32, #tpu.memory_space<vmem>>, %arg2: memref<8x36xbf16, #tpu.memory_space<vmem>>, %arg3: memref<16x72xbf16, #tpu.memory_space<vmem>>, %arg4: memref<32x144xbf16, #tpu.memory_space<vmem>>, %arg5: memref<8x432xbf16, #tpu.memory_space<vmem>>, %arg6: memref<4x146xbf16, #tpu.memory_space<vmem>>, %arg7: memref<64x102xbf16, #tpu.memory_space<vmem>>, %arg8: memref<16x38xbf16, #tpu.memory_space<vmem>>, %arg9: memref<16x102xbf16, #tpu.memory_space<vmem>>, %arg10: memref<64x326xbf16, #tpu.memory_space<vmem>>, %arg11: memref<288x64xf32, #tpu.memory_space<vmem>>, %arg12: memref<80x16xf32, #tpu.memory_space<vmem>>, %arg13: memref<24x16xf32, #tpu.memory_space<vmem>>, %arg14: memref<80x64xf32, #tpu.memory_space<vmem>>, %arg15: memref<4xf32, #tpu.memory_space<smem>>, %arg16: memref<1x4x288xf32, #tpu.memory_space<vmem>>, %arg17: memref<36x288xbf16, #tpu.memory_space<vmem>>, %arg18: memref<72x80xbf16, #tpu.memory_space<vmem>>, %arg19: memref<144x24xbf16, #tpu.memory_space<vmem>>, %arg20: memref<432x80xbf16, #tpu.memory_space<vmem>>, %arg21: memref<146x288xbf16, #tpu.memory_space<vmem>>, %arg22: memref<48x16xbf16, #tpu.memory_space<vmem>>, %arg23: memref<16x64xbf16, #tpu.memory_space<vmem>>) attributes {dimension_semantics = [#tpu.dimension_semantics<parallel>], iteration_bounds = array<i64: 2>, scalar_prefetch = 0 : i64, scratch_operands = 7 : i64, tpu.core_type = #tpu.core_type<tc>, window_params = [{transform_indices = @transform_0, window_bounds = array<i64: 1, 4, 326>}, {pipeline_mode = #tpu.pipeline_mode<synchronous>, transform_indices = @transform_1, window_bounds = array<i64: 8, 36>}, {pipeline_mode = #tpu.pipeline_mode<synchronous>, transform_indices = @transform_2, window_bounds = array<i64: 16, 72>}, {pipeline_mode = #tpu.pipeline_mode<synchronous>, transform_indices = @transform_3, window_bounds = array<i64: 32, 144>}, {pipeline_mode = #tpu.pipeline_mode<synchronous>, transform_indices = @transform_4, window_bounds = array<i64: 8, 432>}, {pipeline_mode = #tpu.pipeline_mode<synchronous>, transform_indices = @transform_5, window_bounds = array<i64: 4, 146>}, {pipeline_mode = #tpu.pipeline_mode<synchronous>, transform_indices = @transform_6, window_bounds = array<i64: 64, 102>}, {pipeline_mode = #tpu.pipeline_mode<synchronous>, transform_indices = @transform_7, window_bounds = array<i64: 16, 38>}, {pipeline_mode = #tpu.pipeline_mode<synchronous>, transform_indices = @transform_8, window_bounds = array<i64: 16, 102>}, {pipeline_mode = #tpu.pipeline_mode<synchronous>, transform_indices = @transform_9, window_bounds = array<i64: 64, 326>}, {pipeline_mode = #tpu.pipeline_mode<synchronous>, transform_indices = @transform_10, window_bounds = array<i64: 288, 64>}, {pipeline_mode = #tpu.pipeline_mode<synchronous>, transform_indices = @transform_11, window_bounds = array<i64: 80, 16>}, {pipeline_mode = #tpu.pipeline_mode<synchronous>, transform_indices = @transform_12, window_bounds = array<i64: 24, 16>}, {pipeline_mode = #tpu.pipeline_mode<synchronous>, transform_indices = @transform_13, window_bounds = array<i64: 80, 64>}, {transform_indices = @transform_14, window_bounds = array<i64: 4>}, {transform_indices = @transform_15, window_bounds = array<i64: 1, 4, 288>}]} {
    %c0 = arith.constant 0 : index
    %c0_0 = arith.constant 0 : index
    %c0_1 = arith.constant 0 : index
    %0 = vector.load %arg1[%c0, %c0_0, %c0_1] : memref<1x4x326xf32, #tpu.memory_space<vmem>>, vector<1x4x326xf32>
    %1 = vector.shape_cast %0 : vector<1x4x326xf32> to vector<4x326xf32>
    %2 = vector.extract_strided_slice %1 {offsets = [0, 0], sizes = [4, 288], strides = [1, 1]} : vector<4x326xf32> to vector<4x288xf32>
    %3 = arith.truncf %2 : vector<4x288xf32> to vector<4x288xbf16>
    %c0_2 = arith.constant 0 : index
    %c0_3 = arith.constant 0 : index
    %4 = vector.load %arg17[%c0_2, %c0_3] : memref<36x288xbf16, #tpu.memory_space<vmem>>, vector<4x288xbf16>
    tpu.vector_store %arg17[%c0_2, %c0_3], %3 {strides = array<i32>} : memref<36x288xbf16, #tpu.memory_space<vmem>>, vector<4x288xbf16>,
    %5 = vector.extract_strided_slice %1 {offsets = [0, 1], sizes = [4, 288], strides = [1, 1]} : vector<4x326xf32> to vector<4x288xf32>
    %6 = arith.truncf %5 : vector<4x288xf32> to vector<4x288xbf16>
    %c4 = arith.constant 4 : index
    %c0_4 = arith.constant 0 : index
    %7 = vector.load %arg17[%c4, %c0_4] : memref<36x288xbf16, #tpu.memory_space<vmem>>, vector<4x288xbf16>
    tpu.vector_store %arg17[%c4, %c0_4], %6 {strides = array<i32>} : memref<36x288xbf16, #tpu.memory_space<vmem>>, vector<4x288xbf16>,
    %8 = vector.extract_strided_slice %1 {offsets = [0, 2], sizes = [4, 288], strides = [1, 1]} : vector<4x326xf32> to vector<4x288xf32>
    %9 = arith.truncf %8 : vector<4x288xf32> to vector<4x288xbf16>
    %c8 = arith.constant 8 : index
    %c0_5 = arith.constant 0 : index
    %10 = vector.load %arg17[%c8, %c0_5] : memref<36x288xbf16, #tpu.memory_space<vmem>>, vector<4x288xbf16>
    tpu.vector_store %arg17[%c8, %c0_5], %9 {strides = array<i32>} : memref<36x288xbf16, #tpu.memory_space<vmem>>, vector<4x288xbf16>,
    %11 = vector.extract_strided_slice %1 {offsets = [0, 18], sizes = [4, 288], strides = [1, 1]} : vector<4x326xf32> to vector<4x288xf32>
    %12 = arith.truncf %11 : vector<4x288xf32> to vector<4x288xbf16>
    %c12 = arith.constant 12 : index
    %c0_6 = arith.constant 0 : index
    %13 = vector.load %arg17[%c12, %c0_6] : memref<36x288xbf16, #tpu.memory_space<vmem>>, vector<4x288xbf16>
    tpu.vector_store %arg17[%c12, %c0_6], %12 {strides = array<i32>} : memref<36x288xbf16, #tpu.memory_space<vmem>>, vector<4x288xbf16>,
    %14 = vector.extract_strided_slice %1 {offsets = [0, 19], sizes = [4, 288], strides = [1, 1]} : vector<4x326xf32> to vector<4x288xf32>
    %15 = arith.truncf %14 : vector<4x288xf32> to vector<4x288xbf16>
    %c16 = arith.constant 16 : index
    %c0_7 = arith.constant 0 : index
    %16 = vector.load %arg17[%c16, %c0_7] : memref<36x288xbf16, #tpu.memory_space<vmem>>, vector<4x288xbf16>
    tpu.vector_store %arg17[%c16, %c0_7], %15 {strides = array<i32>} : memref<36x288xbf16, #tpu.memory_space<vmem>>, vector<4x288xbf16>,
    %17 = vector.extract_strided_slice %1 {offsets = [0, 20], sizes = [4, 288], strides = [1, 1]} : vector<4x326xf32> to vector<4x288xf32>
    %18 = arith.truncf %17 : vector<4x288xf32> to vector<4x288xbf16>
    %c20 = arith.constant 20 : index
    %c0_8 = arith.constant 0 : index
    %19 = vector.load %arg17[%c20, %c0_8] : memref<36x288xbf16, #tpu.memory_space<vmem>>, vector<4x288xbf16>
    tpu.vector_store %arg17[%c20, %c0_8], %18 {strides = array<i32>} : memref<36x288xbf16, #tpu.memory_space<vmem>>, vector<4x288xbf16>,
    %20 = vector.extract_strided_slice %1 {offsets = [0, 36], sizes = [4, 288], strides = [1, 1]} : vector<4x326xf32> to vector<4x288xf32>
    %21 = arith.truncf %20 : vector<4x288xf32> to vector<4x288xbf16>
    %c24 = arith.constant 24 : index
    %c0_9 = arith.constant 0 : index
    %22 = vector.load %arg17[%c24, %c0_9] : memref<36x288xbf16, #tpu.memory_space<vmem>>, vector<4x288xbf16>
    tpu.vector_store %arg17[%c24, %c0_9], %21 {strides = array<i32>} : memref<36x288xbf16, #tpu.memory_space<vmem>>, vector<4x288xbf16>,
    %23 = vector.extract_strided_slice %1 {offsets = [0, 37], sizes = [4, 288], strides = [1, 1]} : vector<4x326xf32> to vector<4x288xf32>
    %24 = arith.truncf %23 : vector<4x288xf32> to vector<4x288xbf16>
    %c28 = arith.constant 28 : index
    %c0_10 = arith.constant 0 : index
    %25 = vector.load %arg17[%c28, %c0_10] : memref<36x288xbf16, #tpu.memory_space<vmem>>, vector<4x288xbf16>
    tpu.vector_store %arg17[%c28, %c0_10], %24 {strides = array<i32>} : memref<36x288xbf16, #tpu.memory_space<vmem>>, vector<4x288xbf16>,
    %26 = vector.extract_strided_slice %1 {offsets = [0, 38], sizes = [4, 288], strides = [1, 1]} : vector<4x326xf32> to vector<4x288xf32>
    %27 = arith.truncf %26 : vector<4x288xf32> to vector<4x288xbf16>
    %c32 = arith.constant 32 : index
    %c0_11 = arith.constant 0 : index
    %28 = vector.load %arg17[%c32, %c0_11] : memref<36x288xbf16, #tpu.memory_space<vmem>>, vector<4x288xbf16>
    tpu.vector_store %arg17[%c32, %c0_11], %27 {strides = array<i32>} : memref<36x288xbf16, #tpu.memory_space<vmem>>, vector<4x288xbf16>,
    %c0_12 = arith.constant 0 : index
    %c0_13 = arith.constant 0 : index
    %29 = vector.load %arg2[%c0_12, %c0_13] : memref<8x36xbf16, #tpu.memory_space<vmem>>, vector<8x36xbf16>
    %c0_14 = arith.constant 0 : index
    %c0_15 = arith.constant 0 : index
    %30 = vector.load %arg17[%c0_14, %c0_15] : memref<36x288xbf16, #tpu.memory_space<vmem>>, vector<36x288xbf16>
    %cst = arith.constant dense<0.000000e+00> : vector<8x288xf32>
    %31 = tpu.matmul %29, %30, %cst {dimension_numbers = #tpu.dot_dimension_numbers<[1], [0], [0], [1], [0, 0, 1, 1], [], []>} : vector<8x36xbf16>, vector<36x288xbf16>, vector<8x288xf32> -> vector<8x288xf32>
    %c0_16 = arith.constant 0 : index
    %c0_17 = arith.constant 0 : index
    %32 = vector.load %arg11[%c0_16, %c0_17] : memref<288x64xf32, #tpu.memory_space<vmem>>, vector<288x64xf32>
    %cst_18 = arith.constant dense<0.000000e+00> : vector<8x64xf32>
    %33 = tpu.matmul %31, %32, %cst_18 {dimension_numbers = #tpu.dot_dimension_numbers<[1], [0], [0], [1], [0, 0, 1, 1], [], []>} : vector<8x288xf32>, vector<288x64xf32>, vector<8x64xf32> -> vector<8x64xf32>
    %c0_19 = arith.constant 0 : index
    %34 = memref.load %arg15[%c0_19] : memref<4xf32, #tpu.memory_space<smem>>
    %cst_20 = arith.constant dense<0.000000e+00> : vector<8xf32>
    %35 = vector.multi_reduction <add>, %33, %cst_20 [1] : vector<8x64xf32> to vector<8xf32>
    %36 = vector.shape_cast %35 : vector<8xf32> to vector<8x1xf32>
    %cst_21 = arith.constant 6.400000e+01 : f32
    %37 = vector.broadcast %cst_21 : f32 to vector<8x1xf32>
    %38 = arith.divf %36, %37 : vector<8x1xf32>
    %39 = arith.mulf %33, %33 : vector<8x64xf32>
    %cst_22 = arith.constant dense<0.000000e+00> : vector<8xf32>
    %40 = vector.multi_reduction <add>, %39, %cst_22 [1] : vector<8x64xf32> to vector<8xf32>
    %41 = vector.shape_cast %40 : vector<8xf32> to vector<8x1xf32>
    %cst_23 = arith.constant 6.400000e+01 : f32
    %42 = vector.broadcast %cst_23 : f32 to vector<8x1xf32>
    %43 = arith.divf %41, %42 : vector<8x1xf32>
    %44 = arith.mulf %38, %38 : vector<8x1xf32>
    %45 = arith.subf %43, %44 : vector<8x1xf32>
    %cst_24 = arith.constant 0.000000e+00 : f32
    %46 = vector.broadcast %cst_24 : f32 to vector<8x1xf32>
    %47 = arith.maximumf %45, %46 : vector<8x1xf32>
    %48 = vector.broadcast %38 : vector<8x1xf32> to vector<8x64xf32>
    %49 = arith.subf %33, %48 : vector<8x64xf32>
    %cst_25 = arith.constant 9.99999974E-6 : f32
    %50 = vector.broadcast %cst_25 : f32 to vector<8x1xf32>
    %51 = arith.addf %47, %50 : vector<8x1xf32>
    %52 = math.rsqrt %51 : vector<8x1xf32>
    %53 = vector.broadcast %52 : vector<8x1xf32> to vector<8x64xf32>
    %54 = arith.mulf %49, %53 : vector<8x64xf32>
    %cst_26 = arith.constant 0.000000e+00 : f32
    %55 = vector.broadcast %cst_26 : f32 to vector<8x64xf32>
    %56 = arith.cmpf oge, %54, %55 : vector<8x64xf32>
    %57 = vector.broadcast %34 : f32 to vector<8x64xf32>
    %58 = arith.mulf %57, %54 : vector<8x64xf32>
    %59 = arith.select %56, %54, %58 : vector<8x64xi1>, vector<8x64xf32>
    %60 = arith.truncf %59 : vector<8x64xf32> to vector<8x64xbf16>
    %c0_27 = arith.constant 0 : index
    %c0_28 = arith.constant 0 : index
    %61 = vector.load %arg7[%c0_27, %c0_28] : memref<64x102xbf16, #tpu.memory_space<vmem>>, vector<64x102xbf16>
    %cst_29 = arith.constant dense<0.000000e+00> : vector<8x102xf32>
    %62 = tpu.matmul %60, %61, %cst_29 {dimension_numbers = #tpu.dot_dimension_numbers<[1], [0], [0], [1], [0, 0, 1, 1], [], []>} : vector<8x64xbf16>, vector<64x102xbf16>, vector<8x102xf32> -> vector<8x102xf32>
    %63 = vector.extract_strided_slice %62 {offsets = [0, 0], sizes = [8, 80], strides = [1, 1]} : vector<8x102xf32> to vector<8x80xf32>
    %64 = arith.truncf %63 : vector<8x80xf32> to vector<8x80xbf16>
    %c0_30 = arith.constant 0 : index
    %c0_31 = arith.constant 0 : index
    %65 = vector.load %arg18[%c0_30, %c0_31] : memref<72x80xbf16, #tpu.memory_space<vmem>>, vector<8x80xbf16>
    tpu.vector_store %arg18[%c0_30, %c0_31], %64 {strides = array<i32>} : memref<72x80xbf16, #tpu.memory_space<vmem>>, vector<8x80xbf16>,
    %66 = vector.extract_strided_slice %62 {offsets = [0, 1], sizes = [8, 80], strides = [1, 1]} : vector<8x102xf32> to vector<8x80xf32>
    %67 = arith.truncf %66 : vector<8x80xf32> to vector<8x80xbf16>
    %c8_32 = arith.constant 8 : index
    %c0_33 = arith.constant 0 : index
    %68 = vector.load %arg18[%c8_32, %c0_33] : memref<72x80xbf16, #tpu.memory_space<vmem>>, vector<8x80xbf16>
    tpu.vector_store %arg18[%c8_32, %c0_33], %67 {strides = array<i32>} : memref<72x80xbf16, #tpu.memory_space<vmem>>, vector<8x80xbf16>,
    %69 = vector.extract_strided_slice %62 {offsets = [0, 2], sizes = [8, 80], strides = [1, 1]} : vector<8x102xf32> to vector<8x80xf32>
    %70 = arith.truncf %69 : vector<8x80xf32> to vector<8x80xbf16>
    %c16_34 = arith.constant 16 : index
    %c0_35 = arith.constant 0 : index
    %71 = vector.load %arg18[%c16_34, %c0_35] : memref<72x80xbf16, #tpu.memory_space<vmem>>, vector<8x80xbf16>
    tpu.vector_store %arg18[%c16_34, %c0_35], %70 {strides = array<i32>} : memref<72x80xbf16, #tpu.memory_space<vmem>>, vector<8x80xbf16>,
    %72 = vector.extract_strided_slice %62 {offsets = [0, 10], sizes = [8, 80], strides = [1, 1]} : vector<8x102xf32> to vector<8x80xf32>
    %73 = arith.truncf %72 : vector<8x80xf32> to vector<8x80xbf16>
    %c24_36 = arith.constant 24 : index
    %c0_37 = arith.constant 0 : index
    %74 = vector.load %arg18[%c24_36, %c0_37] : memref<72x80xbf16, #tpu.memory_space<vmem>>, vector<8x80xbf16>
    tpu.vector_store %arg18[%c24_36, %c0_37], %73 {strides = array<i32>} : memref<72x80xbf16, #tpu.memory_space<vmem>>, vector<8x80xbf16>,
    %75 = vector.extract_strided_slice %62 {offsets = [0, 11], sizes = [8, 80], strides = [1, 1]} : vector<8x102xf32> to vector<8x80xf32>
    %76 = arith.truncf %75 : vector<8x80xf32> to vector<8x80xbf16>
    %c32_38 = arith.constant 32 : index
    %c0_39 = arith.constant 0 : index
    %77 = vector.load %arg18[%c32_38, %c0_39] : memref<72x80xbf16, #tpu.memory_space<vmem>>, vector<8x80xbf16>
    tpu.vector_store %arg18[%c32_38, %c0_39], %76 {strides = array<i32>} : memref<72x80xbf16, #tpu.memory_space<vmem>>, vector<8x80xbf16>,
    %78 = vector.extract_strided_slice %62 {offsets = [0, 12], sizes = [8, 80], strides = [1, 1]} : vector<8x102xf32> to vector<8x80xf32>
    %79 = arith.truncf %78 : vector<8x80xf32> to vector<8x80xbf16>
    %c40 = arith.constant 40 : index
    %c0_40 = arith.constant 0 : index
    %80 = vector.load %arg18[%c40, %c0_40] : memref<72x80xbf16, #tpu.memory_space<vmem>>, vector<8x80xbf16>
    tpu.vector_store %arg18[%c40, %c0_40], %79 {strides = array<i32>} : memref<72x80xbf16, #tpu.memory_space<vmem>>, vector<8x80xbf16>,
    %81 = vector.extract_strided_slice %62 {offsets = [0, 20], sizes = [8, 80], strides = [1, 1]} : vector<8x102xf32> to vector<8x80xf32>
    %82 = arith.truncf %81 : vector<8x80xf32> to vector<8x80xbf16>
    %c48 = arith.constant 48 : index
    %c0_41 = arith.constant 0 : index
    %83 = vector.load %arg18[%c48, %c0_41] : memref<72x80xbf16, #tpu.memory_space<vmem>>, vector<8x80xbf16>
    tpu.vector_store %arg18[%c48, %c0_41], %82 {strides = array<i32>} : memref<72x80xbf16, #tpu.memory_space<vmem>>, vector<8x80xbf16>,
    %84 = vector.extract_strided_slice %62 {offsets = [0, 21], sizes = [8, 80], strides = [1, 1]} : vector<8x102xf32> to vector<8x80xf32>
    %85 = arith.truncf %84 : vector<8x80xf32> to vector<8x80xbf16>
    %c56 = arith.constant 56 : index
    %c0_42 = arith.constant 0 : index
    %86 = vector.load %arg18[%c56, %c0_42] : memref<72x80xbf16, #tpu.memory_space<vmem>>, vector<8x80xbf16>
    tpu.vector_store %arg18[%c56, %c0_42], %85 {strides = array<i32>} : memref<72x80xbf16, #tpu.memory_space<vmem>>, vector<8x80xbf16>,
    %87 = vector.extract_strided_slice %62 {offsets = [0, 22], sizes = [8, 80], strides = [1, 1]} : vector<8x102xf32> to vector<8x80xf32>
    %88 = arith.truncf %87 : vector<8x80xf32> to vector<8x80xbf16>
    %c64 = arith.constant 64 : index
    %c0_43 = arith.constant 0 : index
    %89 = vector.load %arg18[%c64, %c0_43] : memref<72x80xbf16, #tpu.memory_space<vmem>>, vector<8x80xbf16>
    tpu.vector_store %arg18[%c64, %c0_43], %88 {strides = array<i32>} : memref<72x80xbf16, #tpu.memory_space<vmem>>, vector<8x80xbf16>,
    %c0_44 = arith.constant 0 : index
    %c0_45 = arith.constant 0 : index
    %90 = vector.load %arg3[%c0_44, %c0_45] : memref<16x72xbf16, #tpu.memory_space<vmem>>, vector<16x72xbf16>
    %c0_46 = arith.constant 0 : index
    %c0_47 = arith.constant 0 : index
    %91 = vector.load %arg18[%c0_46, %c0_47] : memref<72x80xbf16, #tpu.memory_space<vmem>>, vector<72x80xbf16>
    %cst_48 = arith.constant dense<0.000000e+00> : vector<16x80xf32>
    %92 = tpu.matmul %90, %91, %cst_48 {dimension_numbers = #tpu.dot_dimension_numbers<[1], [0], [0], [1], [0, 0, 1, 1], [], []>} : vector<16x72xbf16>, vector<72x80xbf16>, vector<16x80xf32> -> vector<16x80xf32>
    %c0_49 = arith.constant 0 : index
    %c0_50 = arith.constant 0 : index
    %93 = vector.load %arg12[%c0_49, %c0_50] : memref<80x16xf32, #tpu.memory_space<vmem>>, vector<80x16xf32>
    %cst_51 = arith.constant dense<0.000000e+00> : vector<16x16xf32>
    %94 = tpu.matmul %92, %93, %cst_51 {dimension_numbers = #tpu.dot_dimension_numbers<[1], [0], [0], [1], [0, 0, 1, 1], [], []>} : vector<16x80xf32>, vector<80x16xf32>, vector<16x16xf32> -> vector<16x16xf32>
    %c1 = arith.constant 1 : index
    %95 = memref.load %arg15[%c1] : memref<4xf32, #tpu.memory_space<smem>>
    %cst_52 = arith.constant dense<0.000000e+00> : vector<16xf32>
    %96 = vector.multi_reduction <add>, %94, %cst_52 [1] : vector<16x16xf32> to vector<16xf32>
    %97 = vector.shape_cast %96 : vector<16xf32> to vector<16x1xf32>
    %cst_53 = arith.constant 1.600000e+01 : f32
    %98 = vector.broadcast %cst_53 : f32 to vector<16x1xf32>
    %99 = arith.divf %97, %98 : vector<16x1xf32>
    %100 = arith.mulf %94, %94 : vector<16x16xf32>
    %cst_54 = arith.constant dense<0.000000e+00> : vector<16xf32>
    %101 = vector.multi_reduction <add>, %100, %cst_54 [1] : vector<16x16xf32> to vector<16xf32>
    %102 = vector.shape_cast %101 : vector<16xf32> to vector<16x1xf32>
    %cst_55 = arith.constant 1.600000e+01 : f32
    %103 = vector.broadcast %cst_55 : f32 to vector<16x1xf32>
    %104 = arith.divf %102, %103 : vector<16x1xf32>
    %105 = arith.mulf %99, %99 : vector<16x1xf32>
    %106 = arith.subf %104, %105 : vector<16x1xf32>
    %cst_56 = arith.constant 0.000000e+00 : f32
    %107 = vector.broadcast %cst_56 : f32 to vector<16x1xf32>
    %108 = arith.maximumf %106, %107 : vector<16x1xf32>
    %109 = vector.broadcast %99 : vector<16x1xf32> to vector<16x16xf32>
    %110 = arith.subf %94, %109 : vector<16x16xf32>
    %cst_57 = arith.constant 9.99999974E-6 : f32
    %111 = vector.broadcast %cst_57 : f32 to vector<16x1xf32>
    %112 = arith.addf %108, %111 : vector<16x1xf32>
    %113 = math.rsqrt %112 : vector<16x1xf32>
    %114 = vector.broadcast %113 : vector<16x1xf32> to vector<16x16xf32>
    %115 = arith.mulf %110, %114 : vector<16x16xf32>
    %cst_58 = arith.constant 0.000000e+00 : f32
    %116 = vector.broadcast %cst_58 : f32 to vector<16x16xf32>
    %117 = arith.cmpf oge, %115, %116 : vector<16x16xf32>
    %118 = vector.broadcast %95 : f32 to vector<16x16xf32>
    %119 = arith.mulf %118, %115 : vector<16x16xf32>
    %120 = arith.select %117, %115, %119 : vector<16x16xi1>, vector<16x16xf32>
    %121 = arith.truncf %120 : vector<16x16xf32> to vector<16x16xbf16>
    %c0_59 = arith.constant 0 : index
    %c0_60 = arith.constant 0 : index
    %122 = vector.load %arg8[%c0_59, %c0_60] : memref<16x38xbf16, #tpu.memory_space<vmem>>, vector<16x38xbf16>
    %cst_61 = arith.constant dense<0.000000e+00> : vector<16x38xf32>
    %123 = tpu.matmul %121, %122, %cst_61 {dimension_numbers = #tpu.dot_dimension_numbers<[1], [0], [0], [1], [0, 0, 1, 1], [], []>} : vector<16x16xbf16>, vector<16x38xbf16>, vector<16x38xf32> -> vector<16x38xf32>
    %124 = vector.extract_strided_slice %123 {offsets = [0, 0], sizes = [16, 24], strides = [1, 1]} : vector<16x38xf32> to vector<16x24xf32>
    %125 = arith.truncf %124 : vector<16x24xf32> to vector<16x24xbf16>
    %c0_62 = arith.constant 0 : index
    %c0_63 = arith.constant 0 : index
    %126 = vector.load %arg19[%c0_62, %c0_63] : memref<144x24xbf16, #tpu.memory_space<vmem>>, vector<16x24xbf16>
    tpu.vector_store %arg19[%c0_62, %c0_63], %125 {strides = array<i32>} : memref<144x24xbf16, #tpu.memory_space<vmem>>, vector<16x24xbf16>,
    %127 = vector.extract_strided_slice %123 {offsets = [0, 1], sizes = [16, 24], strides = [1, 1]} : vector<16x38xf32> to vector<16x24xf32>
    %128 = arith.truncf %127 : vector<16x24xf32> to vector<16x24xbf16>
    %c16_64 = arith.constant 16 : index
    %c0_65 = arith.constant 0 : index
    %129 = vector.load %arg19[%c16_64, %c0_65] : memref<144x24xbf16, #tpu.memory_space<vmem>>, vector<16x24xbf16>
    tpu.vector_store %arg19[%c16_64, %c0_65], %128 {strides = array<i32>} : memref<144x24xbf16, #tpu.memory_space<vmem>>, vector<16x24xbf16>,
    %130 = vector.extract_strided_slice %123 {offsets = [0, 2], sizes = [16, 24], strides = [1, 1]} : vector<16x38xf32> to vector<16x24xf32>
    %131 = arith.truncf %130 : vector<16x24xf32> to vector<16x24xbf16>
    %c32_66 = arith.constant 32 : index
    %c0_67 = arith.constant 0 : index
    %132 = vector.load %arg19[%c32_66, %c0_67] : memref<144x24xbf16, #tpu.memory_space<vmem>>, vector<16x24xbf16>
    tpu.vector_store %arg19[%c32_66, %c0_67], %131 {strides = array<i32>} : memref<144x24xbf16, #tpu.memory_space<vmem>>, vector<16x24xbf16>,
    %133 = vector.extract_strided_slice %123 {offsets = [0, 6], sizes = [16, 24], strides = [1, 1]} : vector<16x38xf32> to vector<16x24xf32>
    %134 = arith.truncf %133 : vector<16x24xf32> to vector<16x24xbf16>
    %c48_68 = arith.constant 48 : index
    %c0_69 = arith.constant 0 : index
    %135 = vector.load %arg19[%c48_68, %c0_69] : memref<144x24xbf16, #tpu.memory_space<vmem>>, vector<16x24xbf16>
    tpu.vector_store %arg19[%c48_68, %c0_69], %134 {strides = array<i32>} : memref<144x24xbf16, #tpu.memory_space<vmem>>, vector<16x24xbf16>,
    %136 = vector.extract_strided_slice %123 {offsets = [0, 7], sizes = [16, 24], strides = [1, 1]} : vector<16x38xf32> to vector<16x24xf32>
    %137 = arith.truncf %136 : vector<16x24xf32> to vector<16x24xbf16>
    %c64_70 = arith.constant 64 : index
    %c0_71 = arith.constant 0 : index
    %138 = vector.load %arg19[%c64_70, %c0_71] : memref<144x24xbf16, #tpu.memory_space<vmem>>, vector<16x24xbf16>
    tpu.vector_store %arg19[%c64_70, %c0_71], %137 {strides = array<i32>} : memref<144x24xbf16, #tpu.memory_space<vmem>>, vector<16x24xbf16>,
    %139 = vector.extract_strided_slice %123 {offsets = [0, 8], sizes = [16, 24], strides = [1, 1]} : vector<16x38xf32> to vector<16x24xf32>
    %140 = arith.truncf %139 : vector<16x24xf32> to vector<16x24xbf16>
    %c80 = arith.constant 80 : index
    %c0_72 = arith.constant 0 : index
    %141 = vector.load %arg19[%c80, %c0_72] : memref<144x24xbf16, #tpu.memory_space<vmem>>, vector<16x24xbf16>
    tpu.vector_store %arg19[%c80, %c0_72], %140 {strides = array<i32>} : memref<144x24xbf16, #tpu.memory_space<vmem>>, vector<16x24xbf16>,
    %142 = vector.extract_strided_slice %123 {offsets = [0, 12], sizes = [16, 24], strides = [1, 1]} : vector<16x38xf32> to vector<16x24xf32>
    %143 = arith.truncf %142 : vector<16x24xf32> to vector<16x24xbf16>
    %c96 = arith.constant 96 : index
    %c0_73 = arith.constant 0 : index
    %144 = vector.load %arg19[%c96, %c0_73] : memref<144x24xbf16, #tpu.memory_space<vmem>>, vector<16x24xbf16>
    tpu.vector_store %arg19[%c96, %c0_73], %143 {strides = array<i32>} : memref<144x24xbf16, #tpu.memory_space<vmem>>, vector<16x24xbf16>,
    %145 = vector.extract_strided_slice %123 {offsets = [0, 13], sizes = [16, 24], strides = [1, 1]} : vector<16x38xf32> to vector<16x24xf32>
    %146 = arith.truncf %145 : vector<16x24xf32> to vector<16x24xbf16>
    %c112 = arith.constant 112 : index
    %c0_74 = arith.constant 0 : index
    %147 = vector.load %arg19[%c112, %c0_74] : memref<144x24xbf16, #tpu.memory_space<vmem>>, vector<16x24xbf16>
    tpu.vector_store %arg19[%c112, %c0_74], %146 {strides = array<i32>} : memref<144x24xbf16, #tpu.memory_space<vmem>>, vector<16x24xbf16>,
    %148 = vector.extract_strided_slice %123 {offsets = [0, 14], sizes = [16, 24], strides = [1, 1]} : vector<16x38xf32> to vector<16x24xf32>
    %149 = arith.truncf %148 : vector<16x24xf32> to vector<16x24xbf16>
    %c128 = arith.constant 128 : index
    %c0_75 = arith.constant 0 : index
    %150 = vector.load %arg19[%c128, %c0_75] : memref<144x24xbf16, #tpu.memory_space<vmem>>, vector<16x24xbf16>
    tpu.vector_store %arg19[%c128, %c0_75], %149 {strides = array<i32>} : memref<144x24xbf16, #tpu.memory_space<vmem>>, vector<16x24xbf16>,
    %c0_76 = arith.constant 0 : index
    %c0_77 = arith.constant 0 : index
    %151 = vector.load %arg4[%c0_76, %c0_77] : memref<32x144xbf16, #tpu.memory_space<vmem>>, vector<32x144xbf16>
    %c0_78 = arith.constant 0 : index
    %c0_79 = arith.constant 0 : index
    %152 = vector.load %arg19[%c0_78, %c0_79] : memref<144x24xbf16, #tpu.memory_space<vmem>>, vector<144x24xbf16>
    %cst_80 = arith.constant dense<0.000000e+00> : vector<32x24xf32>
    %153 = tpu.matmul %151, %152, %cst_80 {dimension_numbers = #tpu.dot_dimension_numbers<[1], [0], [0], [1], [0, 0, 1, 1], [], []>} : vector<32x144xbf16>, vector<144x24xbf16>, vector<32x24xf32> -> vector<32x24xf32>
    %c0_81 = arith.constant 0 : index
    %c0_82 = arith.constant 0 : index
    %154 = vector.load %arg13[%c0_81, %c0_82] : memref<24x16xf32, #tpu.memory_space<vmem>>, vector<24x16xf32>
    %cst_83 = arith.constant dense<0.000000e+00> : vector<32x16xf32>
    %155 = tpu.matmul %153, %154, %cst_83 {dimension_numbers = #tpu.dot_dimension_numbers<[1], [0], [0], [1], [0, 0, 1, 1], [], []>} : vector<32x24xf32>, vector<24x16xf32>, vector<32x16xf32> -> vector<32x16xf32>
    %c2 = arith.constant 2 : index
    %156 = memref.load %arg15[%c2] : memref<4xf32, #tpu.memory_space<smem>>
    %cst_84 = arith.constant dense<0.000000e+00> : vector<32xf32>
    %157 = vector.multi_reduction <add>, %155, %cst_84 [1] : vector<32x16xf32> to vector<32xf32>
    %158 = vector.shape_cast %157 : vector<32xf32> to vector<32x1xf32>
    %cst_85 = arith.constant 1.600000e+01 : f32
    %159 = vector.broadcast %cst_85 : f32 to vector<32x1xf32>
    %160 = arith.divf %158, %159 : vector<32x1xf32>
    %161 = arith.mulf %155, %155 : vector<32x16xf32>
    %cst_86 = arith.constant dense<0.000000e+00> : vector<32xf32>
    %162 = vector.multi_reduction <add>, %161, %cst_86 [1] : vector<32x16xf32> to vector<32xf32>
    %163 = vector.shape_cast %162 : vector<32xf32> to vector<32x1xf32>
    %cst_87 = arith.constant 1.600000e+01 : f32
    %164 = vector.broadcast %cst_87 : f32 to vector<32x1xf32>
    %165 = arith.divf %163, %164 : vector<32x1xf32>
    %166 = arith.mulf %160, %160 : vector<32x1xf32>
    %167 = arith.subf %165, %166 : vector<32x1xf32>
    %cst_88 = arith.constant 0.000000e+00 : f32
    %168 = vector.broadcast %cst_88 : f32 to vector<32x1xf32>
    %169 = arith.maximumf %167, %168 : vector<32x1xf32>
    %170 = vector.broadcast %160 : vector<32x1xf32> to vector<32x16xf32>
    %171 = arith.subf %155, %170 : vector<32x16xf32>
    %cst_89 = arith.constant 9.99999974E-6 : f32
    %172 = vector.broadcast %cst_89 : f32 to vector<32x1xf32>
    %173 = arith.addf %169, %172 : vector<32x1xf32>
    %174 = math.rsqrt %173 : vector<32x1xf32>
    %175 = vector.broadcast %174 : vector<32x1xf32> to vector<32x16xf32>
    %176 = arith.mulf %171, %175 : vector<32x16xf32>
    %cst_90 = arith.constant 0.000000e+00 : f32
    %177 = vector.broadcast %cst_90 : f32 to vector<32x16xf32>
    %178 = arith.cmpf oge, %176, %177 : vector<32x16xf32>
    %179 = vector.broadcast %156 : f32 to vector<32x16xf32>
    %180 = arith.mulf %179, %176 : vector<32x16xf32>
    %181 = arith.select %178, %176, %180 : vector<32x16xi1>, vector<32x16xf32>
    %182 = arith.truncf %120 : vector<16x16xf32> to vector<16x16xbf16>
    %c0_91 = arith.constant 0 : index
    %c0_92 = arith.constant 0 : index
    %183 = vector.load %arg22[%c0_91, %c0_92] : memref<48x16xbf16, #tpu.memory_space<vmem>>, vector<16x16xbf16>
    tpu.vector_store %arg22[%c0_91, %c0_92], %182 {strides = array<i32>} : memref<48x16xbf16, #tpu.memory_space<vmem>>, vector<16x16xbf16>,
    %184 = arith.truncf %181 : vector<32x16xf32> to vector<32x16xbf16>
    %c16_93 = arith.constant 16 : index
    %c0_94 = arith.constant 0 : index
    %185 = vector.load %arg22[%c16_93, %c0_94] : memref<48x16xbf16, #tpu.memory_space<vmem>>, vector<32x16xbf16>
    tpu.vector_store %arg22[%c16_93, %c0_94], %184 {strides = array<i32>} : memref<48x16xbf16, #tpu.memory_space<vmem>>, vector<32x16xbf16>,
    %c0_95 = arith.constant 0 : index
    %c0_96 = arith.constant 0 : index
    %186 = vector.load %arg22[%c0_95, %c0_96] : memref<48x16xbf16, #tpu.memory_space<vmem>>, vector<48x16xbf16>
    %c0_97 = arith.constant 0 : index
    %c0_98 = arith.constant 0 : index
    %187 = vector.load %arg9[%c0_97, %c0_98] : memref<16x102xbf16, #tpu.memory_space<vmem>>, vector<16x102xbf16>
    %cst_99 = arith.constant dense<0.000000e+00> : vector<48x102xf32>
    %188 = tpu.matmul %186, %187, %cst_99 {dimension_numbers = #tpu.dot_dimension_numbers<[1], [0], [0], [1], [0, 0, 1, 1], [], []>} : vector<48x16xbf16>, vector<16x102xbf16>, vector<48x102xf32> -> vector<48x102xf32>
    %189 = vector.extract_strided_slice %188 {offsets = [0, 0], sizes = [48, 80], strides = [1, 1]} : vector<48x102xf32> to vector<48x80xf32>
    %190 = arith.truncf %189 : vector<48x80xf32> to vector<48x80xbf16>
    %c0_100 = arith.constant 0 : index
    %c0_101 = arith.constant 0 : index
    %191 = vector.load %arg20[%c0_100, %c0_101] : memref<432x80xbf16, #tpu.memory_space<vmem>>, vector<48x80xbf16>
    tpu.vector_store %arg20[%c0_100, %c0_101], %190 {strides = array<i32>} : memref<432x80xbf16, #tpu.memory_space<vmem>>, vector<48x80xbf16>,
    %192 = vector.extract_strided_slice %188 {offsets = [0, 1], sizes = [48, 80], strides = [1, 1]} : vector<48x102xf32> to vector<48x80xf32>
    %193 = arith.truncf %192 : vector<48x80xf32> to vector<48x80xbf16>
    %c48_102 = arith.constant 48 : index
    %c0_103 = arith.constant 0 : index
    %194 = vector.load %arg20[%c48_102, %c0_103] : memref<432x80xbf16, #tpu.memory_space<vmem>>, vector<48x80xbf16>
    tpu.vector_store %arg20[%c48_102, %c0_103], %193 {strides = array<i32>} : memref<432x80xbf16, #tpu.memory_space<vmem>>, vector<48x80xbf16>,
    %195 = vector.extract_strided_slice %188 {offsets = [0, 2], sizes = [48, 80], strides = [1, 1]} : vector<48x102xf32> to vector<48x80xf32>
    %196 = arith.truncf %195 : vector<48x80xf32> to vector<48x80xbf16>
    %c96_104 = arith.constant 96 : index
    %c0_105 = arith.constant 0 : index
    %197 = vector.load %arg20[%c96_104, %c0_105] : memref<432x80xbf16, #tpu.memory_space<vmem>>, vector<48x80xbf16>
    tpu.vector_store %arg20[%c96_104, %c0_105], %196 {strides = array<i32>} : memref<432x80xbf16, #tpu.memory_space<vmem>>, vector<48x80xbf16>,
    %198 = vector.extract_strided_slice %188 {offsets = [0, 10], sizes = [48, 80], strides = [1, 1]} : vector<48x102xf32> to vector<48x80xf32>
    %199 = arith.truncf %198 : vector<48x80xf32> to vector<48x80xbf16>
    %c144 = arith.constant 144 : index
    %c0_106 = arith.constant 0 : index
    %200 = vector.load %arg20[%c144, %c0_106] : memref<432x80xbf16, #tpu.memory_space<vmem>>, vector<48x80xbf16>
    tpu.vector_store %arg20[%c144, %c0_106], %199 {strides = array<i32>} : memref<432x80xbf16, #tpu.memory_space<vmem>>, vector<48x80xbf16>,
    %201 = vector.extract_strided_slice %188 {offsets = [0, 11], sizes = [48, 80], strides = [1, 1]} : vector<48x102xf32> to vector<48x80xf32>
    %202 = arith.truncf %201 : vector<48x80xf32> to vector<48x80xbf16>
    %c192 = arith.constant 192 : index
    %c0_107 = arith.constant 0 : index
    %203 = vector.load %arg20[%c192, %c0_107] : memref<432x80xbf16, #tpu.memory_space<vmem>>, vector<48x80xbf16>
    tpu.vector_store %arg20[%c192, %c0_107], %202 {strides = array<i32>} : memref<432x80xbf16, #tpu.memory_space<vmem>>, vector<48x80xbf16>,
    %204 = vector.extract_strided_slice %188 {offsets = [0, 12], sizes = [48, 80], strides = [1, 1]} : vector<48x102xf32> to vector<48x80xf32>
    %205 = arith.truncf %204 : vector<48x80xf32> to vector<48x80xbf16>
    %c240 = arith.constant 240 : index
    %c0_108 = arith.constant 0 : index
    %206 = vector.load %arg20[%c240, %c0_108] : memref<432x80xbf16, #tpu.memory_space<vmem>>, vector<48x80xbf16>
    tpu.vector_store %arg20[%c240, %c0_108], %205 {strides = array<i32>} : memref<432x80xbf16, #tpu.memory_space<vmem>>, vector<48x80xbf16>,
    %207 = vector.extract_strided_slice %188 {offsets = [0, 20], sizes = [48, 80], strides = [1, 1]} : vector<48x102xf32> to vector<48x80xf32>
    %208 = arith.truncf %207 : vector<48x80xf32> to vector<48x80xbf16>
    %c288 = arith.constant 288 : index
    %c0_109 = arith.constant 0 : index
    %209 = vector.load %arg20[%c288, %c0_109] : memref<432x80xbf16, #tpu.memory_space<vmem>>, vector<48x80xbf16>
    tpu.vector_store %arg20[%c288, %c0_109], %208 {strides = array<i32>} : memref<432x80xbf16, #tpu.memory_space<vmem>>, vector<48x80xbf16>,
    %210 = vector.extract_strided_slice %188 {offsets = [0, 21], sizes = [48, 80], strides = [1, 1]} : vector<48x102xf32> to vector<48x80xf32>
    %211 = arith.truncf %210 : vector<48x80xf32> to vector<48x80xbf16>
    %c336 = arith.constant 336 : index
    %c0_110 = arith.constant 0 : index
    %212 = vector.load %arg20[%c336, %c0_110] : memref<432x80xbf16, #tpu.memory_space<vmem>>, vector<48x80xbf16>
    tpu.vector_store %arg20[%c336, %c0_110], %211 {strides = array<i32>} : memref<432x80xbf16, #tpu.memory_space<vmem>>, vector<48x80xbf16>,
    %213 = vector.extract_strided_slice %188 {offsets = [0, 22], sizes = [48, 80], strides = [1, 1]} : vector<48x102xf32> to vector<48x80xf32>
    %214 = arith.truncf %213 : vector<48x80xf32> to vector<48x80xbf16>
    %c384 = arith.constant 384 : index
    %c0_111 = arith.constant 0 : index
    %215 = vector.load %arg20[%c384, %c0_111] : memref<432x80xbf16, #tpu.memory_space<vmem>>, vector<48x80xbf16>
    tpu.vector_store %arg20[%c384, %c0_111], %214 {strides = array<i32>} : memref<432x80xbf16, #tpu.memory_space<vmem>>, vector<48x80xbf16>,
    %c0_112 = arith.constant 0 : index
    %c0_113 = arith.constant 0 : index
    %216 = vector.load %arg5[%c0_112, %c0_113] : memref<8x432xbf16, #tpu.memory_space<vmem>>, vector<8x432xbf16>
    %c0_114 = arith.constant 0 : index
    %c0_115 = arith.constant 0 : index
    %217 = vector.load %arg20[%c0_114, %c0_115] : memref<432x80xbf16, #tpu.memory_space<vmem>>, vector<432x80xbf16>
    %cst_116 = arith.constant dense<0.000000e+00> : vector<8x80xf32>
    %218 = tpu.matmul %216, %217, %cst_116 {dimension_numbers = #tpu.dot_dimension_numbers<[1], [0], [0], [1], [0, 0, 1, 1], [], []>} : vector<8x432xbf16>, vector<432x80xbf16>, vector<8x80xf32> -> vector<8x80xf32>
    %c0_117 = arith.constant 0 : index
    %c0_118 = arith.constant 0 : index
    %219 = vector.load %arg14[%c0_117, %c0_118] : memref<80x64xf32, #tpu.memory_space<vmem>>, vector<80x64xf32>
    %cst_119 = arith.constant dense<0.000000e+00> : vector<8x64xf32>
    %220 = tpu.matmul %218, %219, %cst_119 {dimension_numbers = #tpu.dot_dimension_numbers<[1], [0], [0], [1], [0, 0, 1, 1], [], []>} : vector<8x80xf32>, vector<80x64xf32>, vector<8x64xf32> -> vector<8x64xf32>
    %c3 = arith.constant 3 : index
    %221 = memref.load %arg15[%c3] : memref<4xf32, #tpu.memory_space<smem>>
    %cst_120 = arith.constant dense<0.000000e+00> : vector<8xf32>
    %222 = vector.multi_reduction <add>, %220, %cst_120 [1] : vector<8x64xf32> to vector<8xf32>
    %223 = vector.shape_cast %222 : vector<8xf32> to vector<8x1xf32>
    %cst_121 = arith.constant 6.400000e+01 : f32
    %224 = vector.broadcast %cst_121 : f32 to vector<8x1xf32>
    %225 = arith.divf %223, %224 : vector<8x1xf32>
    %226 = arith.mulf %220, %220 : vector<8x64xf32>
    %cst_122 = arith.constant dense<0.000000e+00> : vector<8xf32>
    %227 = vector.multi_reduction <add>, %226, %cst_122 [1] : vector<8x64xf32> to vector<8xf32>
    %228 = vector.shape_cast %227 : vector<8xf32> to vector<8x1xf32>
    %cst_123 = arith.constant 6.400000e+01 : f32
    %229 = vector.broadcast %cst_123 : f32 to vector<8x1xf32>
    %230 = arith.divf %228, %229 : vector<8x1xf32>
    %231 = arith.mulf %225, %225 : vector<8x1xf32>
    %232 = arith.subf %230, %231 : vector<8x1xf32>
    %cst_124 = arith.constant 0.000000e+00 : f32
    %233 = vector.broadcast %cst_124 : f32 to vector<8x1xf32>
    %234 = arith.maximumf %232, %233 : vector<8x1xf32>
    %235 = vector.broadcast %225 : vector<8x1xf32> to vector<8x64xf32>
    %236 = arith.subf %220, %235 : vector<8x64xf32>
    %cst_125 = arith.constant 9.99999974E-6 : f32
    %237 = vector.broadcast %cst_125 : f32 to vector<8x1xf32>
    %238 = arith.addf %234, %237 : vector<8x1xf32>
    %239 = math.rsqrt %238 : vector<8x1xf32>
    %240 = vector.broadcast %239 : vector<8x1xf32> to vector<8x64xf32>
    %241 = arith.mulf %236, %240 : vector<8x64xf32>
    %cst_126 = arith.constant 0.000000e+00 : f32
    %242 = vector.broadcast %cst_126 : f32 to vector<8x64xf32>
    %243 = arith.cmpf oge, %241, %242 : vector<8x64xf32>
    %244 = vector.broadcast %221 : f32 to vector<8x64xf32>
    %245 = arith.mulf %244, %241 : vector<8x64xf32>
    %246 = arith.select %243, %241, %245 : vector<8x64xi1>, vector<8x64xf32>
    %247 = arith.truncf %59 : vector<8x64xf32> to vector<8x64xbf16>
    %c0_127 = arith.constant 0 : index
    %c0_128 = arith.constant 0 : index
    %248 = vector.load %arg23[%c0_127, %c0_128] : memref<16x64xbf16, #tpu.memory_space<vmem>>, vector<8x64xbf16>
    tpu.vector_store %arg23[%c0_127, %c0_128], %247 {strides = array<i32>} : memref<16x64xbf16, #tpu.memory_space<vmem>>, vector<8x64xbf16>,
    %249 = arith.truncf %246 : vector<8x64xf32> to vector<8x64xbf16>
    %c8_129 = arith.constant 8 : index
    %c0_130 = arith.constant 0 : index
    %250 = vector.load %arg23[%c8_129, %c0_130] : memref<16x64xbf16, #tpu.memory_space<vmem>>, vector<8x64xbf16>
    tpu.vector_store %arg23[%c8_129, %c0_130], %249 {strides = array<i32>} : memref<16x64xbf16, #tpu.memory_space<vmem>>, vector<8x64xbf16>,
    %c0_131 = arith.constant 0 : index
    %c0_132 = arith.constant 0 : index
    %251 = vector.load %arg23[%c0_131, %c0_132] : memref<16x64xbf16, #tpu.memory_space<vmem>>, vector<16x64xbf16>
    %c0_133 = arith.constant 0 : index
    %c0_134 = arith.constant 0 : index
    %252 = vector.load %arg10[%c0_133, %c0_134] : memref<64x326xbf16, #tpu.memory_space<vmem>>, vector<64x326xbf16>
    %cst_135 = arith.constant dense<0.000000e+00> : vector<16x326xf32>
    %253 = tpu.matmul %251, %252, %cst_135 {dimension_numbers = #tpu.dot_dimension_numbers<[1], [0], [0], [1], [0, 0, 1, 1], [], []>} : vector<16x64xbf16>, vector<64x326xbf16>, vector<16x326xf32> -> vector<16x326xf32>
    %254 = vector.extract_strided_slice %253 {offsets = [0, 0], sizes = [16, 288], strides = [1, 1]} : vector<16x326xf32> to vector<16x288xf32>
    %255 = arith.truncf %254 : vector<16x288xf32> to vector<16x288xbf16>
    %c0_136 = arith.constant 0 : index
    %c0_137 = arith.constant 0 : index
    %256 = vector.load %arg21[%c0_136, %c0_137] : memref<146x288xbf16, #tpu.memory_space<vmem>>, vector<16x288xbf16>
    tpu.vector_store %arg21[%c0_136, %c0_137], %255 {strides = array<i32>} : memref<146x288xbf16, #tpu.memory_space<vmem>>, vector<16x288xbf16>,
    %257 = vector.extract_strided_slice %253 {offsets = [0, 1], sizes = [16, 288], strides = [1, 1]} : vector<16x326xf32> to vector<16x288xf32>
    %258 = arith.truncf %257 : vector<16x288xf32> to vector<16x288xbf16>
    %c16_138 = arith.constant 16 : index
    %c0_139 = arith.constant 0 : index
    %259 = vector.load %arg21[%c16_138, %c0_139] : memref<146x288xbf16, #tpu.memory_space<vmem>>, vector<16x288xbf16>
    tpu.vector_store %arg21[%c16_138, %c0_139], %258 {strides = array<i32>} : memref<146x288xbf16, #tpu.memory_space<vmem>>, vector<16x288xbf16>,
    %260 = vector.extract_strided_slice %253 {offsets = [0, 2], sizes = [16, 288], strides = [1, 1]} : vector<16x326xf32> to vector<16x288xf32>
    %261 = arith.truncf %260 : vector<16x288xf32> to vector<16x288xbf16>
    %c32_140 = arith.constant 32 : index
    %c0_141 = arith.constant 0 : index
    %262 = vector.load %arg21[%c32_140, %c0_141] : memref<146x288xbf16, #tpu.memory_space<vmem>>, vector<16x288xbf16>
    tpu.vector_store %arg21[%c32_140, %c0_141], %261 {strides = array<i32>} : memref<146x288xbf16, #tpu.memory_space<vmem>>, vector<16x288xbf16>,
    %263 = vector.extract_strided_slice %253 {offsets = [0, 18], sizes = [16, 288], strides = [1, 1]} : vector<16x326xf32> to vector<16x288xf32>
    %264 = arith.truncf %263 : vector<16x288xf32> to vector<16x288xbf16>
    %c48_142 = arith.constant 48 : index
    %c0_143 = arith.constant 0 : index
    %265 = vector.load %arg21[%c48_142, %c0_143] : memref<146x288xbf16, #tpu.memory_space<vmem>>, vector<16x288xbf16>
    tpu.vector_store %arg21[%c48_142, %c0_143], %264 {strides = array<i32>} : memref<146x288xbf16, #tpu.memory_space<vmem>>, vector<16x288xbf16>,
    %266 = vector.extract_strided_slice %253 {offsets = [0, 19], sizes = [16, 288], strides = [1, 1]} : vector<16x326xf32> to vector<16x288xf32>
    %267 = arith.truncf %266 : vector<16x288xf32> to vector<16x288xbf16>
    %c64_144 = arith.constant 64 : index
    %c0_145 = arith.constant 0 : index
    %268 = vector.load %arg21[%c64_144, %c0_145] : memref<146x288xbf16, #tpu.memory_space<vmem>>, vector<16x288xbf16>
    tpu.vector_store %arg21[%c64_144, %c0_145], %267 {strides = array<i32>} : memref<146x288xbf16, #tpu.memory_space<vmem>>, vector<16x288xbf16>,
    %269 = vector.extract_strided_slice %253 {offsets = [0, 20], sizes = [16, 288], strides = [1, 1]} : vector<16x326xf32> to vector<16x288xf32>
    %270 = arith.truncf %269 : vector<16x288xf32> to vector<16x288xbf16>
    %c80_146 = arith.constant 80 : index
    %c0_147 = arith.constant 0 : index
    %271 = vector.load %arg21[%c80_146, %c0_147] : memref<146x288xbf16, #tpu.memory_space<vmem>>, vector<16x288xbf16>
    tpu.vector_store %arg21[%c80_146, %c0_147], %270 {strides = array<i32>} : memref<146x288xbf16, #tpu.memory_space<vmem>>, vector<16x288xbf16>,
    %272 = vector.extract_strided_slice %253 {offsets = [0, 36], sizes = [16, 288], strides = [1, 1]} : vector<16x326xf32> to vector<16x288xf32>
    %273 = arith.truncf %272 : vector<16x288xf32> to vector<16x288xbf16>
    %c96_148 = arith.constant 96 : index
    %c0_149 = arith.constant 0 : index
    %274 = vector.load %arg21[%c96_148, %c0_149] : memref<146x288xbf16, #tpu.memory_space<vmem>>, vector<16x288xbf16>
    tpu.vector_store %arg21[%c96_148, %c0_149], %273 {strides = array<i32>} : memref<146x288xbf16, #tpu.memory_space<vmem>>, vector<16x288xbf16>,
    %275 = vector.extract_strided_slice %253 {offsets = [0, 37], sizes = [16, 288], strides = [1, 1]} : vector<16x326xf32> to vector<16x288xf32>
    %276 = arith.truncf %275 : vector<16x288xf32> to vector<16x288xbf16>
    %c112_150 = arith.constant 112 : index
    %c0_151 = arith.constant 0 : index
    %277 = vector.load %arg21[%c112_150, %c0_151] : memref<146x288xbf16, #tpu.memory_space<vmem>>, vector<16x288xbf16>
    tpu.vector_store %arg21[%c112_150, %c0_151], %276 {strides = array<i32>} : memref<146x288xbf16, #tpu.memory_space<vmem>>, vector<16x288xbf16>,
    %278 = vector.extract_strided_slice %253 {offsets = [0, 38], sizes = [16, 288], strides = [1, 1]} : vector<16x326xf32> to vector<16x288xf32>
    %279 = arith.truncf %278 : vector<16x288xf32> to vector<16x288xbf16>
    %c128_152 = arith.constant 128 : index
    %c0_153 = arith.constant 0 : index
    %280 = vector.load %arg21[%c128_152, %c0_153] : memref<146x288xbf16, #tpu.memory_space<vmem>>, vector<16x288xbf16>
    tpu.vector_store %arg21[%c128_152, %c0_153], %279 {strides = array<i32>} : memref<146x288xbf16, #tpu.memory_space<vmem>>, vector<16x288xbf16>,
    %cst_154 = arith.constant 1.000000e+00 : bf16
    %281 = vector.broadcast %cst_154 : bf16 to vector<2x288xbf16>
    %c144_155 = arith.constant 144 : index
    %c0_156 = arith.constant 0 : index
    %282 = vector.load %arg21[%c144_155, %c0_156] : memref<146x288xbf16, #tpu.memory_space<vmem>>, vector<2x288xbf16>
    tpu.vector_store %arg21[%c144_155, %c0_156], %281 {strides = array<i32>} : memref<146x288xbf16, #tpu.memory_space<vmem>>, vector<2x288xbf16>,
    %c0_157 = arith.constant 0 : index
    %c0_158 = arith.constant 0 : index
    %283 = vector.load %arg6[%c0_157, %c0_158] : memref<4x146xbf16, #tpu.memory_space<vmem>>, vector<4x146xbf16>
    %c0_159 = arith.constant 0 : index
    %c0_160 = arith.constant 0 : index
    %284 = vector.load %arg21[%c0_159, %c0_160] : memref<146x288xbf16, #tpu.memory_space<vmem>>, vector<146x288xbf16>
    %cst_161 = arith.constant dense<0.000000e+00> : vector<4x288xf32>
    %285 = tpu.matmul %283, %284, %cst_161 {dimension_numbers = #tpu.dot_dimension_numbers<[1], [0], [0], [1], [0, 0, 1, 1], [], []>} : vector<4x146xbf16>, vector<146x288xbf16>, vector<4x288xf32> -> vector<4x288xf32>
    %c0_162 = arith.constant 0 : index
    %c0_163 = arith.constant 0 : index
    %c0_164 = arith.constant 0 : index
    %286 = vector.load %arg16[%c0_162, %c0_163, %c0_164] : memref<1x4x288xf32, #tpu.memory_space<vmem>>, vector<1x4x288xf32>
    %287 = vector.shape_cast %286 : vector<1x4x288xf32> to vector<4x288xf32>
    %288 = vector.shape_cast %285 : vector<4x288xf32> to vector<1x4x288xf32>
    tpu.vector_store %arg16[%c0_162, %c0_163, %c0_164], %288 {strides = array<i32>} : memref<1x4x288xf32, #tpu.memory_space<vmem>>, vector<1x4x288xf32>,
    return
  }
  func.func @transform_0(%arg0: i32) -> (i32, i32, i32) {
    %c0_i32 = arith.constant 0 : i32
    %c0_i32_0 = arith.constant 0 : i32
    %c0_i32_1 = arith.constant 0 : i32
    return %arg0, %c0_i32, %c0_i32_0 : i32, i32, i32
  }
  func.func @transform_1(%arg0: i32) -> (i32, i32) {
    %c0_i32 = arith.constant 0 : i32
    %c0_i32_0 = arith.constant 0 : i32
    %c0_i32_1 = arith.constant 0 : i32
    return %c0_i32, %c0_i32_0 : i32, i32
  }
  func.func @transform_2(%arg0: i32) -> (i32, i32) {
    %c0_i32 = arith.constant 0 : i32
    %c0_i32_0 = arith.constant 0 : i32
    %c0_i32_1 = arith.constant 0 : i32
    return %c0_i32, %c0_i32_0 : i32, i32
  }
  func.func @transform_3(%arg0: i32) -> (i32, i32) {
    %c0_i32 = arith.constant 0 : i32
    %c0_i32_0 = arith.constant 0 : i32
    %c0_i32_1 = arith.constant 0 : i32
    return %c0_i32, %c0_i32_0 : i32, i32
  }
  func.func @transform_4(%arg0: i32) -> (i32, i32) {
    %c0_i32 = arith.constant 0 : i32
    %c0_i32_0 = arith.constant 0 : i32
    %c0_i32_1 = arith.constant 0 : i32
    return %c0_i32, %c0_i32_0 : i32, i32
  }
  func.func @transform_5(%arg0: i32) -> (i32, i32) {
    %c0_i32 = arith.constant 0 : i32
    %c0_i32_0 = arith.constant 0 : i32
    %c0_i32_1 = arith.constant 0 : i32
    return %c0_i32, %c0_i32_0 : i32, i32
  }
  func.func @transform_6(%arg0: i32) -> (i32, i32) {
    %c0_i32 = arith.constant 0 : i32
    %c0_i32_0 = arith.constant 0 : i32
    %c0_i32_1 = arith.constant 0 : i32
    return %c0_i32, %c0_i32_0 : i32, i32
  }
  func.func @transform_7(%arg0: i32) -> (i32, i32) {
    %c0_i32 = arith.constant 0 : i32
    %c0_i32_0 = arith.constant 0 : i32
    %c0_i32_1 = arith.constant 0 : i32
    return %c0_i32, %c0_i32_0 : i32, i32
  }
  func.func @transform_8(%arg0: i32) -> (i32, i32) {
    %c0_i32 = arith.constant 0 : i32
    %c0_i32_0 = arith.constant 0 : i32
    %c0_i32_1 = arith.constant 0 : i32
    return %c0_i32, %c0_i32_0 : i32, i32
  }
  func.func @transform_9(%arg0: i32) -> (i32, i32) {
    %c0_i32 = arith.constant 0 : i32
    %c0_i32_0 = arith.constant 0 : i32
    %c0_i32_1 = arith.constant 0 : i32
    return %c0_i32, %c0_i32_0 : i32, i32
  }
  func.func @transform_10(%arg0: i32) -> (i32, i32) {
    %c0_i32 = arith.constant 0 : i32
    %c0_i32_0 = arith.constant 0 : i32
    %c0_i32_1 = arith.constant 0 : i32
    return %c0_i32, %c0_i32_0 : i32, i32
  }
  func.func @transform_11(%arg0: i32) -> (i32, i32) {
    %c0_i32 = arith.constant 0 : i32
    %c0_i32_0 = arith.constant 0 : i32
    %c0_i32_1 = arith.constant 0 : i32
    return %c0_i32, %c0_i32_0 : i32, i32
  }
  func.func @transform_12(%arg0: i32) -> (i32, i32) {
    %c0_i32 = arith.constant 0 : i32
    %c0_i32_0 = arith.constant 0 : i32
    %c0_i32_1 = arith.constant 0 : i32
    return %c0_i32, %c0_i32_0 : i32, i32
  }
  func.func @transform_13(%arg0: i32) -> (i32, i32) {
    %c0_i32 = arith.constant 0 : i32
    %c0_i32_0 = arith.constant 0 : i32
    %c0_i32_1 = arith.constant 0 : i32
    return %c0_i32, %c0_i32_0 : i32, i32
  }
  func.func @transform_14(%arg0: i32) -> i32 {
    %c0_i32 = arith.constant 0 : i32
    %c0_i32_0 = arith.constant 0 : i32
    return %c0_i32 : i32
  }
  func.func @transform_15(%arg0: i32) -> (i32, i32, i32) {
    %c0_i32 = arith.constant 0 : i32
    %c0_i32_0 = arith.constant 0 : i32
    %c0_i32_1 = arith.constant 0 : i32
    return %arg0, %c0_i32, %c0_i32_0 : i32, i32, i32
  }
}

</mosaic_0001>

<bundles_post_ra>
// kernel: custom_unet_forward.1
= control target key start
LH: loop header
LB: loop body
LE: loop exit
PB: predicated region body
PF: predicated region fallthrough
CT: control target
= control target key end

     0   :  { %20 = vsyncpa [#allocation10], 0  ;;  %s3713_s18 = smov 0   ;;  %s4538_s0 = inlined_call_operand.vmem [shape: f32[2,4,326], index: 0, kind: input, shape index: {}]   ;;  %s4539_s1 = inlined_call_operand.vmem [shape: bf16[8,36], index: 1, kind: input, shape index: {}]   ;;  %s4540_s2 = inlined_call_operand.vmem [shape: bf16[16,72], index: 2, kind: input, shape index: {}]   ;;  %s4541_s3 = inlined_call_operand.vmem [shape: bf16[32,144], index: 3, kind: input, shape index: {}]   ;;  %s4542_s4 = inlined_call_operand.vmem [shape: bf16[8,432], index: 4, kind: input, shape index: {}]   ;;  %s4543_s5 = inlined_call_operand.vmem [shape: bf16[4,146], index: 5, kind: input, shape index: {}]   ;;  %s4544_s6 = inlined_call_operand.vmem [shape: bf16[64,102], index: 6, kind: input, shape index: {}]   ;;  %s4545_s7 = inlined_call_operand.vmem [shape: bf16[16,38], index: 7, kind: input, shape index: {}]   ;;  %s4546_s8 = inlined_call_operand.vmem [shape: bf16[16,102], index: 8, kind: input, shape index: {}]   ;;  %s4547_s9 = inlined_call_operand.vmem [shape: bf16[64,326], index: 9, kind: input, shape index: {}]   ;;  %s4548_s10 = inlined_call_operand.vmem [shape: f32[288,64], index: 10, kind: input, shape index: {}]   ;;  %s4549_s11 = inlined_call_operand.vmem [shape: f32[80,16], index: 11, kind: input, shape index: {}]   ;;  %s4550_s12 = inlined_call_operand.vmem [shape: f32[24,16], index: 12, kind: input, shape index: {}]   ;;  %s4551_s13 = inlined_call_operand.vmem [shape: f32[80,64], index: 13, kind: input, shape index: {}]   ;;  %s4552_s14 = inlined_call_operand.vmem [shape: f32[4], index: 14, kind: input, shape index: {}]   ;;  %s4553_s15 = inlined_call_operand.vmem [shape: f32[2,4,288], index: 15, kind: output, shape index: {}]  }
   0x1 LB: > { %s2983_s19 = sadd.s32 4294967295, %s3609_s18   ;;  %p2985_p0 = scmp.ge.s32.totalorder %s3609_s18, 1  ;;  %s3609_s18 = sphi %s3713_s18, %s26_s18  }
   0x2   : > { %p377_p1 = scmp.lt.s32.totalorder %s3609_s18, 3  ;;  %s428_s22 = sshll.u32 %s4552_s14, 4  ;;  %s429_s22 = int_to_ptr.vmem [resolvable:$true] %s428_s22 }
   0x3   : > { %p3532_p3 = scmp.eq.s32.totalorder %s2983_s19, 0  ;;  %s3611_s23 = smov [#allocation9]  }
   0x4   : > { %p378_p2 = pnand %p2985_p0, %p377_p1 }
   0x6   : > { %p3528_p4 = pneg %p378_p2  ;;  %449 = sbr.rel (%p378_p2) target bundleno = 3416 (0xd58), region = 80 }
   0x8   : > { %p3529_p5 = pnand %p3532_p3, %p3528_p4 }
   0xa   : > { %3531 = dma.vmem_to_smem (!%p3529_p5), %s429_s22, 16, %s3611_s23, [#allocation10]  }
   0xb   : > { %3604 = dma.done.wait (%p3532_p3), [#allocation10], 16  }
   0xc   : > { %3606 = vsyncadd (%p3532_p3), [#allocation10], 4294967280 }
   0xd   : > { %456 = sfence }
   0xe   : > { %p499_p6 = scmp.lt.s32.totalorder %s2983_s19, 1  ;;  %s4579_s28 = smov 127   ;;  %vm557_vm0 = vcmask 257026   ;;  %vm527_vm1 = vcmask 254976   ;;  %vm4571_vm2 = vcmask 1039360   ;;  %vm550_vm3 = vcmask 1043456  }
   0xf   : > { %s4563_s29 = smov 109   ;;  %s4569_s30 = smov 108   ;;  %vm661_vm4 = vcmask 883712   ;;  %vm4572_vm5 = vcmask 891904   ;;  %vm4573_vm6 = vcmask 752640   ;;  %vm4576_vm7 = vcmask 744448  }
  0x10   : > { %s4605_s19 = smov (!%p499_p6, %s2983_s19), 1  ;;  %s4555_s16 = smov 92   ;;  %vm4575_vm8 = vcmask 736256   ;;  %vm4574_vm9 = vcmask 1031168   ;;  %vm802_vm10 = vcmask 1041408   ;;  %vm607_vm11 = vcmask 900096  }
  0x11   : > { %s4554_s24 = smul.u32 12, %s4605_s19  ;;  %s3616_s17 = smov 126   ;;  %vm798_vm12 = vcmask 293888   ;;  %vm887_vm13 = vcmask 261120   ;;  %vm952_vm14 = vcmask 523264  }
  0x12   : > { %s4557_s20 = smov 91   ;;  %s4559_s21 = smov 110  }
  0x13   : > { %s503_s27 = scalar_lea.vmem %s4538_s0, %s4554_s24  ;;  %s4561_s22 = smov 90  }
  0x14   : > { %v3732_v0 = vld [vmem:[%s503_s27] sm:$0xff]  ;;  %v3734_v1 = vld [vmem:[%s503_s27 + $0x8] sm:$0xf]  ;;  %s951_s24 = sld [smem:[#allocation9]]  ;;  %s3627_s25 = smov 120  }
  0x15   : > { %515 = vst [vmem:[#allocation1] ss:$2 sm:$0xff] %v3732_v0  ;;  %s3060_s23 = sld [smem:[#allocation9 + $0x1]]  ;;  %s4584_s26 = smov 106  }
  0x16   : > { %517 = vst [vmem:[#allocation1 + $0x10] ss:$2 sm:$0xff] %v3734_v1  ;;  %s4589_s27 = smov 92  }
  0x1c   : > { %v3738_v2 = vld.sshfl [vmem:[#allocation1] sm:$0xff pattern:$0x75316420]  ;;  %v3740_v3 = vld.sshfl [vmem:[#allocation1 + $0x8] sm:$0xff pattern:$0x75316420] }
  0x1d   : > { %529 = vst [vmem:[#allocation1] ss:$2 sm:$0xff] %v3732_v0  ;;  %v3743_v4 = vld.sshfl [vmem:[#allocation1 + $0x10] sm:$0xff pattern:$0x75316420] }
  0x1e   : > { %531 = vst [vmem:[#allocation1 + $0x10] ss:$2 sm:$0xff] %v3734_v1  ;;  %v525_v53 = vpack.c.bf16 %v3743_v4, %v3743_v4 }
  0x20   : > { %528 = vst.msk [vmem:[#allocation2 + $0x8] sm:$0x3] %vm527_vm1, %v525_v53 }
  0x24   : > { %v532_v5 = vld.sshfl [vmem:[#allocation1] sm:$0xff pattern:$0x75316420]  ;;  %v533_v6 = vld.sshfl [vmem:[#allocation1 + $0x8] sm:$0xff pattern:$0x75316420] }
  0x25   : > { %v538_v7 = vpack.c.bf16 %v533_v6, %v532_v5  ;;  %559 = vst [vmem:[#allocation1] ss:$2 sm:$0xff] %v3732_v0  ;;  %v534_v8 = vld.sshfl [vmem:[#allocation1 + $0x10] sm:$0xff pattern:$0x75316420] }
  0x26   : > { %561 = vst [vmem:[#allocation1 + $0x10] ss:$2 sm:$0xff] %v3734_v1  ;;  %v539_v16 = vpack.c.bf16 %v534_v8, %v534_v8 }
  0x27   : > { %v542_v9 = vrot.slane %v538_v7, 6 }
  0x28   : > { %v543_v17 = vrot.slane %v539_v16, 6 }
  0x29   : > { %544 = vrot.lane.b32.xlu1 %v542_v9, %s4579_s28 }
  0x2a   : > { %546 = vrot.lane.b32.xlu2 %v543_v17, %s4579_s28 }
  0x2c   : > { %v3749_v10 = vld.sshfl [vmem:[#allocation1] sm:$0xff pattern:$0x75316420]  ;;  %v3751_v11 = vld.sshfl [vmem:[#allocation1 + $0x8] sm:$0xff pattern:$0x75316420] }
  0x2d   : > { %585 = vst [vmem:[#allocation1] ss:$2 sm:$0xff] %v3732_v0  ;;  %v564_v12 = vld.sshfl [vmem:[#allocation1 + $0x10] sm:$0xff pattern:$0x75316420]  ;;  %v568_v50 = vpack.c.bf16 %v3751_v11, %v3749_v10 }
  0x2e   : > { %587 = vst [vmem:[#allocation1 + $0x10] ss:$2 sm:$0xff] %v3734_v1  ;;  %v569_v37 = vpack.c.bf16 %v564_v12, %v564_v12 }
  0x34   : > { %v588_v13 = vld.sshfl [vmem:[#allocation1] sm:$0xff pattern:$0x75316420]  ;;  %v589_v14 = vld.sshfl [vmem:[#allocation1 + $0x8] sm:$0xff pattern:$0x75316420] }
  0x35   : > { %613 = vst [vmem:[#allocation1] ss:$2 sm:$0xff] %v3732_v0  ;;  %v3756_v15 = vld.sshfl [vmem:[#allocation1 + $0x10] sm:$0xff pattern:$0x75316420]  ;;  %v594_v43 = vpack.c.bf16 %v589_v14, %v588_v13 }
  0x36   : > { %615 = vst [vmem:[#allocation1 + $0x10] ss:$2 sm:$0xff] %v3734_v1  ;;  %v595_v51 = vpack.c.bf16 %v3756_v15, %v3756_v15 }
  0x37   : > { %v598_v46 = vrot.slane %v594_v43, 6 }
  0x38   : > { %v599_v52 = vrot.slane %v595_v51, 6 }
  0x3c   : > { %v616_v18 = vld.sshfl [vmem:[#allocation1] sm:$0xff pattern:$0x75316420]  ;;  %v617_v19 = vld.sshfl [vmem:[#allocation1 + $0x8] sm:$0xff pattern:$0x75316420] }
  0x3d   : > { %v622_v20 = vpack.c.bf16 %v617_v19, %v616_v18  ;;  %639 = vst [vmem:[#allocation1] ss:$2 sm:$0xff] %v3732_v0  ;;  %v618_v21 = vld.sshfl [vmem:[#allocation1 + $0x10] sm:$0xff pattern:$0x75316420] }
  0x3e   : > { %641 = vst [vmem:[#allocation1 + $0x10] ss:$2 sm:$0xff] %v3734_v1  ;;  %v623_v22 = vpack.c.bf16 %v618_v21, %v618_v21 }
  0x3f   : > { %626 = vrot.lane.b32.xlu1 %v622_v20, %s4563_s29 }
  0x44   : > { %v642_v23 = vld.sshfl [vmem:[#allocation1] sm:$0xff pattern:$0x75316420]  ;;  %v643_v24 = vld.sshfl [vmem:[#allocation1 + $0x8] sm:$0xff pattern:$0x75316420] }
  0x45   : > { %667 = vst [vmem:[#allocation1] ss:$2 sm:$0xff] %v3732_v0  ;;  %v644_v25 = vld.sshfl [vmem:[#allocation1 + $0x10] sm:$0xff pattern:$0x75316420]  ;;  %v648_v26 = vpack.c.bf16 %v643_v24, %v642_v23 }
  0x46   : > { %669 = vst [vmem:[#allocation1 + $0x10] ss:$2 sm:$0xff] %v3734_v1  ;;  %v649_v28 = vpack.c.bf16 %v644_v25, %v644_v25 }
  0x47   : > { %628 = vrot.lane.b32.xlu1 %v623_v22, %s4563_s29  ;;  %v652_v27 = vrot.slane %v648_v26, 6  ;;  %v866_v26 = vld [vmem:[%s4548_s10 + $0x78] sm:$0xff]  ;;  %s4577_s29 = smov 117  }
  0x48   : > { %v653_v33 = vrot.slane %v649_v28, 6  ;;  %891 = vmatpush.msra.mxu3 %v866_v26  ;;  %v877_v26 = vld [vmem:[%s4548_s10 + $0xd0] sm:$0xff] }
  0x49   : > { %654 = vrot.lane.b32.xlu2 %v652_v27, %s4569_s30  ;;  %v865_v27 = vld [vmem:[%s4548_s10 + $0x70] sm:$0xff] }
  0x4a   : > { %892 = vmatpush.msra.mxu3 %v865_v27  ;;  %v876_v27 = vld [vmem:[%s4548_s10 + $0xc8] sm:$0xff] }
  0x4c   : > { %v670_v29 = vld.sshfl [vmem:[#allocation1] sm:$0xff pattern:$0x75316420]  ;;  %v671_v30 = vld.sshfl [vmem:[#allocation1 + $0x8] sm:$0xff pattern:$0x75316420] }
  0x4d   : > { %v676_v31 = vpack.c.bf16 %v671_v30, %v670_v29  ;;  %693 = vst [vmem:[#allocation1] ss:$2 sm:$0xff] %v3732_v0  ;;  %v672_v32 = vld.sshfl [vmem:[#allocation1 + $0x10] sm:$0xff pattern:$0x75316420]  ;;  %v864_v30 = vld [vmem:[%s4548_s10 + $0x68] sm:$0xff] }
  0x4e   : > { %v677_v34 = vpack.c.bf16 %v672_v32, %v672_v32  ;;  %695 = vst [vmem:[#allocation1 + $0x10] ss:$2 sm:$0xff] %v3734_v1  ;;  %893 = vmatpush.msra.mxu3 %v864_v30  ;;  %v873_v30 = vld [vmem:[%s4548_s10 + $0xb0] sm:$0xff] }
  0x4f   : > { %680 = vrot.lane.b32.xlu0 %v676_v31, %s4555_s16  ;;  %v863_v31 = vld [vmem:[%s4548_s10 + $0x60] sm:$0xff] }
  0x50   : > { %682 = vrot.lane.b32.xlu1 %v677_v34, %s4555_s16  ;;  %894 = vmatpush.msra.mxu3 %v863_v31  ;;  %v872_v31 = vld [vmem:[%s4548_s10 + $0xa8] sm:$0xff]  ;;  %s4567_s16 = smov 118  }
  0x51   : > { %656 = vrot.lane.b32.xlu2 %v653_v33, %s4569_s30 }
  0x54   : > { %v696_v35 = vld.sshfl [vmem:[#allocation1] sm:$0xff pattern:$0x75316420]  ;;  %v697_v36 = vld.sshfl [vmem:[#allocation1 + $0x8] sm:$0xff pattern:$0x75316420] }
  0x55   : > { %721 = vst [vmem:[#allocation1] ss:$2 sm:$0xff] %v3732_v0  ;;  %v698_v38 = vld.sshfl [vmem:[#allocation1 + $0x10] sm:$0xff pattern:$0x75316420]  ;;  %v702_v39 = vpack.c.bf16 %v697_v36, %v696_v35  ;;  %v524_v0 = vpack.c.bf16 %v3740_v3, %v3738_v2  ;;  %v862_v35 = vld [vmem:[%s4548_s10 + $0x58] sm:$0xff] }
  0x56   : > { %v703_v40 = vpack.c.bf16 %v698_v38, %v698_v38  ;;  %723 = vst [vmem:[#allocation1 + $0x10] ss:$2 sm:$0xff] %v3734_v1  ;;  %v861_v38 = vld [vmem:[%s4548_s10 + $0x50] sm:$0xff]  ;;  %895 = vmatpush.msra.mxu3 %v862_v35 }
  0x57   : > { %v706_v41 = vrot.slane %v702_v39, 6  ;;  %526 = vst [vmem:[#allocation2] sm:$0x33] %v524_v0  ;;  %v857_v0 = vld [vmem:[%s4548_s10 + $0x30] sm:$0xff] }
  0x58   : > { %v707_v42 = vrot.slane %v703_v40, 6  ;;  %574 = vrot.lane.b32.xlu1 %v569_v37, %s3616_s17  ;;  %896 = vmatpush.msra.mxu3 %v861_v38  ;;  %v869_v35 = vld [vmem:[%s4548_s10 + $0x90] sm:$0xff]  ;;  %v884_v38 = vld [vmem:[%s4548_s10 + $0x108] sm:$0xff] }
  0x59   : > { %708 = vrot.lane.b32.xlu2 %v706_v41, %s4557_s20 }
  0x5a   : > { %710 = vrot.lane.b32.xlu0 %v707_v42, %s4557_s20  ;;  %s4565_s20 = smov 106  }
  0x5c   : > { %v724_v44 = vld.sshfl [vmem:[#allocation1] sm:$0xff pattern:$0x75316420]  ;;  %v725_v45 = vld.sshfl [vmem:[#allocation1 + $0x8] sm:$0xff pattern:$0x75316420] }
  0x5d   : > { %v730_v47 = vpack.c.bf16 %v725_v45, %v724_v44  ;;  %v726_v48 = vld.sshfl [vmem:[#allocation1 + $0x10] sm:$0xff pattern:$0x75316420]  ;;  %v860_v44 = vld [vmem:[%s4548_s10 + $0x48] sm:$0xff] }
  0x5e   : > { %v731_v49 = vpack.c.bf16 %v726_v48, %v726_v48  ;;  %897 = vmatpush.msra.mxu3 %v860_v44 }
  0x61   : > { %600 = vrot.lane.b32.xlu2 %v598_v46, %s4559_s21 }
  0x62   : > { %734 = vrot.lane.b32.xlu0 %v730_v47, %s4561_s22 }
  0x6a   : > { %736 = vrot.lane.b32.xlu0 %v731_v49, %s4561_s22  ;;  %s3625_s22 = smov 116  }
  0x72   : > { %572 = vrot.lane.b32.xlu0 %v568_v50, %s3616_s17  ;;  %v859_v50 = vld [vmem:[%s4548_s10 + $0x40] sm:$0xff] }
  0x73   : > { %898 = vmatpush.msra.mxu3 %v859_v50 }
  0x7a   : > { %602 = vrot.lane.b32.xlu0 %v599_v52, %s4559_s21  ;;  %s3623_s21 = smov 107  }
  0x84   : > { %v547_v54 = vpop.permute.xlu2 %546 }
  0x85   : > { %558 = vst.msk [vmem:[#allocation2 + $0x8] sm:$0xc] %vm557_vm0, %v547_v54  ;;  %v549_v55 = vrot.slane %v547_v54, 4 }
  0x9b   : > { %v545_v56 = vpop.permute.xlu1 %544 }
  0x9c   : > { %v548_v57 = vrot.slane %v545_v56, 4 }
  0x9e   : > { %v551_v58 = vsel %vm550_vm3, %v548_v57, %v549_v55 }
  0x9f   : > { %v553_v59 = vsel %vm4571_vm2, %v545_v56, %v551_v58 }
  0xa0   : > { %556 = vst [vmem:[#allocation2] sm:$0xcc] %v553_v59  ;;  %v858_v59 = vld [vmem:[%s4548_s10 + $0x38] sm:$0xff] }
  0xa1   : > { %899 = vmatpush.msra.mxu3 %v858_v59  ;;  %v3432_v59 = vld [vmem:[%s4544_s6 + $0x18] sm:$0xff] }
  0xa3   : > { %v655_v60 = vpop.permute.xlu2 %654  ;;  %900 = vmatpush.msra.mxu3 %v857_v0 }
  0xa4   : > { %v658_v61 = vrot.slane %v655_v60, 4 }
  0xab   : > { %v657_v62 = vpop.permute.xlu2 %656 }
  0xac   : > { %v659_v63 = vrot.slane %v657_v62, 4  ;;  %666 = vst.msk [vmem:[#allocation2 + $0x20] sm:$0xc] %vm557_vm0, %v657_v62 }
  0xae   : > { %v660_v1 = vsel %vm550_vm3, %v658_v61, %v659_v63 }
  0xaf   : > { %v662_v4 = vsel %vm661_vm4, %v655_v60, %v660_v1 }
  0xb0   : > { %665 = vst [vmem:[#allocation2 + $0x18] sm:$0xcc] %v662_v4 }
  0xb1   : > { %v627_v5 = vpop.permute.xlu1 %626 }
  0xb2   : > { %v630_v6 = vrot.slane %v627_v5, 4 }
  0xb3   : > { %v709_v15 = vpop.permute.xlu2 %708 }
  0xb4   : > { %v712_v17 = vrot.slane %v709_v15, 4 }
  0xb9   : > { %v629_v7 = vpop.permute.xlu1 %628 }
  0xba   : > { %v631_v8 = vrot.slane %v629_v7, 4  ;;  %638 = vst.msk [vmem:[#allocation2 + $0x20] sm:$0x3] %vm527_vm1, %v629_v7  ;;  %v856_v7 = vld [vmem:[%s4548_s10 + $0x28] sm:$0xff] }
  0xbb   : > { %v601_v42 = vpop.permute.xlu2 %600  ;;  %901 = vmatpush.msra.mxu3 %v856_v7 }
  0xbc   : > { %v632_v9 = vsel %vm550_vm3, %v630_v6, %v631_v8  ;;  %v604_v51 = vrot.slane %v601_v42, 4  ;;  %v855_v8 = vld [vmem:[%s4548_s10 + $0x20] sm:$0xff] }
  0xbd   : > { %v634_v10 = vsel %vm4572_vm5, %v627_v5, %v632_v9  ;;  %v3002_v9 = vld [vmem:[#allocation2 + $0x8] sm:$0xf]  ;;  %902 = vmatpush.msra.mxu3 %v855_v8 }
  0xbe   : > { %637 = vst [vmem:[#allocation2 + $0x18] sm:$0x33] %v634_v10 }
  0xc1   : > { %v681_v11 = vpop.permute.xlu0 %680  ;;  %v3014_v48 = vld [vmem:[#allocation2 + $0x20] sm:$0xf] }
  0xc2   : > { %v684_v2 = vrot.slane %v681_v11, 4  ;;  %v683_v3 = vpop.permute.xlu1 %682 }
  0xc3   : > { %v685_v12 = vrot.slane %v683_v3, 4  ;;  %692 = vst.msk [vmem:[#allocation2 + $0x2c] sm:$0x3] %vm527_vm1, %v683_v3  ;;  %v853_v3 = vld [vmem:[%s4548_s10 + $0x10] sm:$0xff] }
  0xc5   : > { %v686_v13 = vsel %vm550_vm3, %v684_v2, %v685_v12  ;;  %v3006_v54 = vld [vmem:[#allocation2 + $0x18] sm:$0xf]  ;;  %v3426_v55 = vld [vmem:[#allocation2 + $0x1c] sm:$0xf] }
  0xc6   : > { %v688_v14 = vsel %vm4573_vm6, %v681_v11, %v686_v13  ;;  %v854_v11 = vld [vmem:[%s4548_s10 + $0x18] sm:$0xff]  ;;  %v747_v12 = vld [vmem:[%s4539_s1] sm:$0xf]  ;;  %v2994_v13 = vld [vmem:[#allocation2] sm:$0xf] }
  0xc7   : > { %691 = vst [vmem:[#allocation2 + $0x24] sm:$0x33] %v688_v14  ;;  %903 = vmatpush.msra.mxu3 %v854_v11 }
  0xc9   : > { %904 = vmatpush.msra.mxu3 %v853_v3 }
  0xca   : > { %v575_v16 = vpop.permute.xlu1 %574 }
  0xcb   : > { %584 = vst.msk [vmem:[#allocation2 + $0x14] sm:$0x3] %vm527_vm1, %v575_v16  ;;  %v577_v32 = vrot.slane %v575_v16, 4 }
  0xcc   : > { %v711_v18 = vpop.permute.xlu0 %710 }
  0xcd   : > { %v713_v19 = vrot.slane %v711_v18, 4  ;;  %720 = vst.msk [vmem:[#allocation2 + $0x2c] sm:$0xc] %vm557_vm0, %v711_v18 }
  0xcf   : > { %v714_v20 = vsel %vm550_vm3, %v712_v17, %v713_v19  ;;  %v882_v19 = vld [vmem:[%s4548_s10 + $0xf8] sm:$0xff] }
  0xd0   : > { %v716_v21 = vsel %vm4576_vm7, %v709_v15, %v714_v20  ;;  %v3423_v15 = vld [vmem:[#allocation2 + $0x4] sm:$0xf] }
  0xd1   : > { %719 = vst [vmem:[#allocation2 + $0x24] sm:$0xcc] %v716_v21  ;;  %v852_v20 = vld [vmem:[%s4548_s10 + $0x8] sm:$0xff]  ;;  %v886_v21 = vld [vmem:[%s4548_s10 + $0x118] sm:$0xff] }
  0xd2   : > { %905 = vmatpush.msra.mxu3 %v852_v20 }
  0xd4   : > { %v735_v22 = vpop.permute.xlu0 %734  ;;  %v3428_v49 = vld [vmem:[#allocation2 + $0x28] sm:$0xf0] }
  0xd5   : > { %v738_v24 = vrot.slane %v735_v22, 4  ;;  %v3015_v63 = vor.u32 %v3428_v49, %v3014_v48 }
  0xd8   : > { %v3427_v57 = vld [vmem:[#allocation2 + $0x20] sm:$0xf0]  ;;  %v3008_v58 = vld [vmem:[#allocation2 + $0x24] sm:$0xf0] }
  0xd9   : > { %v3007_v5 = vor.u32 %v3427_v57, %v3006_v54  ;;  %v3011_v6 = vor.u32 %v3426_v55, %v3008_v58  ;;  %v3620_v55 = vmov 64.0  }
  0xda   : > { %3564 = vrcp.f32 %v3620_v55 }
  0xdc   : > { %v737_v23 = vpop.permute.xlu0 %736 }
  0xdd   : > { %v739_v25 = vrot.slane %v737_v23, 4  ;;  %746 = vst.msk [vmem:[#allocation2 + $0x38] sm:$0x3] %vm527_vm1, %v737_v23  ;;  %v880_v23 = vld [vmem:[%s4548_s10 + $0xe8] sm:$0xff] }
  0xdf   : > { %v740_v28 = vsel %vm550_vm3, %v738_v24, %v739_v25  ;;  %v879_v24 = vld [vmem:[%s4548_s10 + $0xe0] sm:$0xff]  ;;  %v878_v25 = vld [vmem:[%s4548_s10 + $0xd8] sm:$0xff] }
  0xe0   : > { %v742_v29 = vsel %vm4575_vm8, %v735_v22, %v740_v28  ;;  %v881_v22 = vld [vmem:[%s4548_s10 + $0xf0] sm:$0xff]  ;;  %v875_v28 = vld [vmem:[%s4548_s10 + $0xc0] sm:$0xff] }
  0xe1   : > { %745 = vst [vmem:[#allocation2 + $0x30] sm:$0x33] %v742_v29  ;;  %v874_v29 = vld [vmem:[%s4548_s10 + $0xb8] sm:$0xff] }
  0xe4   : > { %v573_v33 = vpop.permute.xlu0 %572  ;;  %v757_v34 = vld [vmem:[#allocation2 + $0x38] sm:$0x3] }
  0xe5   : > { %v576_v36 = vrot.slane %v573_v33, 4  ;;  %v782_v37 = vunpack.c.l.b16 %v757_v34  ;;  %v870_v34 = vld [vmem:[%s4548_s10 + $0x98] sm:$0xff] }
  0xe7   : > { %v578_v39 = vsel %vm550_vm3, %v576_v36, %v577_v32  ;;  %v791_v40 = vpack.c.b16 %v782_v37, %v782_v37  ;;  %v871_v32 = vld [vmem:[%s4548_s10 + $0xa0] sm:$0xff]  ;;  %v885_v36 = vld [vmem:[%s4548_s10 + $0x110] sm:$0xff]  ;;  %v868_v37 = vld [vmem:[%s4548_s10 + $0x88] sm:$0xff] }
  0xe8   : > { %v580_v41 = vsel %vm4574_vm9, %v573_v33, %v578_v39  ;;  %v756_v43 = vld [vmem:[#allocation2 + $0x30] sm:$0x33]  ;;  %v851_v33 = vld [vmem:[%s4548_s10] sm:$0xff]  ;;  %vm1645_vm9 = vcmask 125952  }
  0xe9   : > { %583 = vst [vmem:[#allocation2 + $0xc] sm:$0x33] %v580_v41  ;;  %v810_v45 = vsel %vm802_vm10, %v791_v40, 0  ;;  %v780_v46 = vunpack.c.l.b16 %v756_v43  ;;  %v781_v47 = vunpack.c.h.b16 %v756_v43  ;;  %906 = vmatpush.msra.mxu3 %v851_v33  ;;  %v867_v39 = vld [vmem:[%s4548_s10 + $0x80] sm:$0xff] }
  0xea   : > { %843 = vmatpush.bf16.msra.mxu2 %v810_v45  ;;  %v883_v40 = vld [vmem:[%s4548_s10 + $0x100] sm:$0xff] }
  0xeb   : > { %v789_v52 = vpack.c.b16 %v780_v46, %v780_v46  ;;  %v790_v53 = vpack.c.b16 %v781_v47, %v781_v47 }
  0xec   : > { %v603_v56 = vpop.permute.xlu0 %602 }
  0xed   : > { %v605_v60 = vrot.slane %v603_v56, 4  ;;  %612 = vst.msk [vmem:[#allocation2 + $0x14] sm:$0xc] %vm557_vm0, %v603_v56  ;;  %v804_v61 = vsel %vm802_vm10, %v789_v52, 0  ;;  %v807_v62 = vsel %vm802_vm10, %v790_v53, 0  ;;  %v3565_v56 = vpop.eup %3564 }
  0xee   : > { %817 = vmatpush.bf16.msra.mxu0 %v804_v61  ;;  %830 = vmatpush.bf16.msra.mxu1 %v807_v62  ;;  %v957_v57 = vmul.f32 64.0, %v3565_v56  ;;  %v3431_v61 = vld [vmem:[%s4544_s6 + $0x10] sm:$0xff]  ;;  %vm961_vm15 = vweird.f32 %v3565_v56 }
  0xef   : > { %v606_v1 = vsel %vm550_vm3, %v604_v51, %v605_v60  ;;  %844 = vmatpush.bf16.msra.mxu2 %v3015_v63  ;;  %v3430_v63 = vld [vmem:[%s4544_s6 + $0x8] sm:$0xff] }
  0xf0   : > { %v608_v4 = vsel %vm607_vm11, %v601_v42, %v606_v1  ;;  %v958_v58 = vsub.f32 1.0, %v957_v57  ;;  %v3429_v1 = vld [vmem:[%s4544_s6] sm:$0xff] }
  0xf1   : > { %611 = vst [vmem:[#allocation2 + $0xc] sm:$0xcc] %v608_v4 }
  0xf2   : > { %818 = vmatpush.bf16.msra.mxu0 %v3007_v5  ;;  %831 = vmatpush.bf16.msra.mxu1 %v3011_v6  ;;  %v959_v60 = vmul.f32 %v3565_v56, %v958_v58 }
  0xf4   : > { %v3425_v10 = vld [vmem:[#allocation2 + $0x10] sm:$0xf0]  ;;  %v960_v62 = vadd.f32 %v3565_v56, %v959_v60 }
  0xf5   : > { %v3003_v2 = vor.u32 %v3425_v10, %v3002_v9 }
  0xf6   : > { %v3943_v0 = vsel %vm961_vm15, %v3565_v56, %v960_v62  ;;  %vm1039_vm15 = vcmask 650240  }
  0xf7   : > { %845 = vmatpush.bf16.msra.mxu2 %v3003_v2 }
  0xf8   : > { %v3424_v14 = vld [vmem:[#allocation2 + $0x8] sm:$0xf0]  ;;  %v2996_v16 = vld [vmem:[#allocation2 + $0xc] sm:$0xf0] }
  0xf9   : > { %v2995_v17 = vor.u32 %v3424_v14, %v2994_v13  ;;  %v2999_v18 = vor.u32 %v3423_v15, %v2996_v16 }
  0xfa   : > { %3018 = vmatmul.msk.bf16.vlgmr.msra.gmra.mxu2 %vm798_vm12, %v747_v12 }
  0xfb   : > { %819 = vmatpush.bf16.msra.mxu0 %v2995_v17  ;;  %832 = vmatpush.bf16.msra.mxu1 %v2999_v18  ;;  %v986_v18 = vstv %s951_s24  ;;  %s3629_s24 = smov 121  }
  0xfc   : > { %1029 = vmatpush.bf16.msrb.mxu2 %v3432_v59 }
  0xfe   : > { %3016 = vmatmul.msk.bf16.vlgmr.msra.gmra.mxu0 %vm798_vm12, %v747_v12  ;;  %3017 = vmatmul.msk.bf16.vlgmr.msra.gmra.mxu1 %vm798_vm12, %v747_v12 }
  0xff   : > { %911 = vmatpush.msrb.mxu0 %v882_v19  ;;  %943 = vmatpush.msrb.mxu1 %v886_v21 }
 0x100   : > { %1030 = vmatpush.bf16.msrb.mxu2 %v3431_v61 }
 0x101   : > { %912 = vmatpush.msrb.mxu0 %v881_v22  ;;  %944 = vmatpush.msrb.mxu1 %v885_v36  ;;  %v1147_v36 = vld [vmem:[%s4549_s11 + $0x40] sm:$0xff] }
 0x103   : > { %913 = vmatpush.msrb.mxu0 %v880_v23  ;;  %945 = vmatpush.msrb.mxu1 %v884_v38 }
 0x104   : > { %1031 = vmatpush.bf16.msrb.mxu2 %v3430_v63  ;;  %v3626_v63 = vmov 16.0  }
 0x105   : > { %914 = vmatpush.msrb.mxu0 %v879_v24  ;;  %946 = vmatpush.msrb.mxu1 %v883_v40  ;;  %v1145_v40 = vld [vmem:[%s4549_s11 + $0x30] sm:$0xff] }
 0x107   : > { %915 = vmatpush.msrb.mxu0 %v878_v25 }
 0x108   : > { %1032 = vmatpush.bf16.msrb.mxu2 %v3429_v1 }
 0x109   : > { %916 = vmatpush.msrb.mxu0 %v877_v26 }
 0x10b   : > { %917 = vmatpush.msrb.mxu0 %v876_v27 }
 0x10d   : > { %918 = vmatpush.msrb.mxu0 %v875_v28 }
 0x10f   : > { %919 = vmatpush.msrb.mxu0 %v874_v29 }
 0x111   : > { %920 = vmatpush.msrb.mxu0 %v873_v30 }
 0x113   : > { %921 = vmatpush.msrb.mxu0 %v872_v31 }
 0x115   : > { %922 = vmatpush.msrb.mxu0 %v871_v32 }
 0x117   : > { %923 = vmatpush.msrb.mxu0 %v870_v34 }
 0x119   : > { %924 = vmatpush.msrb.mxu0 %v869_v35  ;;  %v1148_v35 = vld [vmem:[%s4549_s11 + $0x48] sm:$0xff] }
 0x11a   : > { %1162 = vmatpush.msra.mxu2 %v1148_v35  ;;  %v1240_v35 = vstv %s3060_s23  ;;  %s4590_s23 = smov 127  }
 0x11b   : > { %925 = vmatpush.msrb.mxu0 %v868_v37  ;;  %v1146_v37 = vld [vmem:[%s4549_s11 + $0x38] sm:$0xff] }
 0x11c   : > { %1163 = vmatpush.msra.mxu2 %v1147_v36 }
 0x11d   : > { %926 = vmatpush.msrb.mxu0 %v867_v39 }
 0x11e   : > { %1164 = vmatpush.msra.mxu2 %v1146_v37 }
 0x120   : > { %1165 = vmatpush.msra.mxu2 %v1145_v40 }
 0x17b   : > { %v821_v41 = vpop.f32.mrf.mxu0  ;;  %v834_v42 = vpop.f32.mrf.mxu1 }
 0x17c   : > { %907 = vmatmul.f32.vlgmr.msra.gmra.mxu3 %v821_v41  ;;  %927 = vmatmul.f32.vlgmr.msrb.gmra.mxu0 %v834_v42  ;;  %v1144_v41 = vld [vmem:[%s4549_s11 + $0x28] sm:$0xff]  ;;  %v1143_v42 = vld [vmem:[%s4549_s11 + $0x20] sm:$0xff] }
 0x17d   : > { %v847_v43 = vpop.f32.mrf.mxu2  ;;  %1166 = vmatpush.msra.mxu2 %v1144_v41 }
 0x17e   : > { %3019 = vmatmul.msk.f32.vlgmr.msrb.gmra.mxu1 %vm887_vm13, %v847_v43  ;;  %vm2278_vm13 = vcmask 519168   ;;  %v1142_v43 = vld [vmem:[%s4549_s11 + $0x18] sm:$0xff] }
 0x17f   : > { %1167 = vmatpush.msra.mxu2 %v1143_v42 }
 0x181   : > { %1168 = vmatpush.msra.mxu2 %v1142_v43 }
 0x183   : > { %v823_v44 = vpop.f32.mrf.mxu0  ;;  %v836_v45 = vpop.f32.mrf.mxu1 }
 0x184   : > { %v1141_v45 = vld [vmem:[%s4549_s11 + $0x10] sm:$0xff] }
 0x185   : > { %v849_v46 = vpop.f32.mrf.mxu2  ;;  %1169 = vmatpush.msra.mxu2 %v1141_v45 }
 0x186   : > { %v1140_v46 = vld [vmem:[%s4549_s11 + $0x8] sm:$0xff] }
 0x187   : > { %1170 = vmatpush.msra.mxu2 %v1140_v46 }
 0x1f9   : > { %v928_v47 = vpop.f32.mrf.mxu0 }
 0x1fb   : > { %v948_v49 = vpop.f32.mrf.mxu1 }
 0x1ff   : > { %v908_v48 = vpop.f32.mrf.mxu3 }
 0x200   : > { %v929_v50 = vadd.f32 %v928_v47, %v908_v48 }
 0x202   : > { %v949_v51 = vadd.f32 %v948_v49, %v929_v50 }
 0x204   : > { %v953_v52 = vsel %vm952_vm14, %v949_v51, 0.0  ;;  %v964_v53 = vmul.f32 %v949_v51, %v949_v51 }
 0x205   : > { %954 = vadd.xlane.f32.xlu1 %v953_v52  ;;  %v1139_v52 = vld [vmem:[%s4549_s11] sm:$0xff] }
 0x206   : > { %v965_v54 = vsel %vm952_vm14, %v964_v53, 0.0  ;;  %1171 = vmatpush.msra.mxu2 %v1139_v52 }
 0x207   : > { %966 = vadd.xlane.f32.xlu2 %v965_v54 }
 0x278   : > { %v955_v4 = vpop.xlane.xlu1 %954 }
 0x279   : > { %v963_v5 = vmul.f32 %v3943_v0, %v955_v4 }
 0x27a   : > { %v967_v6 = vpop.xlane.xlu2 %966 }
 0x27b   : > { %v969_v7 = vmul.f32 %v963_v5, %v963_v5  ;;  %v968_v8 = vmul.f32 %v967_v6, %v3943_v0  ;;  %v972_v16 = vsub.f32 %v949_v51, %v963_v5  ;;  %v3433_v51 = vld [vmem:[%s4540_s2] sm:$0xff] }
 0x27d   : > { %v970_v9 = vsub.f32 %v968_v8, %v969_v7 }
 0x27f   : > { %v971_v10 = vmax.f32 %v970_v9, 0.0 }
 0x281   : > { %v973_v11 = vadd.f32 1e-05, %v971_v10 }
 0x283   : > { %3566 = vrsqrt.f32 %v973_v11  ;;  %vm980_vm1 = vweird.f32 %v973_v11 }
 0x284   : > { %3568 = vrcp.f32 %v3626_v63 }
 0x289   : > { %v3567_v2 = vpop.eup %3566 }
 0x28a   : > { %v975_v3 = vmul.f32 %v3567_v2, %v973_v11  ;;  %vm981_vm0 = vweird.f32 %v3567_v2  ;;  %v3569_v1 = vpop.eup %3568 }
 0x28b   : > { %vm982_vm10 = vmor %vm980_vm1, %vm981_vm0  ;;  %vm1117_vm0 = vcmask 588800   ;;  %vm1149_vm1 = vcmask 654336   ;;  %v1188_v4 = vmul.f32 16.0, %v3569_v1 }
 0x28c   : > { %v976_v12 = vmul.f32 %v3567_v2, %v975_v3 }
 0x28d   : > { %v1189_v5 = vsub.f32 1.0, %v1188_v4 }
 0x28e   : > { %v977_v13 = vmul.f32 0.5, %v976_v12 }
 0x28f   : > { %v1190_v6 = vmul.f32 %v3569_v1, %v1189_v5 }
 0x290   : > { %v978_v14 = vsub.f32 1.5, %v977_v13  ;;  %v3438_v13 = vld [vmem:[%s4545_s7] sm:$0xff] }
 0x291   : > { %v1191_v7 = vadd.f32 %v3569_v1, %v1190_v6  ;;  %1270 = vmatpush.bf16.msrb.mxu3 %v3438_v13 }
 0x292   : > { %v979_v15 = vmul.f32 %v3567_v2, %v978_v14 }
 0x294   : > { %v983_v17 = vsel %vm982_vm10, %v3567_v2, %v979_v15  ;;  %vm1180_vm10 = vcmask 130048  }
 0x295   : > { %v984_v19 = vmul.f32 %v983_v17, %v972_v16 }
 0x297   : > { %vm985_vm12 = vcmp.ge.f32.partialorder %v984_v19, 0.0  ;;  %v987_v20 = vmul.f32 %v986_v18, %v984_v19 }
 0x299   : > { %v988_v21 = vsel %vm985_vm12, %v984_v19, %v987_v20  ;;  %vm1192_vm12 = vweird.f32 %v3569_v1 }
 0x29a   : > { %v989_v22 = vpack.c.bf16 %v988_v21, %v988_v21  ;;  %v4014_v8 = vsel %vm1192_vm12, %v3569_v1, %v1191_v7 }
 0x29c   : > { %3036 = vmatmul.msk.bf16.vlgmr.msrb.gmra.mxu2 %vm952_vm14, %v989_v22  ;;  %2279 = vst.msk [vmem:[#allocation8] sm:$0xf] %vm2278_vm13, %v989_v22 }
 0x31f   : > { %v1034_v23 = vpop.f32.mrf.mxu2 }
 0x320   : > { %v1038_v24 = vpack.c.bf16 %v1034_v23, %v1034_v23 }
 0x322   : > { %1050 = vrot.lane.b32.xlu1 %v1038_v24, %s4567_s16  ;;  %1046 = vrot.lane.b32.xlu2 %v1038_v24, %s3616_s17  ;;  %1040 = vst.msk [vmem:[#allocation3] sm:$0xf] %vm1039_vm15, %v1038_v24  ;;  %s3631_s16 = smov 114  }
 0x323   : > { %1070 = vrot.lane.b32.xlu0 %v1038_v24, %s4565_s20  ;;  %s3628_s20 = smov 115  }
 0x327   : > { %v1036_v25 = vpop.f32.mrf.mxu2 }
 0x32b   : > { %1062 = vrot.lane.b32.xlu0 %v1038_v24, %s4569_s30  ;;  %s3630_s30 = smov 122  }
 0x333   : > { %1066 = vrot.lane.b32.xlu0 %v1038_v24, %s3623_s21 }
 0x33b   : > { %1054 = vrot.lane.b32.xlu0 %v1038_v24, %s4577_s29  ;;  %s4581_s29 = smov 117  }
 0x343   : > { %1058 = vrot.lane.b32.xlu0 %v1038_v24, %s3625_s22 }
 0x34b   : > { %1042 = vrot.lane.b32.xlu0 %v1038_v24, %s4579_s28  ;;  %v3455_v24 = vld [vmem:[%s4546_s8] sm:$0xff] }
 0x34c   : > { %1701 = vmatpush.bf16.msrb.mxu2 %v3455_v24  ;;  %v3068_v24 = vld [vmem:[%s4541_s3] sm:$0xf] }
 0x37c   : > { %v1047_v26 = vpop.permute.xlu2 %1046 }
 0x37d   : > { %1049 = vst.msk [vmem:[#allocation3 + $0x8] sm:$0xf] %vm1039_vm15, %v1047_v26 }
 0x394   : > { %v1051_v27 = vpop.permute.xlu1 %1050 }
 0x395   : > { %1053 = vst.msk [vmem:[#allocation3 + $0xc] sm:$0xf] %vm1039_vm15, %v1051_v27  ;;  %v1071_v28 = vpop.permute.xlu0 %1070 }
 0x396   : > { %1073 = vst.msk [vmem:[#allocation3 + $0x20] sm:$0xf] %vm1039_vm15, %v1071_v28 }
 0x39c   : > { %v3435_v49 = vld [vmem:[#allocation3 + $0x8] sm:$0xff] }
 0x39d   : > { %v1063_v29 = vpop.permute.xlu0 %1062  ;;  %v1084_v30 = vld [vmem:[#allocation3 + $0x20] sm:$0xf] }
 0x39e   : > { %1065 = vst.msk [vmem:[#allocation3 + $0x18] sm:$0xf] %vm1039_vm15, %v1063_v29  ;;  %v1107_v31 = vunpack.c.l.b16 %v1084_v30 }
 0x3a0   : > { %v1112_v32 = vpack.c.b16 %v1107_v31, %v1107_v31 }
 0x3a2   : > { %v1123_v33 = vsel %vm550_vm3, %v1112_v32, 0 }
 0x3a3   : > { %1128 = vmatpush.bf16.msra.mxu1 %v1123_v33 }
 0x3a5   : > { %v1067_v34 = vpop.permute.xlu0 %1066 }
 0x3a6   : > { %1069 = vst.msk [vmem:[#allocation3 + $0x1c] sm:$0xf] %vm1039_vm15, %v1067_v34 }
 0x3ad   : > { %v1055_v38 = vpop.permute.xlu0 %1054  ;;  %v3437_v39 = vld [vmem:[#allocation3 + $0x18] sm:$0xff] }
 0x3ae   : > { %1057 = vst.msk [vmem:[#allocation3 + $0x10] sm:$0xf] %vm1039_vm15, %v1055_v38  ;;  %1129 = vmatpush.bf16.msra.mxu1 %v3437_v39 }
 0x3b5   : > { %v1059_v44 = vpop.permute.xlu0 %1058 }
 0x3b6   : > { %1061 = vst.msk [vmem:[#allocation3 + $0x14] sm:$0xf] %vm1039_vm15, %v1059_v44 }
 0x3bd   : > { %v1043_v47 = vpop.permute.xlu0 %1042  ;;  %v3436_v48 = vld [vmem:[#allocation3 + $0x10] sm:$0xff] }
 0x3be   : > { %1045 = vst.msk [vmem:[#allocation3 + $0x4] sm:$0xf] %vm1039_vm15, %v1043_v47  ;;  %1130 = vmatpush.bf16.msra.mxu1 %v3436_v48 }
 0x3c2   : > { %1131 = vmatpush.bf16.msra.mxu1 %v3435_v49 }
 0x3c5   : > { %v3434_v50 = vld [vmem:[#allocation3] sm:$0xff] }
 0x3c6   : > { %1132 = vmatpush.bf16.msra.mxu1 %v3434_v50 }
 0x3c9   : > { %3057 = vmatmul.msk.bf16.vlgmr.msra.gmra.mxu1 %vm1117_vm0, %v3433_v51 }
 0x446   : > { %v1134_v53 = vpop.f32.mrf.mxu1 }
 0x447   : > { %3058 = vmatmul.msk.f32.vlgmr.msra.gmra.mxu2 %vm1149_vm1, %v1134_v53 }
 0x44e   : > { %v1136_v54 = vpop.f32.mrf.mxu1 }
 0x44f   : > { %3059 = vmatmul.msk.f32.gmra.mxu2 %vm1149_vm1, %v1136_v54 }
 0x4ca   : > { %v1173_v55 = vpop.f32.mrf.mxu2 }
 0x4cb   : > { %v1181_v56 = vsel %vm1180_vm10, %v1173_v55, 0.0  ;;  %v1196_v57 = vmul.f32 %v1173_v55, %v1173_v55 }
 0x4cc   : > { %1182 = vadd.xlane.f32.xlu0 %v1181_v56 }
 0x4cd   : > { %v1198_v58 = vsel %vm1180_vm10, %v1196_v57, 0.0 }
 0x4ce   : > { %1199 = vadd.xlane.f32.xlu1 %v1198_v58 }
 0x4d2   : > { %v4007_v59 = vpop.f32.mrf.mxu2 }
 0x4d3   : > { %v1184_v60 = vsel %vm1180_vm10, %v4007_v59, 0.0  ;;  %v1197_v61 = vmul.f32 %v4007_v59, %v4007_v59 }
 0x4d4   : > { %1185 = vadd.xlane.f32.xlu2 %v1184_v60 }
 0x4d5   : > { %v1201_v62 = vsel %vm1180_vm10, %v1197_v61, 0.0 }
 0x4d6   : > { %1202 = vadd.xlane.f32.xlu0 %v1201_v62 }
 0x53f   : > { %v1183_v9 = vpop.xlane.xlu0 %1182 }
 0x540   : > { %v1194_v10 = vmul.f32 %v4014_v8, %v1183_v9 }
 0x541   : > { %v1200_v11 = vpop.xlane.xlu1 %1199 }
 0x542   : > { %v1206_v2 = vmul.f32 %v1194_v10, %v1194_v10  ;;  %v1204_v3 = vmul.f32 %v1200_v11, %v4014_v8  ;;  %v1212_v32 = vsub.f32 %v1173_v55, %v1194_v10 }
 0x544   : > { %v1208_v12 = vsub.f32 %v1204_v3, %v1206_v2 }
 0x546   : > { %v1210_v14 = vmax.f32 %v1208_v12, 0.0 }
 0x547   : > { %v1186_v15 = vpop.xlane.xlu2 %1185 }
 0x548   : > { %v1214_v16 = vadd.f32 1e-05, %v1210_v14  ;;  %v1195_v17 = vmul.f32 %v4014_v8, %v1186_v15 }
 0x549   : > { %v1203_v18 = vpop.xlane.xlu0 %1202 }
 0x54a   : > { %3570 = vrsqrt.f32 %v1214_v16  ;;  %v1207_v19 = vmul.f32 %v1195_v17, %v1195_v17  ;;  %v1205_v20 = vmul.f32 %v1203_v18, %v4014_v8  ;;  %vm1222_vm12 = vweird.f32 %v1214_v16 }
 0x54b   : > { %v1213_v44 = vsub.f32 %v4007_v59, %v1195_v17 }
 0x54c   : > { %v1209_v21 = vsub.f32 %v1205_v20, %v1207_v19  ;;  %v1488_v20 = vld [vmem:[%s4550_s12 + $0x10] sm:$0xff] }
 0x54d   : > { %1515 = vmatpush.msrb.mxu1 %v1488_v20 }
 0x54e   : > { %v1211_v22 = vmax.f32 %v1209_v21, 0.0 }
 0x550   : > { %v3571_v23 = vpop.eup %3570  ;;  %v1215_v26 = vadd.f32 1e-05, %v1211_v22 }
 0x551   : > { %v1217_v25 = vmul.f32 %v3571_v23, %v1214_v16  ;;  %vm1223_vm0 = vweird.f32 %v3571_v23 }
 0x552   : > { %3572 = vrsqrt.f32 %v1215_v26  ;;  %vm1224_vm2 = vmor %vm1222_vm12, %vm1223_vm0  ;;  %vm1232_vm8 = vweird.f32 %v1215_v26 }
 0x553   : > { %v1218_v27 = vmul.f32 %v3571_v23, %v1217_v25  ;;  %v3440_v25 = vld [vmem:[%s4541_s3 + $0x4] sm:$0xf0] }
 0x555   : > { %v1219_v28 = vmul.f32 0.5, %v1218_v27  ;;  %v3070_v27 = vld [vmem:[%s4541_s3 + $0x8] sm:$0xf0] }
 0x557   : > { %v1220_v29 = vsub.f32 1.5, %v1219_v28 }
 0x558   : > { %v3573_v30 = vpop.eup %3572 }
 0x559   : > { %v1221_v31 = vmul.f32 %v3571_v23, %v1220_v29  ;;  %v1227_v33 = vmul.f32 %v3573_v30, %v1215_v26  ;;  %vm1233_vm6 = vweird.f32 %v3573_v30  ;;  %v3439_v26 = vld [vmem:[%s4541_s3 + $0x4] sm:$0xf] }
 0x55a   : > { %vm1234_vm7 = vmor %vm1232_vm8, %vm1233_vm6  ;;  %vm1489_vm6 = vcmask 195584  }
 0x55b   : > { %v1225_v34 = vsel %vm1224_vm2, %v3571_v23, %v1221_v31  ;;  %v1228_v37 = vmul.f32 %v3573_v30, %v1227_v33  ;;  %v3073_v31 = vor.u32 %v3439_v26, %v3070_v27  ;;  %v3442_v33 = vld [vmem:[%s4541_s3 + $0x14] sm:$0xf0] }
 0x55c   : > { %v1236_v36 = vmul.f32 %v1225_v34, %v1212_v32  ;;  %v3076_v32 = vld [vmem:[%s4541_s3 + $0x10] sm:$0xf]  ;;  %v3441_v34 = vld [vmem:[%s4541_s3 + $0x14] sm:$0xf] }
 0x55d   : > { %v1229_v38 = vmul.f32 0.5, %v1228_v37 }
 0x55e   : > { %vm1238_vm5 = vcmp.ge.f32.partialorder %v1236_v36, 0.0  ;;  %v1241_v39 = vmul.f32 %v1240_v35, %v1236_v36 }
 0x55f   : > { %v1230_v40 = vsub.f32 1.5, %v1229_v38  ;;  %v1487_v38 = vld [vmem:[%s4550_s12 + $0x8] sm:$0xff] }
 0x560   : > { %v1243_v41 = vsel %vm1238_vm5, %v1236_v36, %v1241_v39  ;;  %vm1279_vm5 = vcmask 191488   ;;  %v3077_v36 = vor.u32 %v3442_v33, %v3076_v32  ;;  %1516 = vmatpush.msrb.mxu1 %v1487_v38  ;;  %v1486_v39 = vld [vmem:[%s4550_s12] sm:$0xff] }
 0x561   : > { %v1245_v42 = vpack.c.bf16 %v1243_v41, %v1243_v41  ;;  %v1231_v43 = vmul.f32 %v3573_v30, %v1230_v40 }
 0x562   : > { %1517 = vmatpush.msrb.mxu1 %v1486_v39 }
 0x563   : > { %1646 = vst.msk [vmem:[#allocation7] sm:$0xf] %vm1645_vm9, %v1245_v42  ;;  %v1235_v45 = vsel %vm1234_vm7, %v3573_v30, %v1231_v43  ;;  %v1251_v50 = vunpack.c.l.b16 %v1245_v42  ;;  %v3069_v30 = vor.u32 %v3440_v25, %v3068_v24 }
 0x564   : > { %v1237_v46 = vmul.f32 %v1235_v45, %v1213_v44 }
 0x566   : > { %vm1239_vm2 = vcmp.ge.f32.partialorder %v1237_v46, 0.0  ;;  %v1242_v47 = vmul.f32 %v1240_v35, %v1237_v46  ;;  %v3078_v35 = vld [vmem:[%s4541_s3 + $0x18] sm:$0xf0] }
 0x567   : > { %v3081_v37 = vor.u32 %v3441_v34, %v3078_v35 }
 0x568   : > { %v1244_v48 = vsel %vm1239_vm2, %v1237_v46, %v1242_v47 }
 0x569   : > { %v1246_v49 = vpack.c.bf16 %v1244_v48, %v1244_v48 }
 0x56b   : > { %v1252_v51 = vunpack.c.l.b16 %v1246_v49  ;;  %1647 = vst.msk [vmem:[#allocation7 + $0x4] sm:$0xf] %vm1645_vm9, %v1246_v49 }
 0x56d   : > { %v1253_v52 = vpack.c.b16 %v1252_v51, %v1251_v50 }
 0x56f   : > { %3065 = vmatmul.msk.bf16.vlgmr.msrb.gmra.mxu3 %vm1180_vm10, %v1253_v52 }
 0x572   : > { %v3452_v53 = vld [vmem:[#allocation7] sm:$0xff] }
 0x573   : > { %3141 = vmatmul.msk.bf16.vlgmr.msrb.gmra.mxu2 %vm1180_vm10, %v3452_v53 }
 0x5f2   : > { %v1272_v54 = vpop.f32.mrf.mxu3 }
 0x5f3   : > { %v1277_v55 = vpack.c.bf16 %v1272_v54, %v1272_v54 }
 0x5f5   : > { %1316 = vrot.lane.b32.xlu2 %v1277_v55, %s3627_s25  ;;  %1324 = vrot.lane.b32.xlu1 %v1277_v55, %s3625_s22  ;;  %1280 = vst.msk [vmem:[#allocation4] sm:$0xf] %vm1279_vm5, %v1277_v55 }
 0x5f6   : > { %1332 = vrot.lane.b32.xlu0 %v1277_v55, %s3628_s20  ;;  %v1703_v56 = vpop.f32.mrf.mxu2 }
 0x5f7   : > { %v4033_v57 = vpack.c.bf16 %v1703_v56, %v1703_v56 }
 0x5f9   : > { %1724 = vst.msk [vmem:[#allocation5] sm:$0xf] %vm1039_vm15, %v4033_v57 }
 0x5fa   : > { %v1274_v58 = vpop.f32.mrf.mxu3 }
 0x5fb   : > { %v1278_v59 = vpack.c.bf16 %v1274_v58, %v1274_v58 }
 0x5fd   : > { %1308 = vrot.lane.b32.xlu1 %v1277_v55, %s3629_s24  ;;  %1334 = vrot.lane.b32.xlu2 %v1278_v59, %s3628_s20  ;;  %1281 = vst.msk [vmem:[#allocation4 + $0x4] sm:$0xf] %vm1279_vm5, %v1278_v59 }
 0x5fe   : > { %1326 = vrot.lane.b32.xlu0 %v1278_v59, %s3625_s22  ;;  %v1705_v60 = vpop.f32.mrf.mxu2 }
 0x5ff   : > { %v4039_v61 = vpack.c.bf16 %v1705_v60, %v1705_v60 }
 0x601   : > { %1725 = vst.msk [vmem:[#allocation5 + $0x4] sm:$0xf] %vm1039_vm15, %v4039_v61 }
 0x604   : > { %v3443_v28 = vld [vmem:[#allocation4] sm:$0xff] }
 0x605   : > { %1302 = vrot.lane.b32.xlu1 %v1278_v59, %s3630_s30  ;;  %1310 = vrot.lane.b32.xlu2 %v1278_v59, %s3629_s24  ;;  %s4582_s24 = smov 108  }
 0x606   : > { %1318 = vrot.lane.b32.xlu0 %v1278_v59, %s3627_s25  ;;  %s4603_s25 = smul.u32 12, %s4605_s19 }
 0x60d   : > { %1284 = vrot.lane.b32.xlu1 %v1277_v55, %s4579_s28  ;;  %1292 = vrot.lane.b32.xlu2 %v1277_v55, %s3616_s17 }
 0x60e   : > { %1300 = vrot.lane.b32.xlu0 %v1277_v55, %s3630_s30  ;;  %s3124_s30 = sld [smem:[#allocation9 + $0x2]] }
 0x615   : > { %1342 = vrot.lane.b32.xlu1 %v1278_v59, %s3631_s16  ;;  %1286 = vrot.lane.b32.xlu2 %v1278_v59, %s4579_s28 }
 0x616   : > { %1294 = vrot.lane.b32.xlu0 %v1278_v59, %s3616_s17 }
 0x61e   : > { %1340 = vrot.lane.b32.xlu0 %v1277_v55, %s3631_s16  ;;  %s4583_s16 = smov 118  }
 0x64f   : > { %v1317_v62 = vpop.permute.xlu2 %1316 }
 0x650   : > { %1322 = vst.msk [vmem:[#allocation4 + $0x28] sm:$0xf] %vm1279_vm5, %v1317_v62 }
 0x657   : > { %v1335_v63 = vpop.permute.xlu2 %1334 }
 0x658   : > { %1339 = vst.msk [vmem:[#allocation4 + $0x3c] sm:$0xf] %vm1279_vm5, %v1335_v63 }
 0x65f   : > { %v1311_v1 = vpop.permute.xlu2 %1310 }
 0x660   : > { %1315 = vst.msk [vmem:[#allocation4 + $0x24] sm:$0xf] %vm1279_vm5, %v1311_v1 }
 0x667   : > { %v1325_v4 = vpop.permute.xlu1 %1324  ;;  %v1293_v5 = vpop.permute.xlu2 %1292 }
 0x668   : > { %1330 = vst.msk [vmem:[#allocation4 + $0x30] sm:$0xf] %vm1279_vm5, %v1325_v4  ;;  %v1333_v6 = vpop.permute.xlu0 %1332 }
 0x669   : > { %1338 = vst.msk [vmem:[#allocation4 + $0x38] sm:$0xf] %vm1279_vm5, %v1333_v6 }
 0x66a   : > { %1298 = vst.msk [vmem:[#allocation4 + $0x10] sm:$0xf] %vm1279_vm5, %v1293_v5 }
 0x66f   : > { %v1309_v7 = vpop.permute.xlu1 %1308  ;;  %v1287_v9 = vpop.permute.xlu2 %1286 }
 0x670   : > { %1314 = vst.msk [vmem:[#allocation4 + $0x20] sm:$0xf] %vm1279_vm5, %v1309_v7  ;;  %v1327_v10 = vpop.permute.xlu0 %1326  ;;  %v3450_v11 = vld [vmem:[#allocation4 + $0x38] sm:$0xff] }
 0x671   : > { %1331 = vst.msk [vmem:[#allocation4 + $0x34] sm:$0xf] %vm1279_vm5, %v1327_v10  ;;  %1448 = vmatpush.bf16.msra.mxu3 %v3450_v11 }
 0x672   : > { %1291 = vst.msk [vmem:[#allocation4 + $0xc] sm:$0xf] %vm1279_vm5, %v1287_v9 }
 0x677   : > { %v1303_v2 = vpop.permute.xlu1 %1302  ;;  %v3447_v16 = vld [vmem:[#allocation4 + $0x20] sm:$0xff] }
 0x678   : > { %1307 = vst.msk [vmem:[#allocation4 + $0x1c] sm:$0xf] %vm1279_vm5, %v1303_v2  ;;  %v1319_v3 = vpop.permute.xlu0 %1318  ;;  %v3449_v12 = vld [vmem:[#allocation4 + $0x30] sm:$0xff] }
 0x679   : > { %1323 = vst.msk [vmem:[#allocation4 + $0x2c] sm:$0xf] %vm1279_vm5, %v1319_v3  ;;  %1449 = vmatpush.bf16.msra.mxu3 %v3449_v12 }
 0x67f   : > { %v1285_v13 = vpop.permute.xlu1 %1284 }
 0x680   : > { %1290 = vst.msk [vmem:[#allocation4 + $0x8] sm:$0xf] %vm1279_vm5, %v1285_v13  ;;  %v1301_v14 = vpop.permute.xlu0 %1300  ;;  %v3448_v15 = vld [vmem:[#allocation4 + $0x28] sm:$0xff] }
 0x681   : > { %1306 = vst.msk [vmem:[#allocation4 + $0x18] sm:$0xf] %vm1279_vm5, %v1301_v14  ;;  %1450 = vmatpush.bf16.msra.mxu3 %v3448_v15 }
 0x685   : > { %1451 = vmatpush.bf16.msra.mxu3 %v3447_v16 }
 0x687   : > { %v1343_v17 = vpop.permute.xlu1 %1342  ;;  %v3444_v23 = vld [vmem:[#allocation4 + $0x8] sm:$0xff] }
 0x688   : > { %1347 = vst.msk [vmem:[#allocation4 + $0x44] sm:$0xf] %vm1279_vm5, %v1343_v17  ;;  %v1295_v18 = vpop.permute.xlu0 %1294  ;;  %v3446_v19 = vld [vmem:[#allocation4 + $0x18] sm:$0xff] }
 0x689   : > { %1299 = vst.msk [vmem:[#allocation4 + $0x14] sm:$0xf] %vm1279_vm5, %v1295_v18  ;;  %1452 = vmatpush.bf16.msra.mxu3 %v3446_v19 }
 0x690   : > { %v1341_v21 = vpop.permute.xlu0 %1340  ;;  %v3445_v22 = vld [vmem:[#allocation4 + $0x10] sm:$0xff] }
 0x691   : > { %1346 = vst.msk [vmem:[#allocation4 + $0x40] sm:$0xf] %vm1279_vm5, %v1341_v21  ;;  %1453 = vmatpush.bf16.msra.mxu3 %v3445_v22 }
 0x695   : > { %1454 = vmatpush.bf16.msra.mxu3 %v3444_v23 }
 0x698   : > { %v3451_v29 = vld [vmem:[#allocation4 + $0x40] sm:$0xff] }
 0x699   : > { %1455 = vmatpush.bf16.msra.mxu3 %v3443_v28  ;;  %1474 = vmatpush.bf16.msra.mxu0 %v3451_v29 }
 0x69c   : > { %1456 = vmatmul.bf16.vlgmr.msra.gmra.mxu3 %v3069_v30  ;;  %3118 = vmatmul.msk.bf16.vlgmr.msra.gmra.mxu0 %vm1180_vm10, %v3073_v31 }
 0x6ac   : > { %1461 = vmatmul.bf16.gmra.mxu3 %v3077_v36  ;;  %3119 = vmatmul.msk.bf16.gmra.mxu0 %vm1180_vm10, %v3081_v37 }
 0x719   : > { %v1476_v40 = vpop.f32.mrf.mxu0 }
 0x71f   : > { %v1457_v41 = vpop.f32.mrf.mxu3 }
 0x720   : > { %v1477_v42 = vadd.f32 %v1476_v40, %v1457_v41 }
 0x721   : > { %v1478_v43 = vpop.f32.mrf.mxu0 }
 0x722   : > { %3120 = vmatmul.msk.f32.vlgmr.msrb.gmra.mxu1 %vm1489_vm6, %v1477_v42 }
 0x727   : > { %v1459_v44 = vpop.f32.mrf.mxu3 }
 0x728   : > { %v1479_v45 = vadd.f32 %v1478_v43, %v1459_v44 }
 0x729   : > { %v1481_v46 = vpop.f32.mrf.mxu0 }
 0x72a   : > { %3121 = vmatmul.msk.f32.gmra.mxu1 %vm1489_vm6, %v1479_v45  ;;  %v4169_v45 = vstv %s3124_s30  ;;  %s508_s30 = scalar_lea.vmem %s4553_s15, %s4603_s25 }
 0x72f   : > { %v1462_v47 = vpop.f32.mrf.mxu3 }
 0x730   : > { %v1482_v48 = vadd.f32 %v1481_v46, %v1462_v47 }
 0x731   : > { %v1483_v49 = vpop.f32.mrf.mxu0 }
 0x732   : > { %3122 = vmatmul.msk.f32.gmra.mxu1 %vm1489_vm6, %v1482_v48 }
 0x737   : > { %v1464_v50 = vpop.f32.mrf.mxu3 }
 0x738   : > { %v1484_v51 = vadd.f32 %v1483_v49, %v1464_v50 }
 0x73a   : > { %3123 = vmatmul.msk.f32.gmra.mxu1 %vm1489_vm6, %v1484_v51 }
 0x79f   : > { %v4098_v52 = vpop.f32.mrf.mxu1 }
 0x7a0   : > { %v1532_v53 = vsel %vm1180_vm10, %v4098_v52, 0.0  ;;  %v1548_v54 = vmul.f32 %v4098_v52, %v4098_v52 }
 0x7a1   : > { %1533 = vadd.xlane.f32.xlu2 %v1532_v53 }
 0x7a2   : > { %v1552_v55 = vsel %vm1180_vm10, %v1548_v54, 0.0 }
 0x7a3   : > { %1553 = vadd.xlane.f32.xlu1 %v1552_v55 }
 0x7a7   : > { %v4105_v56 = vpop.f32.mrf.mxu1 }
 0x7a8   : > { %v1535_v58 = vsel %vm1180_vm10, %v4105_v56, 0.0  ;;  %v1549_v59 = vmul.f32 %v4105_v56, %v4105_v56 }
 0x7a9   : > { %1536 = vadd.xlane.f32.xlu0 %v1535_v58 }
 0x7aa   : > { %v1555_v60 = vsel %vm1180_vm10, %v1549_v59, 0.0 }
 0x7ab   : > { %1556 = vadd.xlane.f32.xlu2 %v1555_v60 }
 0x7af   : > { %v4112_v62 = vpop.f32.mrf.mxu1 }
 0x7b0   : > { %v1538_v63 = vsel %vm1180_vm10, %v4112_v62, 0.0  ;;  %v1550_v1 = vmul.f32 %v4112_v62, %v4112_v62 }
 0x7b1   : > { %1539 = vadd.xlane.f32.xlu0 %v1538_v63 }
 0x7b2   : > { %v1558_v4 = vsel %vm1180_vm10, %v1550_v1, 0.0 }
 0x7b3   : > { %1559 = vadd.xlane.f32.xlu2 %v1558_v4 }
 0x7b7   : > { %v4119_v5 = vpop.f32.mrf.mxu1 }
 0x7b8   : > { %v1541_v6 = vsel %vm1180_vm10, %v4119_v5, 0.0  ;;  %v1551_v7 = vmul.f32 %v4119_v5, %v4119_v5 }
 0x7b9   : > { %1542 = vadd.xlane.f32.xlu1 %v1541_v6 }
 0x7ba   : > { %v1561_v9 = vsel %vm1180_vm10, %v1551_v7, 0.0 }
 0x7bb   : > { %1562 = vadd.xlane.f32.xlu0 %v1561_v9 }
 0x7cb   : > { %1832 = vrot.lane.b32.xlu2 %v4033_v57, %s3625_s22 }
 0x7cf   : > { %1760 = vrot.lane.b32.xlu0 %v4033_v57, %s3616_s17 }
 0x7d2   : > { %1762 = vrot.lane.b32.xlu1 %v4039_v61, %s3616_s17 }
 0x7d3   : > { %1882 = vrot.lane.b32.xlu2 %v4039_v61, %s3623_s21 }
 0x7d7   : > { %1834 = vrot.lane.b32.xlu0 %v4039_v61, %s3625_s22 }
 0x7da   : > { %1738 = vrot.lane.b32.xlu1 %v4039_v61, %s4579_s28 }
 0x7db   : > { %1810 = vrot.lane.b32.xlu2 %v4039_v61, %s4581_s29 }
 0x7df   : > { %1736 = vrot.lane.b32.xlu0 %v4033_v57, %s4579_s28 }
 0x7e2   : > { %1880 = vrot.lane.b32.xlu1 %v4033_v57, %s3623_s21 }
 0x7e3   : > { %1858 = vrot.lane.b32.xlu2 %v4039_v61, %s4582_s24 }
 0x7ea   : > { %1808 = vrot.lane.b32.xlu1 %v4033_v57, %s4581_s29 }
 0x7f2   : > { %1856 = vrot.lane.b32.xlu1 %v4033_v57, %s4582_s24 }
 0x814   : > { %v1534_v10 = vpop.xlane.xlu2 %1533 }
 0x815   : > { %v1544_v11 = vmul.f32 %v1534_v10, %v4014_v8 }
 0x816   : > { %v1554_v2 = vpop.xlane.xlu1 %1553 }
 0x817   : > { %v1568_v3 = vmul.f32 %v1544_v11, %v1544_v11  ;;  %v1564_v12 = vmul.f32 %v1554_v2, %v4014_v8  ;;  %v1580_v43 = vsub.f32 %v4098_v52, %v1544_v11 }
 0x819   : > { %v1572_v13 = vsub.f32 %v1564_v12, %v1568_v3 }
 0x81b   : > { %v1576_v14 = vmax.f32 %v1572_v13, 0.0 }
 0x81c   : > { %v1537_v15 = vpop.xlane.xlu0 %1536 }
 0x81d   : > { %v1584_v16 = vadd.f32 1e-05, %v1576_v14  ;;  %v4153_v17 = vmul.f32 %v1537_v15, %v4014_v8 }
 0x81e   : > { %v1557_v18 = vpop.xlane.xlu2 %1556 }
 0x81f   : > { %3574 = vrsqrt.f32 %v1584_v16  ;;  %v1569_v19 = vmul.f32 %v4153_v17, %v4153_v17  ;;  %v1565_v20 = vmul.f32 %v1557_v18, %v4014_v8  ;;  %vm1594_vm8 = vweird.f32 %v1584_v16 }
 0x821   : > { %v1573_v21 = vsub.f32 %v1565_v20, %v1569_v19 }
 0x823   : > { %v1577_v22 = vmax.f32 %v1573_v21, 0.0 }
 0x824   : > { %v1540_v23 = vpop.xlane.xlu0 %1539 }
 0x825   : > { %v3575_v24 = vpop.eup %3574  ;;  %v4159_v25 = vmul.f32 %v1540_v23, %v4014_v8  ;;  %v1585_v27 = vadd.f32 1e-05, %v1577_v22 }
 0x826   : > { %v1589_v26 = vmul.f32 %v3575_v24, %v1584_v16  ;;  %v1560_v28 = vpop.xlane.xlu2 %1559  ;;  %vm1595_vm7 = vweird.f32 %v3575_v24 }
 0x827   : > { %v1570_v29 = vmul.f32 %v4159_v25, %v4159_v25  ;;  %v1566_v30 = vmul.f32 %v1560_v28, %v4014_v8  ;;  %3576 = vrsqrt.f32 %v1585_v27  ;;  %vm1596_vm0 = vmor %vm1594_vm8, %vm1595_vm7  ;;  %vm1604_vm5 = vweird.f32 %v1585_v27 }
 0x828   : > { %v1590_v31 = vmul.f32 %v3575_v24, %v1589_v26 }
 0x829   : > { %v1574_v32 = vsub.f32 %v1566_v30, %v1570_v29 }
 0x82a   : > { %v1591_v33 = vmul.f32 0.5, %v1590_v31 }
 0x82b   : > { %v1578_v34 = vmax.f32 %v1574_v32, 0.0 }
 0x82c   : > { %v1592_v35 = vsub.f32 1.5, %v1591_v33  ;;  %v1543_v36 = vpop.xlane.xlu1 %1542 }
 0x82d   : > { %v1586_v37 = vadd.f32 1e-05, %v1578_v34  ;;  %v4165_v38 = vmul.f32 %v1543_v36, %v4014_v8  ;;  %v3577_v39 = vpop.eup %3576 }
 0x82e   : > { %v1593_v40 = vmul.f32 %v3575_v24, %v1592_v35  ;;  %v1833_v41 = vpop.permute.xlu2 %1832  ;;  %v1563_v42 = vpop.xlane.xlu0 %1562  ;;  %v1599_v44 = vmul.f32 %v3577_v39, %v1585_v27  ;;  %vm1605_vm2 = vweird.f32 %v3577_v39 }
 0x82f   : > { %3578 = vrsqrt.f32 %v1586_v37  ;;  %1850 = vst.msk [vmem:[#allocation5 + $0x78] sm:$0xf] %vm1039_vm15, %v1833_v41  ;;  %v1571_v47 = vmul.f32 %v4165_v38, %v4165_v38  ;;  %v1567_v48 = vmul.f32 %v1563_v42, %v4014_v8  ;;  %v1581_v8 = vsub.f32 %v4105_v56, %v4153_v17  ;;  %vm1606_vm6 = vmor %vm1604_vm5, %vm1605_vm2 }
 0x830   : > { %v1597_v46 = vsel %vm1596_vm0, %v3575_v24, %v1593_v40  ;;  %v1600_v50 = vmul.f32 %v3577_v39, %v1599_v44  ;;  %vm1614_vm7 = vweird.f32 %v1586_v37  ;;  %v1582_v56 = vsub.f32 %v4112_v62, %v4159_v25 }
 0x831   : > { %v1628_v49 = vmul.f32 %v1597_v46, %v1580_v43  ;;  %v1575_v51 = vsub.f32 %v1567_v48, %v1571_v47  ;;  %v1583_v29 = vsub.f32 %v4119_v5, %v4165_v38 }
 0x832   : > { %v1601_v52 = vmul.f32 0.5, %v1600_v50 }
 0x833   : > { %vm1632_vm12 = vcmp.ge.f32.partialorder %v1628_v49, 0.0  ;;  %v1637_v53 = vmul.f32 %v4169_v45, %v1628_v49  ;;  %v1579_v54 = vmax.f32 %v1575_v51, 0.0 }
 0x834   : > { %v1602_v59 = vsub.f32 1.5, %v1601_v52 }
 0x835   : > { %v3579_v55 = vpop.eup %3578  ;;  %v1641_v58 = vsel %vm1632_vm12, %v1628_v49, %v1637_v53  ;;  %v1587_v1 = vadd.f32 1e-05, %v1579_v54 }
 0x836   : > { %v1648_v60 = vpack.c.bf16 %v1641_v58, %v1641_v58  ;;  %v1609_v63 = vmul.f32 %v3579_v55, %v1586_v37  ;;  %v1883_v4 = vpop.permute.xlu2 %1882  ;;  %v1603_v6 = vmul.f32 %v3577_v39, %v1602_v59  ;;  %vm1615_vm0 = vweird.f32 %v3579_v55 }
 0x837   : > { %1899 = vst.msk [vmem:[#allocation5 + $0xac] sm:$0xf] %vm1039_vm15, %v1883_v4  ;;  %3580 = vrsqrt.f32 %v1587_v1  ;;  %vm1616_vm12 = vmor %vm1614_vm7, %vm1615_vm0 }
 0x838   : > { %1652 = vst.msk [vmem:[#allocation7 + $0x8] sm:$0xf] %vm1645_vm9, %v1648_v60  ;;  %v1610_v7 = vmul.f32 %v3579_v55, %v1609_v63  ;;  %v1607_v9 = vsel %vm1606_vm6, %v3577_v39, %v1603_v6  ;;  %vm1624_vm6 = vweird.f32 %v1587_v1 }
 0x839   : > { %v1629_v10 = vmul.f32 %v1607_v9, %v1581_v8 }
 0x83a   : > { %v1611_v11 = vmul.f32 0.5, %v1610_v7 }
 0x83b   : > { %vm1633_vm8 = vcmp.ge.f32.partialorder %v1629_v10, 0.0  ;;  %v1638_v2 = vmul.f32 %v4169_v45, %v1629_v10 }
 0x83c   : > { %v1612_v3 = vsub.f32 1.5, %v1611_v11 }
 0x83d   : > { %v3581_v12 = vpop.eup %3580  ;;  %v1642_v13 = vsel %vm1633_vm8, %v1629_v10, %v1638_v2 }
 0x83e   : > { %v1613_v14 = vmul.f32 %v3579_v55, %v1612_v3  ;;  %v1811_v15 = vpop.permute.xlu2 %1810  ;;  %v1649_v16 = vpack.c.bf16 %v1642_v13, %v1642_v13  ;;  %v1619_v17 = vmul.f32 %v3581_v12, %v1587_v1  ;;  %vm1625_vm5 = vweird.f32 %v3581_v12 }
 0x83f   : > { %1827 = vst.msk [vmem:[#allocation5 + $0x64] sm:$0xf] %vm1039_vm15, %v1811_v15  ;;  %vm1626_vm7 = vmor %vm1624_vm6, %vm1625_vm5  ;;  %vm4595_vm5 = vcmask 752640   ;;  %vm2620_vm6 = vcmask 253952  }
 0x840   : > { %v1617_v18 = vsel %vm1616_vm12, %v3579_v55, %v1613_v14  ;;  %1653 = vst.msk [vmem:[#allocation7 + $0xc] sm:$0xf] %vm1645_vm9, %v1649_v16  ;;  %v1620_v20 = vmul.f32 %v3581_v12, %v1619_v17  ;;  %vm2419_vm12 = vcmask 257024  }
 0x841   : > { %v1630_v19 = vmul.f32 %v1617_v18, %v1582_v56  ;;  %v1761_v21 = vpop.permute.xlu0 %1760 }
 0x842   : > { %1778 = vst.msk [vmem:[#allocation5 + $0x30] sm:$0xf] %vm1039_vm15, %v1761_v21  ;;  %v1621_v23 = vmul.f32 0.5, %v1620_v20 }
 0x843   : > { %vm1634_vm2 = vcmp.ge.f32.partialorder %v1630_v19, 0.0  ;;  %v1639_v22 = vmul.f32 %v4169_v45, %v1630_v19 }
 0x844   : > { %v1763_v24 = vpop.permute.xlu1 %1762  ;;  %v1622_v27 = vsub.f32 1.5, %v1621_v23 }
 0x845   : > { %v1643_v26 = vsel %vm1634_vm2, %v1630_v19, %v1639_v22  ;;  %1779 = vst.msk [vmem:[#allocation5 + $0x34] sm:$0xf] %vm1039_vm15, %v1763_v24  ;;  %v4271_v19 = vld [vmem:[%s4542_s4] sm:$0xff]  ;;  %vm4594_vm2 = vcmask 1031168  }
 0x846   : > { %v1650_v62 = vpack.c.bf16 %v1643_v26, %v1643_v26  ;;  %v1859_v25 = vpop.permute.xlu2 %1858  ;;  %v1623_v28 = vmul.f32 %v3581_v12, %v1622_v27  ;;  %v1986_v26 = vunpack.c.l.b16 %v4271_v19  ;;  %v3456_v27 = vld [vmem:[#allocation5] sm:$0xff] }
 0x847   : > { %1875 = vst.msk [vmem:[#allocation5 + $0x94] sm:$0xf] %vm1039_vm15, %v1859_v25  ;;  %v3453_v30 = vld [vmem:[#allocation7 + $0x8] sm:$0xff] }
 0x848   : > { %1654 = vst.msk [vmem:[#allocation7 + $0x10] sm:$0xf] %vm1645_vm9, %v1650_v62  ;;  %v1627_v31 = vsel %vm1626_vm7, %v3581_v12, %v1623_v28  ;;  %3142 = vmatmul.msk.bf16.gmra.mxu2 %vm1180_vm10, %v3453_v30  ;;  %v1990_v25 = vpack.c.b16 %v1986_v26, %v1986_v26  ;;  %v3494_v26 = vld [vmem:[%s4547_s9 + $0x50] sm:$0xf0]  ;;  %vm2821_vm7 = vcmask 1040384  }
 0x849   : > { %v1835_v32 = vpop.permute.xlu0 %1834  ;;  %v1631_v33 = vmul.f32 %v1627_v31, %v1583_v29 }
 0x84a   : > { %1851 = vst.msk [vmem:[#allocation5 + $0x7c] sm:$0xf] %vm1039_vm15, %v1835_v32 }
 0x84b   : > { %vm1635_vm8 = vcmp.ge.f32.partialorder %v1631_v33, 0.0  ;;  %v1640_v34 = vmul.f32 %v4169_v45, %v1631_v33 }
 0x84c   : > { %v1739_v35 = vpop.permute.xlu1 %1738  ;;  %v3462_v60 = vld [vmem:[#allocation5 + $0x30] sm:$0xff] }
 0x84d   : > { %1755 = vst.msk [vmem:[#allocation5 + $0x1c] sm:$0xf] %vm1039_vm15, %v1739_v35  ;;  %v1644_v36 = vsel %vm1635_vm8, %v1631_v33, %v1640_v34  ;;  %vm4596_vm8 = vcmask 891904  }
 0x84e   : > { %v1651_v37 = vpack.c.bf16 %v1644_v36, %v1644_v36 }
 0x850   : > { %1655 = vst.msk [vmem:[#allocation7 + $0x14] sm:$0xf] %vm1645_vm9, %v1651_v37  ;;  %vm2159_vm9 = vcmask 392192  }
 0x851   : > { %v1737_v5 = vpop.permute.xlu0 %1736  ;;  %v3471_v38 = vld [vmem:[#allocation5 + $0x78] sm:$0xff] }
 0x852   : > { %1754 = vst.msk [vmem:[#allocation5 + $0x18] sm:$0xf] %vm1039_vm15, %v1737_v5  ;;  %2176 = vmatpush.bf16.msra.mxu1 %v3471_v38 }
 0x854   : > { %v1881_v39 = vpop.permute.xlu1 %1880 }
 0x855   : > { %1898 = vst.msk [vmem:[#allocation5 + $0xa8] sm:$0xf] %vm1039_vm15, %v1881_v39  ;;  %v2224_v39 = vld [vmem:[%s4551_s13 + $0x48] sm:$0xff] }
 0x856   : > { %2234 = vmatpush.msra.mxu2 %v2224_v39  ;;  %v3293_v39 = vld [vmem:[%s4547_s9 + $0x38] sm:$0xf] }
 0x857   : > { %v3454_v40 = vld [vmem:[#allocation7 + $0x10] sm:$0xff] }
 0x858   : > { %3143 = vmatmul.msk.bf16.gmra.mxu2 %vm1180_vm10, %v3454_v40  ;;  %v2223_v40 = vld [vmem:[%s4551_s13 + $0x40] sm:$0xff] }
 0x859   : > { %v3459_v17 = vld [vmem:[#allocation5 + $0x18] sm:$0xff]  ;;  %2235 = vmatpush.msra.mxu2 %v2223_v40  ;;  %v3492_v40 = vld [vmem:[%s4547_s9 + $0x40] sm:$0xf0] }
 0x85c   : > { %v1809_v41 = vpop.permute.xlu1 %1808  ;;  %v3477_v32 = vld [vmem:[#allocation5 + $0xa8] sm:$0xff] }
 0x85d   : > { %1826 = vst.msk [vmem:[#allocation5 + $0x60] sm:$0xf] %vm1039_vm15, %v1809_v41  ;;  %v2222_v41 = vld [vmem:[%s4551_s13 + $0x38] sm:$0xff] }
 0x85e   : > { %2236 = vmatpush.msra.mxu2 %v2222_v41 }
 0x864   : > { %v1857_v42 = vpop.permute.xlu1 %1856  ;;  %v3468_v37 = vld [vmem:[#allocation5 + $0x60] sm:$0xff] }
 0x865   : > { %1874 = vst.msk [vmem:[#allocation5 + $0x90] sm:$0xf] %vm1039_vm15, %v1857_v42 }
 0x8cb   : > { %v1708_v43 = vpop.f32.mrf.mxu2 }
 0x8cc   : > { %v1720_v44 = vpack.c.bf16 %v1708_v43, %v1708_v43 }
 0x8ce   : > { %1726 = vst.msk [vmem:[#allocation5 + $0x8] sm:$0xf] %vm1039_vm15, %v1720_v44  ;;  %1740 = vrot.lane.b32.xlu0 %v1720_v44, %s4579_s28  ;;  %1764 = vrot.lane.b32.xlu1 %v1720_v44, %s3616_s17 }
 0x8d3   : > { %v1710_v45 = vpop.f32.mrf.mxu2 }
 0x8d4   : > { %v1721_v46 = vpack.c.bf16 %v1710_v45, %v1710_v45  ;;  %v3474_v45 = vld [vmem:[#allocation5 + $0x90] sm:$0xff] }
 0x8d6   : > { %1727 = vst.msk [vmem:[#allocation5 + $0xc] sm:$0xf] %vm1039_vm15, %v1721_v46  ;;  %1766 = vrot.lane.b32.xlu2 %v1721_v46, %s3616_s17  ;;  %1812 = vrot.lane.b32.xlu0 %v1720_v44, %s4581_s29 }
 0x8d7   : > { %1884 = vrot.lane.b32.xlu1 %v1720_v44, %s3623_s21 }
 0x8db   : > { %v1713_v47 = vpop.f32.mrf.mxu2 }
 0x8dc   : > { %v1722_v48 = vpack.c.bf16 %v1713_v47, %v1713_v47  ;;  %v2220_v47 = vld [vmem:[%s4551_s13 + $0x28] sm:$0xff] }
 0x8dd   : > { %v3457_v23 = vld [vmem:[#allocation5 + $0x8] sm:$0xff] }
 0x8de   : > { %1728 = vst.msk [vmem:[#allocation5 + $0x10] sm:$0xf] %vm1039_vm15, %v1722_v48  ;;  %1886 = vrot.lane.b32.xlu2 %v1721_v46, %s3623_s21  ;;  %1860 = vrot.lane.b32.xlu0 %v1720_v44, %s4582_s24 }
 0x8df   : > { %1742 = vrot.lane.b32.xlu1 %v1721_v46, %s4579_s28 }
 0x8e3   : > { %v1715_v49 = vpop.f32.mrf.mxu2 }
 0x8e4   : > { %v1723_v50 = vpack.c.bf16 %v1715_v49, %v1715_v49  ;;  %v1929_v49 = vld [vmem:[%s4542_s4 + $0x8] sm:$0xff] }
 0x8e6   : > { %1729 = vst.msk [vmem:[#allocation5 + $0x14] sm:$0xf] %vm1039_vm15, %v1723_v50  ;;  %1788 = vrot.lane.b32.xlu0 %v1720_v44, %s4583_s16  ;;  %1744 = vrot.lane.b32.xlu2 %v1722_v48, %s4579_s28 }
 0x8e7   : > { %1814 = vrot.lane.b32.xlu1 %v1721_v46, %s4581_s29 }
 0x8ed   : > { %v3458_v18 = vld [vmem:[#allocation5 + $0x10] sm:$0xff] }
 0x8ee   : > { %1816 = vrot.lane.b32.xlu2 %v1722_v48, %s4581_s29  ;;  %1746 = vrot.lane.b32.xlu0 %v1723_v50, %s4579_s28  ;;  %s4587_s28 = smov 110  }
 0x8ef   : > { %1862 = vrot.lane.b32.xlu1 %v1721_v46, %s4582_s24 }
 0x8f6   : > { %1864 = vrot.lane.b32.xlu2 %v1722_v48, %s4582_s24  ;;  %1836 = vrot.lane.b32.xlu0 %v1720_v44, %s3625_s22 }
 0x8f7   : > { %1790 = vrot.lane.b32.xlu1 %v1721_v46, %s4583_s16 }
 0x8fe   : > { %1792 = vrot.lane.b32.xlu2 %v1722_v48, %s4583_s16  ;;  %1908 = vrot.lane.b32.xlu0 %v1720_v44, %s4584_s26 }
 0x8ff   : > { %1888 = vrot.lane.b32.xlu1 %v1722_v48, %s3623_s21 }
 0x906   : > { %1890 = vrot.lane.b32.xlu2 %v1723_v50, %s3623_s21  ;;  %1818 = vrot.lane.b32.xlu0 %v1723_v50, %s4581_s29  ;;  %s4586_s21 = smov 90  }
 0x907   : > { %1784 = vrot.lane.b32.xlu1 %v4033_v57, %s4583_s16 }
 0x90e   : > { %1840 = vrot.lane.b32.xlu2 %v1722_v48, %s3625_s22  ;;  %1866 = vrot.lane.b32.xlu0 %v1723_v50, %s4582_s24 }
 0x90f   : > { %1838 = vrot.lane.b32.xlu1 %v1721_v46, %s3625_s22 }
 0x916   : > { %1786 = vrot.lane.b32.xlu2 %v4039_v61, %s4583_s16  ;;  %1794 = vrot.lane.b32.xlu0 %v1723_v50, %s4583_s16  ;;  %s3254_s16 = sld [smem:[#allocation9 + $0x3]] }
 0x917   : > { %1768 = vrot.lane.b32.xlu1 %v1722_v48, %s3616_s17 }
 0x91e   : > { %1912 = vrot.lane.b32.xlu2 %v1722_v48, %s4584_s26  ;;  %1842 = vrot.lane.b32.xlu0 %v1723_v50, %s3625_s22  ;;  %s4588_s22 = smov 91  }
 0x91f   : > { %1910 = vrot.lane.b32.xlu1 %v1721_v46, %s4584_s26  ;;  %v2221_v46 = vld [vmem:[%s4551_s13 + $0x30] sm:$0xff] }
 0x920   : > { %2237 = vmatpush.msra.mxu2 %v2221_v46  ;;  %v3488_v46 = vld [vmem:[%s4547_s9 + $0x20] sm:$0xf0] }
 0x922   : > { %2238 = vmatpush.msra.mxu2 %v2220_v47  ;;  %v3487_v47 = vld [vmem:[%s4547_s9 + $0x1c] sm:$0xf] }
 0x926   : > { %1770 = vrot.lane.b32.xlu2 %v1723_v50, %s3616_s17  ;;  %1914 = vrot.lane.b32.xlu0 %v1723_v50, %s4584_s26 }
 0x92e   : > { %1904 = vrot.lane.b32.xlu2 %v4033_v57, %s4584_s26  ;;  %1906 = vrot.lane.b32.xlu0 %v4039_v61, %s4584_s26  ;;  %s4585_s26 = smov 109  }
 0x930   : > { %v1767_v51 = vpop.permute.xlu2 %1766 }
 0x931   : > { %1781 = vst.msk [vmem:[#allocation5 + $0x3c] sm:$0xf] %vm1039_vm15, %v1767_v51 }
 0x938   : > { %v1887_v53 = vpop.permute.xlu2 %1886 }
 0x939   : > { %1901 = vst.msk [vmem:[#allocation5 + $0xb4] sm:$0xf] %vm1039_vm15, %v1887_v53 }
 0x940   : > { %v1741_v52 = vpop.permute.xlu0 %1740  ;;  %v1745_v54 = vpop.permute.xlu2 %1744 }
 0x941   : > { %1756 = vst.msk [vmem:[#allocation5 + $0x20] sm:$0xf] %vm1039_vm15, %v1741_v52  ;;  %v1765_v55 = vpop.permute.xlu1 %1764  ;;  %v1988_v52 = vunpack.c.l.b16 %v1929_v49 }
 0x942   : > { %1758 = vst.msk [vmem:[#allocation5 + $0x28] sm:$0xf] %vm1039_vm15, %v1745_v54  ;;  %v1987_v54 = vunpack.c.h.b16 %v4271_v19 }
 0x943   : > { %1780 = vst.msk [vmem:[#allocation5 + $0x38] sm:$0xf] %vm1039_vm15, %v1765_v55 }
 0x948   : > { %v1813_v58 = vpop.permute.xlu0 %1812  ;;  %v1817_v57 = vpop.permute.xlu2 %1816 }
 0x949   : > { %1828 = vst.msk [vmem:[#allocation5 + $0x68] sm:$0xf] %vm1039_vm15, %v1813_v58  ;;  %v1885_v61 = vpop.permute.xlu1 %1884 }
 0x94a   : > { %1830 = vst.msk [vmem:[#allocation5 + $0x70] sm:$0xf] %vm1039_vm15, %v1817_v57  ;;  %v3463_v59 = vld [vmem:[#allocation5 + $0x38] sm:$0xff]  ;;  %v1992_v57 = vpack.c.b16 %v1988_v52, %v1988_v52 }
 0x94b   : > { %1900 = vst.msk [vmem:[#allocation5 + $0xb0] sm:$0xf] %vm1039_vm15, %v1885_v61  ;;  %2163 = vmatpush.bf16.msrb.mxu0 %v3463_v59  ;;  %v1991_v61 = vpack.c.b16 %v1987_v54, %v1987_v54  ;;  %v3261_v54 = vld [vmem:[%s4547_s9] sm:$0xf] }
 0x94f   : > { %2164 = vmatpush.bf16.msrb.mxu0 %v3462_v60 }
 0x950   : > { %v1861_v63 = vpop.permute.xlu0 %1860  ;;  %v1865_v1 = vpop.permute.xlu2 %1864 }
 0x951   : > { %1876 = vst.msk [vmem:[#allocation5 + $0x98] sm:$0xf] %vm1039_vm15, %v1861_v63  ;;  %v1743_v4 = vpop.permute.xlu1 %1742 }
 0x952   : > { %1878 = vst.msk [vmem:[#allocation5 + $0xa0] sm:$0xf] %vm1039_vm15, %v1865_v1  ;;  %v3478_v62 = vld [vmem:[#allocation5 + $0xb0] sm:$0xff]  ;;  %v1989_v1 = vunpack.c.h.b16 %v1929_v49 }
 0x953   : > { %1757 = vst.msk [vmem:[#allocation5 + $0x24] sm:$0xf] %vm1039_vm15, %v1743_v4 }
 0x958   : > { %v1789_v6 = vpop.permute.xlu0 %1788  ;;  %v1793_v8 = vpop.permute.xlu2 %1792 }
 0x959   : > { %1804 = vst.msk [vmem:[#allocation5 + $0x50] sm:$0xf] %vm1039_vm15, %v1789_v6  ;;  %v1815_v7 = vpop.permute.xlu1 %1814  ;;  %v1993_v6 = vpack.c.b16 %v1989_v1, %v1989_v1 }
 0x95a   : > { %1806 = vst.msk [vmem:[#allocation5 + $0x58] sm:$0xf] %vm1039_vm15, %v1793_v8  ;;  %v3460_v14 = vld [vmem:[#allocation5 + $0x20] sm:$0xff]  ;;  %v2219_v8 = vld [vmem:[%s4551_s13 + $0x20] sm:$0xff] }
 0x95b   : > { %1829 = vst.msk [vmem:[#allocation5 + $0x6c] sm:$0xf] %vm1039_vm15, %v1815_v7  ;;  %2239 = vmatpush.msra.mxu2 %v2219_v8 }
 0x960   : > { %v1891_v9 = vpop.permute.xlu2 %1890  ;;  %v1747_v10 = vpop.permute.xlu0 %1746 }
 0x961   : > { %1903 = vst.msk [vmem:[#allocation5 + $0xbc] sm:$0xf] %vm1039_vm15, %v1891_v9  ;;  %v1863_v11 = vpop.permute.xlu1 %1862  ;;  %v2218_v9 = vld [vmem:[%s4551_s13 + $0x18] sm:$0xff] }
 0x962   : > { %1759 = vst.msk [vmem:[#allocation5 + $0x2c] sm:$0xf] %vm1039_vm15, %v1747_v10  ;;  %v3469_v33 = vld [vmem:[#allocation5 + $0x68] sm:$0xff]  ;;  %2240 = vmatpush.msra.mxu2 %v2218_v9  ;;  %v2217_v10 = vld [vmem:[%s4551_s13 + $0x10] sm:$0xff] }
 0x963   : > { %1877 = vst.msk [vmem:[#allocation5 + $0x9c] sm:$0xf] %vm1039_vm15, %v1863_v11  ;;  %v2216_v11 = vld [vmem:[%s4551_s13 + $0x8] sm:$0xff] }
 0x964   : > { %2241 = vmatpush.msra.mxu2 %v2217_v10 }
 0x966   : > { %2242 = vmatpush.msra.mxu2 %v2216_v11 }
 0x968   : > { %v1841_v2 = vpop.permute.xlu2 %1840  ;;  %v1837_v3 = vpop.permute.xlu0 %1836 }
 0x969   : > { %1854 = vst.msk [vmem:[#allocation5 + $0x88] sm:$0xf] %vm1039_vm15, %v1841_v2  ;;  %v1791_v12 = vpop.permute.xlu1 %1790  ;;  %v3461_v13 = vld [vmem:[#allocation5 + $0x28] sm:$0xff] }
 0x96a   : > { %1852 = vst.msk [vmem:[#allocation5 + $0x80] sm:$0xf] %vm1039_vm15, %v1837_v3  ;;  %2165 = vmatpush.bf16.msrb.mxu0 %v3461_v13  ;;  %v3475_v38 = vld [vmem:[#allocation5 + $0x98] sm:$0xff]  ;;  %v2215_v3 = vld [vmem:[%s4551_s13] sm:$0xff] }
 0x96b   : > { %1805 = vst.msk [vmem:[#allocation5 + $0x54] sm:$0xf] %vm1039_vm15, %v1791_v12  ;;  %2243 = vmatpush.msra.mxu2 %v2215_v3 }
 0x96e   : > { %2166 = vmatpush.bf16.msrb.mxu0 %v3460_v14 }
 0x970   : > { %v1787_v15 = vpop.permute.xlu2 %1786  ;;  %v1909_v16 = vpop.permute.xlu0 %1908 }
 0x971   : > { %1803 = vst.msk [vmem:[#allocation5 + $0x4c] sm:$0xf] %vm1039_vm15, %v1787_v15  ;;  %v1889_v56 = vpop.permute.xlu1 %1888 }
 0x972   : > { %1924 = vst.msk [vmem:[#allocation5 + $0xc8] sm:$0xf] %vm1039_vm15, %v1909_v16  ;;  %2167 = vmatpush.bf16.msrb.mxu0 %v3459_v17  ;;  %v3466_v48 = vld [vmem:[#allocation5 + $0x50] sm:$0xff] }
 0x973   : > { %1902 = vst.msk [vmem:[#allocation5 + $0xb8] sm:$0xf] %vm1039_vm15, %v1889_v56 }
 0x976   : > { %2168 = vmatpush.bf16.msrb.mxu0 %v3458_v18 }
 0x978   : > { %v1913_v20 = vpop.permute.xlu2 %1912  ;;  %v1819_v21 = vpop.permute.xlu0 %1818 }
 0x979   : > { %1926 = vst.msk [vmem:[#allocation5 + $0xd0] sm:$0xf] %vm1039_vm15, %v1913_v20  ;;  %v1785_v22 = vpop.permute.xlu1 %1784 }
 0x97a   : > { %1831 = vst.msk [vmem:[#allocation5 + $0x74] sm:$0xf] %vm1039_vm15, %v1819_v21  ;;  %v3479_v24 = vld [vmem:[#allocation5 + $0xb8] sm:$0xff]  ;;  %2169 = vmatpush.bf16.msrb.mxu0 %v3457_v23 }
 0x97b   : > { %1802 = vst.msk [vmem:[#allocation5 + $0x48] sm:$0xf] %vm1039_vm15, %v1785_v22  ;;  %2189 = vmatpush.bf16.msrb.mxu3 %v3479_v24  ;;  %v3297_v24 = vld [vmem:[%s4547_s9 + $0x48] sm:$0xf] }
 0x97e   : > { %2170 = vmatpush.bf16.msrb.mxu0 %v3456_v27  ;;  %v3493_v27 = vld [vmem:[%s4547_s9 + $0x4c] sm:$0xf] }
 0x97f   : > { %2190 = vmatpush.bf16.msrb.mxu3 %v3478_v62  ;;  %v3298_v62 = vor.u32 %v3494_v26, %v3297_v24 }
 0x980   : > { %v1771_v28 = vpop.permute.xlu2 %1770  ;;  %v1867_v29 = vpop.permute.xlu0 %1866 }
 0x981   : > { %1783 = vst.msk [vmem:[#allocation5 + $0x44] sm:$0xf] %vm1039_vm15, %v1771_v28  ;;  %v1839_v30 = vpop.permute.xlu1 %1838  ;;  %v3470_v31 = vld [vmem:[#allocation5 + $0x70] sm:$0xff]  ;;  %2171 = vmatmul.bf16.vlgmr.msrb.gmra.mxu0 %v1990_v25  ;;  %v3299_v25 = vld [vmem:[%s4547_s9 + $0x54] sm:$0xf0] }
 0x982   : > { %1879 = vst.msk [vmem:[#allocation5 + $0xa4] sm:$0xf] %vm1039_vm15, %v1867_v29  ;;  %2177 = vmatpush.bf16.msra.mxu1 %v3470_v31  ;;  %v3465_v53 = vld [vmem:[#allocation5 + $0x48] sm:$0xff]  ;;  %v3305_v28 = vld [vmem:[%s4547_s9 + $0x50] sm:$0xf] }
 0x983   : > { %1853 = vst.msk [vmem:[#allocation5 + $0x84] sm:$0xf] %vm1039_vm15, %v1839_v30  ;;  %2191 = vmatpush.bf16.msrb.mxu3 %v3477_v32  ;;  %v3495_v29 = vld [vmem:[%s4547_s9 + $0x58] sm:$0xf0]  ;;  %v3302_v30 = vor.u32 %v3493_v27, %v3299_v25 }
 0x984   : > { %v3306_v31 = vor.u32 %v3495_v29, %v3305_v28 }
 0x986   : > { %2178 = vmatpush.bf16.msra.mxu1 %v3469_v33 }
 0x988   : > { %v1905_v34 = vpop.permute.xlu2 %1904  ;;  %v1795_v35 = vpop.permute.xlu0 %1794 }
 0x989   : > { %1922 = vst.msk [vmem:[#allocation5 + $0xc0] sm:$0xf] %vm1039_vm15, %v1905_v34  ;;  %v1769_v36 = vpop.permute.xlu1 %1768  ;;  %v3476_v5 = vld [vmem:[#allocation5 + $0xa0] sm:$0xff] }
 0x98a   : > { %1807 = vst.msk [vmem:[#allocation5 + $0x5c] sm:$0xf] %vm1039_vm15, %v1795_v35  ;;  %2179 = vmatpush.bf16.msra.mxu1 %v3468_v37  ;;  %2192 = vmatpush.bf16.msrb.mxu3 %v3476_v5  ;;  %v3472_v55 = vld [vmem:[#allocation5 + $0x80] sm:$0xff]  ;;  %v3491_v35 = vld [vmem:[%s4547_s9 + $0x38] sm:$0xf0] }
 0x98b   : > { %1782 = vst.msk [vmem:[#allocation5 + $0x40] sm:$0xf] %vm1039_vm15, %v1769_v36  ;;  %v3285_v34 = vld [vmem:[%s4547_s9 + $0x30] sm:$0xf]  ;;  %v3490_v36 = vld [vmem:[%s4547_s9 + $0x34] sm:$0xf] }
 0x98c   : > { %v3286_v5 = vor.u32 %v3491_v35, %v3285_v34 }
 0x98e   : > { %2193 = vmatpush.bf16.msrb.mxu3 %v3475_v38  ;;  %v3287_v38 = vld [vmem:[%s4547_s9 + $0x3c] sm:$0xf0] }
 0x990   : > { %v1843_v42 = vpop.permute.xlu0 %1842 }
 0x991   : > { %1855 = vst.msk [vmem:[#allocation5 + $0x8c] sm:$0xf] %vm1039_vm15, %v1843_v42  ;;  %v1911_v43 = vpop.permute.xlu1 %1910  ;;  %v3467_v44 = vld [vmem:[#allocation5 + $0x58] sm:$0xff] }
 0x992   : > { %1925 = vst.msk [vmem:[#allocation5 + $0xcc] sm:$0xf] %vm1039_vm15, %v1911_v43  ;;  %2180 = vmatpush.bf16.msra.mxu1 %v3467_v44  ;;  %2194 = vmatpush.bf16.msrb.mxu3 %v3474_v45  ;;  %v3464_v58 = vld [vmem:[#allocation5 + $0x40] sm:$0xff]  ;;  %v3290_v43 = vor.u32 %v3490_v36, %v3287_v38  ;;  %v3294_v44 = vor.u32 %v3492_v40, %v3293_v39  ;;  %v3273_v45 = vld [vmem:[%s4547_s9 + $0x18] sm:$0xf] }
 0x993   : > { %v3274_v49 = vor.u32 %v3488_v46, %v3273_v45 }
 0x996   : > { %2181 = vmatpush.bf16.msra.mxu1 %v3466_v48 }
 0x998   : > { %v1915_v50 = vpop.permute.xlu0 %1914  ;;  %v3473_v51 = vld [vmem:[#allocation5 + $0x88] sm:$0xff] }
 0x999   : > { %1927 = vst.msk [vmem:[#allocation5 + $0xd4] sm:$0xf] %vm1039_vm15, %v1915_v50  ;;  %2195 = vmatpush.bf16.msrb.mxu3 %v3473_v51  ;;  %v3481_v63 = vld [vmem:[#allocation5 + $0xc8] sm:$0xff]  ;;  %v3281_v50 = vld [vmem:[%s4547_s9 + $0x20] sm:$0xf] }
 0x99a   : > { %2182 = vmatpush.bf16.msra.mxu1 %v3465_v53  ;;  %v3489_v51 = vld [vmem:[%s4547_s9 + $0x28] sm:$0xf0] }
 0x99b   : > { %v3282_v52 = vor.u32 %v3489_v51, %v3281_v50 }
 0x99d   : > { %2196 = vmatpush.bf16.msrb.mxu3 %v3472_v55  ;;  %v3485_v55 = vld [vmem:[%s4547_s9 + $0x8] sm:$0xf0] }
 0x99e   : > { %2183 = vmatpush.bf16.msra.mxu1 %v3464_v58  ;;  %v3484_v58 = vld [vmem:[%s4547_s9 + $0x4] sm:$0xf] }
 0x9a0   : > { %v1907_v59 = vpop.permute.xlu0 %1906  ;;  %v3482_v60 = vld [vmem:[#allocation5 + $0xd0] sm:$0xff]  ;;  %2197 = vmatmul.bf16.vlgmr.msrb.gmra.mxu3 %v1992_v57 }
 0x9a1   : > { %1923 = vst.msk [vmem:[#allocation5 + $0xc4] sm:$0xf] %vm1039_vm15, %v1907_v59  ;;  %2184 = vmatmul.bf16.vlgmr.msra.gmra.mxu1 %v1991_v61  ;;  %2207 = vmatpush.bf16.msra.mxu0 %v3482_v60  ;;  %v3263_v61 = vld [vmem:[%s4547_s9 + $0xc] sm:$0xf0]  ;;  %v3269_v59 = vld [vmem:[%s4547_s9 + $0x8] sm:$0xf]  ;;  %v3262_v60 = vor.u32 %v3485_v55, %v3261_v54 }
 0x9a2   : > { %2376 = vmatpush.bf16.msrb.mxu1 %v3298_v62  ;;  %2404 = vmatpush.bf16.msra.mxu3 %v3306_v31 }
 0x9a5   : > { %2208 = vmatpush.bf16.msra.mxu0 %v3481_v63  ;;  %v3486_v63 = vld [vmem:[%s4547_s9 + $0x10] sm:$0xf0] }
 0x9a6   : > { %2377 = vmatpush.bf16.msrb.mxu1 %v3286_v5  ;;  %2405 = vmatpush.bf16.msra.mxu3 %v3294_v44 }
 0x9a8   : > { %v3480_v4 = vld [vmem:[#allocation5 + $0xc0] sm:$0xff] }
 0x9a9   : > { %2209 = vmatpush.bf16.msra.mxu0 %v3480_v4  ;;  %v3266_v4 = vor.u32 %v3484_v58, %v3263_v61 }
 0x9aa   : > { %2378 = vmatpush.bf16.msrb.mxu1 %v3274_v49  ;;  %2406 = vmatpush.bf16.msra.mxu3 %v3282_v52 }
 0x9ac   : > { %3252 = vmatmul.msk.bf16.vlgmr.msra.gmra.mxu0 %vm2159_vm9, %v1993_v6  ;;  %v3270_v6 = vor.u32 %v3486_v63, %v3269_v59  ;;  %vm4597_vm9 = vmmov %vm4596_vm8 }
 0x9ad   : > { %2390 = vmatpush.bf16.msrb.mxu0 %v3302_v30 }
 0x9ae   : > { %2379 = vmatpush.bf16.msrb.mxu1 %v3262_v60  ;;  %2407 = vmatpush.bf16.msra.mxu3 %v3270_v6 }
 0x9b1   : > { %2391 = vmatpush.bf16.msrb.mxu0 %v3290_v43 }
 0x9fe   : > { %v2172_v7 = vpop.f32.mrf.mxu0 }
 0xa06   : > { %v2174_v2 = vpop.f32.mrf.mxu0 }
 0xa1e   : > { %v2185_v12 = vpop.f32.mrf.mxu1 }
 0xa1f   : > { %v2186_v14 = vadd.f32 %v2185_v12, %v2172_v7  ;;  %v2275_v12 = vstv %s3254_s16 }
 0xa23   : > { %v2198_v13 = vpop.f32.mrf.mxu3 }
 0xa24   : > { %v2199_v16 = vadd.f32 %v2198_v13, %v2186_v14 }
 0xa26   : > { %v2187_v15 = vpop.f32.mrf.mxu1 }
 0xa29   : > { %v2211_v56 = vpop.f32.mrf.mxu0 }
 0xa2a   : > { %v2212_v17 = vadd.f32 %v2211_v56, %v2199_v16 }
 0xa2b   : > { %v2200_v18 = vpop.f32.mrf.mxu3 }
 0xa2c   : > { %3253 = vmatmul.msk.f32.vlgmr.msra.gmra.mxu2 %vm1149_vm1, %v2212_v17 }
 0xa31   : > { %v2213_v19 = vpop.f32.mrf.mxu0 }
 0xaaf   : > { %v4322_v20 = vpop.f32.mrf.mxu2 }
 0xab0   : > { %v2249_v21 = vsel %vm952_vm14, %v4322_v20, 0.0  ;;  %v2253_v22 = vmul.f32 %v4322_v20, %v4322_v20 }
 0xab1   : > { %2250 = vadd.xlane.f32.xlu1 %v2249_v21 }
 0xab2   : > { %v2254_v23 = vsel %vm952_vm14, %v2253_v22, 0.0 }
 0xab3   : > { %2255 = vadd.xlane.f32.xlu2 %v2254_v23 }
 0xb24   : > { %v2251_v32 = vpop.xlane.xlu1 %2250 }
 0xb25   : > { %v2252_v33 = vmul.f32 %v2251_v32, %v3943_v0 }
 0xb26   : > { %v2256_v37 = vpop.xlane.xlu2 %2255 }
 0xb27   : > { %v2258_v41 = vmul.f32 %v2252_v33, %v2252_v33  ;;  %v2257_v42 = vmul.f32 %v2256_v37, %v3943_v0  ;;  %v3275_v0 = vld [vmem:[%s4547_s9 + $0x24] sm:$0xf0]  ;;  %v2261_v3 = vsub.f32 %v4322_v20, %v2252_v33 }
 0xb28   : > { %v3278_v53 = vor.u32 %v3487_v47, %v3275_v0 }
 0xb29   : > { %v2259_v48 = vsub.f32 %v2257_v42, %v2258_v41 }
 0xb2a   : > { %2392 = vmatpush.bf16.msrb.mxu0 %v3278_v53 }
 0xb2b   : > { %v2260_v57 = vmax.f32 %v2259_v48, 0.0 }
 0xb2d   : > { %v2262_v1 = vadd.f32 1e-05, %v2260_v57 }
 0xb2e   : > { %2393 = vmatpush.bf16.msrb.mxu0 %v3266_v4 }
 0xb2f   : > { %3582 = vrsqrt.f32 %v2262_v1  ;;  %vm2269_vm1 = vweird.f32 %v2262_v1 }
 0xb35   : > { %v3583_v8 = vpop.eup %3582 }
 0xb36   : > { %v2264_v7 = vmul.f32 %v3583_v8, %v2262_v1  ;;  %vm2270_vm15 = vweird.f32 %v3583_v8 }
 0xb37   : > { %vm2271_vm10 = vmor %vm2269_vm1, %vm2270_vm15 }
 0xb38   : > { %v2265_v9 = vmul.f32 %v3583_v8, %v2264_v7  ;;  %vm4599_vm1 = vmmov %vm4595_vm5 }
 0xb3a   : > { %v2266_v10 = vmul.f32 0.5, %v2265_v9 }
 0xb3c   : > { %v2267_v11 = vsub.f32 1.5, %v2266_v10  ;;  %v3632_v10 = vmov 1065369472  }
 0xb3d   : > { %2619 = vst [vmem:[#allocation6 + $0xd8] sm:$0x11] %v3632_v10 }
 0xb3e   : > { %v2268_v2 = vmul.f32 %v3583_v8, %v2267_v11  ;;  %2621 = vst.msk [vmem:[#allocation6 + $0xe0] sm:$0x1] %vm2620_vm6, %v3632_v10 }
 0xb40   : > { %v2272_v13 = vsel %vm2271_vm10, %v3583_v8, %v2268_v2  ;;  %vm2818_vm10 = vcmask 146432  }
 0xb41   : > { %v2273_v14 = vmul.f32 %v2272_v13, %v2261_v3 }
 0xb43   : > { %vm2274_vm0 = vcmp.ge.f32.partialorder %v2273_v14, 0.0  ;;  %v2276_v15 = vmul.f32 %v2275_v12, %v2273_v14 }
 0xb45   : > { %v2277_v16 = vsel %vm2274_vm0, %v2273_v14, %v2276_v15  ;;  %vm4601_vm0 = vmmov %vm4594_vm2 }
 0xb46   : > { %v2280_v56 = vpack.c.bf16 %v2277_v16, %v2277_v16 }
 0xb48   : > { %2281 = vst.msk [vmem:[#allocation8 + $0x4] sm:$0xf] %vm2278_vm13, %v2280_v56  ;;  %vm4592_vm13 = vcmask 736256  }
 0xb49   : > { %vm4598_vm15 = vmmov %vm4592_vm13 }
 0xb4f   : > { %v3483_v17 = vld [vmem:[#allocation8] sm:$0xff] }
 0xb50   : > { %3307 = vmatmul.msk.bf16.vlgmr.msrb.gmra.mxu1 %vm952_vm14, %v3483_v17  ;;  %3308 = vmatmul.msk.bf16.vlgmr.msrb.gmra.mxu0 %vm952_vm14, %v3483_v17 }
 0xb51   : > { %3309 = vmatmul.msk.bf16.vlgmr.msra.gmra.mxu3 %vm952_vm14, %v3483_v17  ;;  %vm4591_vm14 = vcmask 744448  }
 0xbcd   : > { %v2381_v18 = vpop.f32.mrf.mxu1  ;;  %v2395_v19 = vpop.f32.mrf.mxu0 }
 0xbce   : > { %v2414_v20 = vpack.c.bf16 %v2395_v19, %v2381_v18 }
 0xbd0   : > { %2418 = vst [vmem:[#allocation6] sm:$0xff] %v2414_v20  ;;  %2499 = vrot.lane.b32.xlu2 %v2414_v20, %s4585_s26  ;;  %2523 = vrot.lane.b32.xlu1 %v2414_v20, %s4582_s24 }
 0xbd1   : > { %2595 = vrot.lane.b32.xlu0 %v2414_v20, %s4586_s21 }
 0xbd4   : > { %v2409_v21 = vpop.f32.mrf.mxu3 }
 0xbd5   : > { %v2415_v22 = vpack.c.bf16 %v2409_v21, %v2409_v21  ;;  %v2383_v23 = vpop.f32.mrf.mxu1  ;;  %v2397_v24 = vpop.f32.mrf.mxu0 }
 0xbd6   : > { %v2416_v26 = vpack.c.bf16 %v2397_v24, %v2383_v23 }
 0xbd7   : > { %2420 = vst.msk [vmem:[#allocation6 + $0x8] sm:$0xf] %vm2419_vm12, %v2415_v22 }
 0xbd8   : > { %2421 = vst [vmem:[#allocation6 + $0xc] sm:$0xff] %v2416_v26  ;;  %2525 = vrot.lane.b32.xlu2 %v2415_v22, %s4582_s24  ;;  %2477 = vrot.lane.b32.xlu1 %v2415_v22, %s4587_s28 }
 0xbd9   : > { %2571 = vrot.lane.b32.xlu0 %v2414_v20, %s4588_s22 }
 0xbdc   : > { %v2411_v27 = vpop.f32.mrf.mxu3 }
 0xbdd   : > { %v2417_v62 = vpack.c.bf16 %v2411_v27, %v2411_v27  ;;  %v2659_v27 = vld [vmem:[#allocation6 + $0xd8] sm:$0x11] }
 0xbdf   : > { %2422 = vst.msk [vmem:[#allocation6 + $0x14] sm:$0xf] %vm2419_vm12, %v2417_v62 }
 0xbe0   : > { %2453 = vrot.lane.b32.xlu2 %v2415_v22, %s3616_s17  ;;  %2551 = vrot.lane.b32.xlu1 %v2416_v26, %s4589_s27 }
 0xbe1   : > { %2547 = vrot.lane.b32.xlu0 %v2414_v20, %s4589_s27 }
 0xbe8   : > { %2479 = vrot.lane.b32.xlu1 %v2416_v26, %s4587_s28  ;;  %2575 = vrot.lane.b32.xlu2 %v2416_v26, %s4588_s22 }
 0xbe9   : > { %2475 = vrot.lane.b32.xlu0 %v2414_v20, %s4587_s28 }
 0xbf0   : > { %2577 = vrot.lane.b32.xlu1 %v2417_v62, %s4588_s22  ;;  %2527 = vrot.lane.b32.xlu2 %v2416_v26, %s4582_s24 }
 0xbf1   : > { %2597 = vrot.lane.b32.xlu0 %v2415_v22, %s4586_s21 }
 0xbf8   : > { %2505 = vrot.lane.b32.xlu1 %v2417_v62, %s4585_s26  ;;  %2481 = vrot.lane.b32.xlu2 %v2417_v62, %s4587_s28 }
 0xbf9   : > { %2573 = vrot.lane.b32.xlu0 %v2415_v22, %s4588_s22 }
 0xc00   : > { %2451 = vrot.lane.b32.xlu1 %v2414_v20, %s3616_s17  ;;  %2455 = vrot.lane.b32.xlu2 %v2416_v26, %s3616_s17 }
 0xc01   : > { %2549 = vrot.lane.b32.xlu0 %v2415_v22, %s4589_s27 }
 0xc08   : > { %2433 = vrot.lane.b32.xlu1 %v2417_v62, %s4590_s23  ;;  %2427 = vrot.lane.b32.xlu2 %v2414_v20, %s4590_s23 }
 0xc09   : > { %2501 = vrot.lane.b32.xlu0 %v2415_v22, %s4585_s26 }
 0xc11   : > { %2599 = vrot.lane.b32.xlu0 %v2416_v26, %s4586_s21 }
 0xc19   : > { %2503 = vrot.lane.b32.xlu0 %v2416_v26, %s4585_s26 }
 0xc21   : > { %2601 = vrot.lane.b32.xlu0 %v2417_v62, %s4586_s21 }
 0xc29   : > { %2553 = vrot.lane.b32.xlu0 %v2417_v62, %s4589_s27 }
 0xc2a   : > { %v4438_v25 = vpop.permute.xlu2 %2499 }
 0xc31   : > { %2529 = vrot.lane.b32.xlu0 %v2417_v62, %s4582_s24 }
 0xc32   : > { %v2526_v28 = vpop.permute.xlu2 %2525 }
 0xc33   : > { %2544 = vst.msk [vmem:[#allocation6 + $0x80] sm:$0xf] %vm2419_vm12, %v2526_v28  ;;  %v2532_v32 = vrot.slane %v2526_v28, 4  ;;  %v2758_v28 = vunpack.c.l.b16 %v2659_v27 }
 0xc39   : > { %2429 = vrot.lane.b32.xlu0 %v2415_v22, %s4590_s23 }
 0xc3a   : > { %v4443_v29 = vpop.permute.xlu2 %2453 }
 0xc3b   : > { %2472 = vst.msk [vmem:[#allocation6 + $0x38] sm:$0xf] %vm2419_vm12, %v4443_v29  ;;  %v2460_v11 = vrot.slane %v4443_v29, 4 }
 0xc41   : > { %2457 = vrot.lane.b32.xlu0 %v2417_v62, %s3616_s17 }
 0xc42   : > { %v2524_v30 = vpop.permute.xlu1 %2523  ;;  %v2576_v31 = vpop.permute.xlu2 %2575 }
 0xc43   : > { %v2531_v33 = vrot.slane %v2524_v30, 4  ;;  %v2596_v34 = vpop.permute.xlu0 %2595  ;;  %v2581_v53 = vrot.slane %v2576_v31, 4 }
 0xc44   : > { %v2603_v55 = vrot.slane %v2596_v34, 4 }
 0xc45   : > { %v2535_v35 = vsel %vm550_vm3, %v2531_v33, %v2532_v32  ;;  %v2788_v32 = vpack.c.b16 %v2758_v28, %v2758_v28  ;;  %v2622_v33 = vld [vmem:[%s4543_s5] sm:$0xf] }
 0xc46   : > { %v2536_v36 = vsel %vm661_vm4, %v2524_v30, %v2535_v35  ;;  %v2507_v30 = vrot.slane %v4438_v25, 4  ;;  %2662 = vst [vmem:[#allocation1] ss:$4 sm:$0xff] %v2622_v33 }
 0xc47   : > { %2543 = vst [vmem:[#allocation6 + $0x78] sm:$0xff] %v2536_v36  ;;  %v2823_v35 = vsel %vm2821_vm7, %v2788_v32, 0 }
 0xc48   : > { %2850 = vmatpush.bf16.msrb.mxu2 %v2823_v35 }
 0xc49   : > { %2431 = vrot.lane.b32.xlu0 %v2416_v26, %s4590_s23 }
 0xc4a   : > { %v2478_v37 = vpop.permute.xlu1 %2477  ;;  %v4451_v5 = vpop.permute.xlu2 %2527 }
 0xc4b   : > { %2496 = vst.msk [vmem:[#allocation6 + $0x50] sm:$0xf] %vm2419_vm12, %v2478_v37  ;;  %v2572_v38 = vpop.permute.xlu0 %2571  ;;  %v2484_v46 = vrot.slane %v2478_v37, 4 }
 0xc4c   : > { %v2579_v4 = vrot.slane %v2572_v38, 4 }
 0xc52   : > { %v4454_v39 = vpop.permute.xlu1 %2551  ;;  %v2482_v40 = vpop.permute.xlu2 %2481 }
 0xc53   : > { %v2548_v41 = vpop.permute.xlu0 %2547  ;;  %2498 = vst.msk [vmem:[#allocation6 + $0x5c] sm:$0xf] %vm2419_vm12, %v2482_v40  ;;  %v2486_v43 = vrot.slane %v2482_v40, 4 }
 0xc54   : > { %v2555_v14 = vrot.slane %v2548_v41, 4 }
 0xc5a   : > { %v2480_v42 = vpop.permute.xlu1 %2479 }
 0xc5b   : > { %v2476_v44 = vpop.permute.xlu0 %2475  ;;  %v2485_v45 = vrot.slane %v2480_v42, 4 }
 0xc5c   : > { %v2483_v47 = vrot.slane %v2476_v44, 4 }
 0xc5d   : > { %v2489_v48 = vsel %vm550_vm3, %v2485_v45, %v2486_v43 }
 0xc5e   : > { %v2487_v49 = vsel %vm550_vm3, %v2483_v47, %v2484_v46  ;;  %v2490_v0 = vsel %vm607_vm11, %v2480_v42, %v2489_v48  ;;  %v2759_v48 = vunpack.c.h.b16 %v2659_v27 }
 0xc5f   : > { %v2488_v50 = vsel %vm607_vm11, %v2476_v44, %v2487_v49  ;;  %2497 = vst [vmem:[#allocation6 + $0x54] sm:$0xff] %v2490_v0  ;;  %vm4593_vm11 = vmmov %vm4591_vm14  ;;  %v2660_v49 = vld [vmem:[#allocation6 + $0xe0] sm:$0x1] }
 0xc60   : > { %2495 = vst [vmem:[#allocation6 + $0x48] sm:$0xff] %v2488_v50  ;;  %v2557_v50 = vrot.slane %v4454_v39, 4 }
 0xc62   : > { %v2578_v51 = vpop.permute.xlu1 %2577 }
 0xc63   : > { %v2598_v52 = vpop.permute.xlu0 %2597  ;;  %v2582_v54 = vrot.slane %v2578_v51, 4  ;;  %2594 = vst.msk [vmem:[#allocation6 + $0xbc] sm:$0xf] %vm2419_vm12, %v2578_v51 }
 0xc64   : > { %v2604_v58 = vrot.slane %v2598_v52, 4  ;;  %2616 = vst.msk [vmem:[#allocation6 + $0xc8] sm:$0xf] %vm2419_vm12, %v2598_v52  ;;  %v2760_v52 = vunpack.c.l.b16 %v2660_v49 }
 0xc65   : > { %v2585_v57 = vsel %vm550_vm3, %v2581_v53, %v2582_v54  ;;  %v2789_v53 = vpack.c.b16 %v2759_v48, %v2759_v48 }
 0xc66   : > { %v2607_v61 = vsel %vm550_vm3, %v2603_v55, %v2604_v58  ;;  %v2586_v59 = vsel %vm4591_vm14, %v2576_v31, %v2585_v57  ;;  %v4498_v55 = vpop.permute.xlu2 %2455 }
 0xc67   : > { %v2608_v60 = vsel %vm4592_vm13, %v2596_v34, %v2607_v61  ;;  %2593 = vst [vmem:[#allocation6 + $0xb4] sm:$0xff] %v2586_v59 }
 0xc68   : > { %2615 = vst [vmem:[#allocation6 + $0xc0] sm:$0xff] %v2608_v60  ;;  %v2826_v60 = vsel %vm2821_vm7, %v2789_v53, 0  ;;  %v3348_v53 = vld [vmem:[#allocation6 + $0x48] sm:$0xf] }
 0xc6a   : > { %v2506_v63 = vpop.permute.xlu1 %2505  ;;  %v3519_v13 = vld [vmem:[#allocation6 + $0xb8] sm:$0xf0] }
 0xc6b   : > { %v2574_v1 = vpop.permute.xlu0 %2573  ;;  %2522 = vst.msk [vmem:[#allocation6 + $0x74] sm:$0xf] %vm2419_vm12, %v2506_v63  ;;  %v2510_v40 = vrot.slane %v2506_v63, 4  ;;  %v2790_v63 = vpack.c.b16 %v2760_v52, %v2760_v52  ;;  %v3505_v52 = vld [vmem:[#allocation6 + $0x4c] sm:$0xf] }
 0xc6c   : > { %v2580_v6 = vrot.slane %v2574_v1, 4  ;;  %2592 = vst.msk [vmem:[#allocation6 + $0xb0] sm:$0xf] %vm2419_vm12, %v2574_v1 }
 0xc6e   : > { %v2583_v8 = vsel %vm550_vm3, %v2579_v4, %v2580_v6  ;;  %v3518_v19 = vld [vmem:[#allocation6 + $0xb0] sm:$0xf0]  ;;  %v3398_v20 = vld [vmem:[#allocation6 + $0xb4] sm:$0xf0] }
 0xc6f   : > { %v2584_v7 = vsel %vm4593_vm11, %v2572_v38, %v2583_v8  ;;  %v3408_v57 = vld [vmem:[#allocation6 + $0xc0] sm:$0xf] }
 0xc70   : > { %2591 = vst [vmem:[#allocation6 + $0xa8] sm:$0xff] %v2584_v7  ;;  %v4503_v4 = vld.sshfl [vmem:[#allocation1 + $0x8] sm:$0xff pattern:$0x73625140] }
 0xc72   : > { %v2452_v9 = vpop.permute.xlu1 %2451 }
 0xc73   : > { %v2550_v2 = vpop.permute.xlu0 %2549  ;;  %v2459_v3 = vrot.slane %v2452_v9, 4  ;;  %v3404_v12 = vld [vmem:[#allocation6 + $0xb0] sm:$0xf] }
 0xc74   : > { %v2556_v15 = vrot.slane %v2550_v2, 4  ;;  %2568 = vst.msk [vmem:[#allocation6 + $0x98] sm:$0xf] %vm2419_vm12, %v2550_v2  ;;  %v3405_v16 = vor.u32 %v3519_v13, %v3404_v12 }
 0xc75   : > { %v2463_v56 = vsel %vm550_vm3, %v2459_v3, %v2460_v11  ;;  %v3520_v11 = vld [vmem:[#allocation6 + $0xc4] sm:$0xf]  ;;  %v2829_v3 = vsel %vm2821_vm7, %v2790_v63, 0  ;;  %v3344_v63 = vld [vmem:[#allocation6 + $0x38] sm:$0xf] }
 0xc76   : > { %v2559_v17 = vsel %vm550_vm3, %v2555_v14, %v2556_v15  ;;  %v2464_v18 = vsel %vm4594_vm2, %v2452_v9, %v2463_v56  ;;  %2883 = vmatpush.bf16.msrb.mxu3 %v3405_v16  ;;  %v2533_v9 = vrot.slane %v4451_v5, 4 }
 0xc77   : > { %v2560_v21 = vsel %vm4595_vm5, %v2548_v41, %v2559_v17  ;;  %2471 = vst [vmem:[#allocation6 + $0x30] sm:$0xff] %v2464_v18  ;;  %v3396_v22 = vld [vmem:[#allocation6 + $0xa8] sm:$0xf]  ;;  %v3517_v23 = vld [vmem:[#allocation6 + $0xac] sm:$0xf] }
 0xc78   : > { %2567 = vst [vmem:[#allocation6 + $0x90] sm:$0xff] %v2560_v21  ;;  %v3397_v24 = vor.u32 %v3518_v19, %v3396_v22  ;;  %v3401_v26 = vor.u32 %v3517_v23, %v3398_v20  ;;  %v2428_v20 = vpop.permute.xlu2 %2427  ;;  %v3416_v21 = vld [vmem:[#allocation6 + $0xc8] sm:$0xf] }
 0xc79   : > { %v2435_v27 = vrot.slane %v2428_v20, 4 }
 0xc7a   : > { %2831 = vmatpush.bf16.msra.mxu1 %v3397_v24  ;;  %2857 = vmatpush.bf16.msra.mxu0 %v3401_v26  ;;  %v4477_v62 = vpop.permute.xlu1 %2433  ;;  %v3380_v24 = vld [vmem:[#allocation6 + $0x80] sm:$0xf] }
 0xc7b   : > { %v2502_v29 = vpop.permute.xlu0 %2501  ;;  %2450 = vst.msk [vmem:[#allocation6 + $0x2c] sm:$0xf] %vm2419_vm12, %v4477_v62  ;;  %v3392_v8 = vld [vmem:[#allocation6 + $0x98] sm:$0xf] }
 0xc7c   : > { %v2508_v31 = vrot.slane %v2502_v29, 4  ;;  %2520 = vst.msk [vmem:[#allocation6 + $0x68] sm:$0xf] %vm2419_vm12, %v2502_v29 }
 0xc7e   : > { %v2511_v34 = vsel %vm550_vm3, %v2507_v30, %v2508_v31  ;;  %v3372_v30 = vld [vmem:[#allocation6 + $0x78] sm:$0xf] }
 0xc7f   : > { %v2512_v36 = vsel %vm4596_vm8, %v4438_v25, %v2511_v34  ;;  %v3384_v13 = vld [vmem:[#allocation6 + $0x90] sm:$0xf]  ;;  %v3514_v14 = vld [vmem:[#allocation6 + $0x94] sm:$0xf]  ;;  %v3511_v34 = vld [vmem:[#allocation6 + $0x7c] sm:$0xf] }
 0xc80   : > { %2519 = vst [vmem:[#allocation6 + $0x60] sm:$0xff] %v2512_v36 }
 0xc83   : > { %v2600_v37 = vpop.permute.xlu0 %2599  ;;  %v3368_v31 = vld [vmem:[#allocation6 + $0x68] sm:$0xf] }
 0xc84   : > { %v2605_v45 = vrot.slane %v2600_v37, 4 }
 0xc8b   : > { %v2504_v38 = vpop.permute.xlu0 %2503 }
 0xc8c   : > { %v2509_v41 = vrot.slane %v2504_v38, 4 }
 0xc8e   : > { %v2513_v42 = vsel %vm550_vm3, %v2509_v41, %v2510_v40 }
 0xc8f   : > { %v2514_v43 = vsel %vm4597_vm9, %v2504_v38, %v2513_v42  ;;  %v3510_v38 = vld [vmem:[#allocation6 + $0x70] sm:$0xf0] }
 0xc90   : > { %2521 = vst [vmem:[#allocation6 + $0x6c] sm:$0xff] %v2514_v43  ;;  %v3369_v40 = vor.u32 %v3510_v38, %v3368_v31  ;;  %v3507_v43 = vld [vmem:[#allocation6 + $0x58] sm:$0xf0] }
 0xc93   : > { %v2602_v44 = vpop.permute.xlu0 %2601 }
 0xc94   : > { %v2606_v46 = vrot.slane %v2602_v44, 4  ;;  %2618 = vst.msk [vmem:[#allocation6 + $0xd4] sm:$0xf] %vm2419_vm12, %v2602_v44 }
 0xc96   : > { %v2609_v47 = vsel %vm550_vm3, %v2605_v45, %v2606_v46  ;;  %v3360_v45 = vld [vmem:[#allocation6 + $0x60] sm:$0xf]  ;;  %v3508_v46 = vld [vmem:[#allocation6 + $0x64] sm:$0xf] }
 0xc97   : > { %v2610_v25 = vsel %vm4598_vm15, %v2600_v37, %v2609_v47  ;;  %v3509_v41 = vld [vmem:[#allocation6 + $0x68] sm:$0xf0]  ;;  %v3362_v42 = vld [vmem:[#allocation6 + $0x6c] sm:$0xf0] }
 0xc98   : > { %2617 = vst [vmem:[#allocation6 + $0xcc] sm:$0xff] %v2610_v25  ;;  %v3356_v47 = vld [vmem:[#allocation6 + $0x50] sm:$0xf]  ;;  %v2461_v25 = vrot.slane %v4498_v55, 4  ;;  %v3361_v49 = vor.u32 %v3509_v41, %v3360_v45 }
 0xc9b   : > { %v2554_v0 = vpop.permute.xlu0 %2553  ;;  %v3522_v17 = vld [vmem:[#allocation6 + $0xd0] sm:$0xf0] }
 0xc9c   : > { %v2558_v51 = vrot.slane %v2554_v0, 4  ;;  %2570 = vst.msk [vmem:[#allocation6 + $0xa4] sm:$0xf] %vm2419_vm12, %v2554_v0  ;;  %v3417_v22 = vor.u32 %v3522_v17, %v3416_v21  ;;  %v3365_v0 = vor.u32 %v3508_v46, %v3362_v42  ;;  %v2663_v17 = vld.sshfl [vmem:[#allocation1] sm:$0xff pattern:$0x73625140] }
 0xc9e   : > { %v2561_v54 = vsel %vm550_vm3, %v2557_v50, %v2558_v51  ;;  %v3506_v50 = vld [vmem:[#allocation6 + $0x50] sm:$0xf0]  ;;  %v3357_v51 = vor.u32 %v3507_v43, %v3356_v47 }
 0xc9f   : > { %v2562_v58 = vsel %vm4599_vm1, %v4454_v39, %v2561_v54  ;;  %v3521_v61 = vld [vmem:[#allocation6 + $0xc8] sm:$0xf0]  ;;  %v3410_v1 = vld [vmem:[#allocation6 + $0xcc] sm:$0xf0]  ;;  %v3350_v54 = vld [vmem:[#allocation6 + $0x54] sm:$0xf0] }
 0xca0   : > { %2569 = vst [vmem:[#allocation6 + $0x9c] sm:$0xff] %v2562_v58  ;;  %v3409_v59 = vor.u32 %v3521_v61, %v3408_v57  ;;  %v3413_v2 = vor.u32 %v3520_v11, %v3410_v1  ;;  %v3349_v61 = vor.u32 %v3506_v50, %v3348_v53 }
 0xca2   : > { %2851 = vmatpush.bf16.msrb.mxu2 %v3409_v59  ;;  %v3353_v59 = vor.u32 %v3505_v52, %v3350_v54 }
 0xca3   : > { %v2530_v6 = vpop.permute.xlu0 %2529  ;;  %v3516_v7 = vld [vmem:[#allocation6 + $0xa0] sm:$0xf0] }
 0xca4   : > { %v2534_v10 = vrot.slane %v2530_v6, 4  ;;  %2546 = vst.msk [vmem:[#allocation6 + $0x8c] sm:$0xf] %vm2419_vm12, %v2530_v6  ;;  %v3393_v39 = vor.u32 %v3516_v7, %v3392_v8  ;;  %v2438_v6 = vrot.slane %v4477_v62, 4  ;;  %v3498_v62 = vld [vmem:[#allocation6 + $0x10] sm:$0xf0] }
 0xca5   : > { %3418 = vmatmul.msk.bf16.vlgmr.msrb.gmra.mxu2 %vm2818_vm10, %v4503_v4 }
 0xca6   : > { %2876 = vmatpush.bf16.msra.mxu2 %v2826_v60  ;;  %v2537_v12 = vsel %vm550_vm3, %v2533_v9, %v2534_v10  ;;  %2884 = vmatpush.bf16.msrb.mxu3 %v3393_v39  ;;  %v3336_v10 = vld [vmem:[#allocation6 + $0x30] sm:$0xf] }
 0xca7   : > { %v2538_v15 = vsel %vm661_vm4, %v4451_v5, %v2537_v12  ;;  %v3515_v16 = vld [vmem:[#allocation6 + $0x98] sm:$0xf0]  ;;  %v3386_v56 = vld [vmem:[#allocation6 + $0x9c] sm:$0xf0]  ;;  %vm4600_vm4 = vcmask 1039360  }
 0xca8   : > { %2545 = vst [vmem:[#allocation6 + $0x84] sm:$0xff] %v2538_v15  ;;  %v3385_v18 = vor.u32 %v3515_v16, %v3384_v13  ;;  %v3389_v19 = vor.u32 %v3514_v14, %v3386_v56  ;;  %vm4602_vm14 = vmmov %vm4600_vm4  ;;  %v3501_v14 = vld [vmem:[#allocation6 + $0x28] sm:$0xf0]  ;;  %v3320_v16 = vld [vmem:[#allocation6 + $0x8] sm:$0xf] }
 0xca9   : > { %v3321_v56 = vor.u32 %v3498_v62, %v3320_v16 }
 0xcaa   : > { %2877 = vmatpush.bf16.msra.mxu2 %v3413_v2  ;;  %2832 = vmatpush.bf16.msra.mxu1 %v3385_v18  ;;  %v3502_v2 = vld [vmem:[#allocation6 + $0x34] sm:$0xf] }
 0xcab   : > { %2858 = vmatpush.bf16.msra.mxu0 %v3389_v19  ;;  %v2430_v23 = vpop.permute.xlu0 %2429  ;;  %v3513_v26 = vld [vmem:[#allocation6 + $0x88] sm:$0xf0] }
 0xcac   : > { %v2436_v28 = vrot.slane %v2430_v23, 4  ;;  %2448 = vst.msk [vmem:[#allocation6 + $0x20] sm:$0xf] %vm2419_vm12, %v2430_v23  ;;  %v3381_v5 = vor.u32 %v3513_v26, %v3380_v24  ;;  %v3497_v24 = vld [vmem:[#allocation6 + $0x8] sm:$0xf0] }
 0xcad   : > { %v3314_v26 = vld [vmem:[#allocation6 + $0xc] sm:$0xf0] }
 0xcae   : > { %2902 = vmatpush.bf16.msrb.mxu2 %v2829_v3  ;;  %v2439_v29 = vsel %vm550_vm3, %v2435_v27, %v2436_v28  ;;  %2885 = vmatpush.bf16.msrb.mxu3 %v3381_v5  ;;  %v3312_v27 = vld [vmem:[#allocation6] sm:$0xf]  ;;  %v3496_v5 = vld [vmem:[#allocation6 + $0x4] sm:$0xf] }
 0xcaf   : > { %v2440_v32 = vsel %vm4600_vm4, %v2428_v20, %v2439_v29  ;;  %v3512_v33 = vld [vmem:[#allocation6 + $0x80] sm:$0xf0]  ;;  %v3374_v35 = vld [vmem:[#allocation6 + $0x84] sm:$0xf0]  ;;  %v3313_v28 = vor.u32 %v3497_v24, %v3312_v27  ;;  %v3317_v29 = vor.u32 %v3496_v5, %v3314_v26 }
 0xcb0   : > { %2447 = vst [vmem:[#allocation6 + $0x18] sm:$0xff] %v2440_v32  ;;  %v3373_v36 = vor.u32 %v3512_v33, %v3372_v30  ;;  %v3377_v37 = vor.u32 %v3511_v34, %v3374_v35 }
 0xcb2   : > { %2903 = vmatpush.bf16.msrb.mxu2 %v3417_v22  ;;  %2833 = vmatpush.bf16.msra.mxu1 %v3373_v36 }
 0xcb3   : > { %2859 = vmatpush.bf16.msra.mxu0 %v3377_v37  ;;  %2886 = vmatpush.bf16.msrb.mxu3 %v3369_v40  ;;  %v2458_v44 = vpop.permute.xlu0 %2457  ;;  %v3332_v39 = vld [vmem:[#allocation6 + $0x20] sm:$0xf] }
 0xcb4   : > { %v2462_v48 = vrot.slane %v2458_v44, 4  ;;  %2474 = vst.msk [vmem:[#allocation6 + $0x44] sm:$0xf] %vm2419_vm12, %v2458_v44  ;;  %v3333_v15 = vor.u32 %v3501_v14, %v3332_v39 }
 0xcb5   : > { %3419 = vmatmul.msk.bf16.vlgmr.msra.gmra.mxu2 %vm2818_vm10, %v4503_v4 }
 0xcb6   : > { %v2465_v58 = vsel %vm550_vm3, %v2461_v25, %v2462_v48  ;;  %2834 = vmatpush.bf16.msra.mxu1 %v3361_v49 }
 0xcb7   : > { %2860 = vmatpush.bf16.msra.mxu0 %v3365_v0  ;;  %v2466_v57 = vsel %vm4601_vm0, %v4498_v55, %v2465_v58  ;;  %2887 = vmatpush.bf16.msrb.mxu3 %v3357_v51  ;;  %v3324_v18 = vld [vmem:[#allocation6 + $0x18] sm:$0xf]  ;;  %v3499_v20 = vld [vmem:[#allocation6 + $0x1c] sm:$0xf] }
 0xcb8   : > { %2473 = vst [vmem:[#allocation6 + $0x3c] sm:$0xff] %v2466_v57 }
 0xcba   : > { %2835 = vmatpush.bf16.msra.mxu1 %v3349_v61 }
 0xcbb   : > { %2861 = vmatpush.bf16.msra.mxu0 %v3353_v59  ;;  %v2432_v60 = vpop.permute.xlu0 %2431  ;;  %v3504_v1 = vld [vmem:[#allocation6 + $0x40] sm:$0xf0] }
 0xcbc   : > { %v2437_v8 = vrot.slane %v2432_v60, 4  ;;  %v3345_v7 = vor.u32 %v3504_v1, %v3344_v63 }
 0xcbe   : > { %v2441_v9 = vsel %vm550_vm3, %v2437_v8, %v2438_v6  ;;  %2888 = vmatpush.bf16.msrb.mxu3 %v3345_v7 }
 0xcbf   : > { %v2442_v55 = vsel %vm4602_vm14, %v2432_v60, %v2441_v9  ;;  %v3503_v11 = vld [vmem:[#allocation6 + $0x38] sm:$0xf0]  ;;  %v3338_v3 = vld [vmem:[#allocation6 + $0x3c] sm:$0xf0] }
 0xcc0   : > { %2449 = vst [vmem:[#allocation6 + $0x24] sm:$0xff] %v2442_v55  ;;  %v3337_v12 = vor.u32 %v3503_v11, %v3336_v10  ;;  %v3341_v13 = vor.u32 %v3502_v2, %v3338_v3 }
 0xcc2   : > { %2836 = vmatpush.bf16.msra.mxu1 %v3337_v12  ;;  %2862 = vmatpush.bf16.msra.mxu0 %v3341_v13 }
 0xcc3   : > { %2889 = vmatpush.bf16.msrb.mxu3 %v3333_v15 }
 0xcc5   : > { %3420 = vmatmul.msk.bf16.vlgmr.msrb.gmra.mxu2 %vm2818_vm10, %v4503_v4 }
 0xcc7   : > { %2890 = vmatpush.bf16.msrb.mxu3 %v3321_v56  ;;  %v3500_v19 = vld [vmem:[#allocation6 + $0x20] sm:$0xf0]  ;;  %v3326_v21 = vld [vmem:[#allocation6 + $0x24] sm:$0xf0] }
 0xcc8   : > { %v3325_v22 = vor.u32 %v3500_v19, %v3324_v18  ;;  %v3329_v23 = vor.u32 %v3499_v20, %v3326_v21 }
 0xcca   : > { %2891 = vmatmul.bf16.vlgmr.msrb.gmra.mxu3 %v2663_v17  ;;  %2837 = vmatpush.bf16.msra.mxu1 %v3325_v22 }
 0xccb   : > { %2863 = vmatpush.bf16.msra.mxu0 %v3329_v23 }
 0xcce   : > { %2838 = vmatpush.bf16.msra.mxu1 %v3313_v28 }
 0xccf   : > { %2864 = vmatpush.bf16.msra.mxu0 %v3317_v29 }
 0xcd1   : > { %2839 = vmatmul.bf16.vlgmr.msra.gmra.mxu1 %v2663_v17 }
 0xcd2   : > { %2865 = vmatmul.bf16.vlgmr.msra.gmra.mxu0 %v2663_v17 }
 0xd28   : > { %v2853_v4 = vpop.f32.mrf.mxu2 }
 0xd30   : > { %v2855_v30 = vpop.f32.mrf.mxu2 }
 0xd38   : > { %v2879_v31 = vpop.f32.mrf.mxu2 }
 0xd40   : > { %v2881_v32 = vpop.f32.mrf.mxu2 }
 0xd48   : > { %v2905_v33 = vpop.f32.mrf.mxu2 }
 0xd4d   : > { %v2892_v34 = vpop.f32.mrf.mxu3 }
 0xd4e   : > { %v2906_v35 = vadd.f32 %v2905_v33, %v2892_v34  ;;  %v2840_v36 = vpop.f32.mrf.mxu1 }
 0xd4f   : > { %v2866_v37 = vpop.f32.mrf.mxu0  ;;  %v2854_v41 = vadd.f32 %v2853_v4, %v2840_v36 }
 0xd50   : > { %2915 = vst.msk [vmem:[%s508_s30 + $0x8] sm:$0xf] %vm2419_vm12, %v2906_v35  ;;  %v2880_v38 = vadd.f32 %v2879_v31, %v2866_v37  ;;  %v2907_v40 = vpop.f32.mrf.mxu2 }
 0xd52   : > { %v2911_v42 = vrot.slane %v2880_v38, 4 }
 0xd54   : > { %v2912_v43 = vsel %vm550_vm3, %v2854_v41, %v2911_v42 }
 0xd55   : > { %2914 = vst [vmem:[%s508_s30] sm:$0xff] %v2912_v43  ;;  %v2894_v44 = vpop.f32.mrf.mxu3 }
 0xd56   : > { %v2842_v45 = vpop.f32.mrf.mxu1 }
 0xd57   : > { %v2868_v46 = vpop.f32.mrf.mxu0 }
 0xd58 PF: > { %s26_s18 = sadd.s32 1, %s3609_s18  }
 0xd59   : > { %p23_p7 = scmp.ge.s32.totalorder %s26_s18, 4  }
 0xd5b   :  { %25 = sbr.rel (!%p23_p7) target bundleno = 1 (0x1), region = 124 }
 0xd60   :  { %2937 = vsyncpa [#allocation10], 1 }
 0xd61   :  { %2939 = vsyncpa [#allocation10 + $0x1], 1 }

</bundles_post_ra>
